<compile_context>
chip_gen: v7x
topology: tpu7x:2x2x1
jax: 0.10.0
libtpu: 0.0.40
codegen_flags: <defaults>
</compile_context>

<pallas_src>
import functools

import numpy as np
import jax
import jax.numpy as jnp
from jax.experimental import pallas as pl
from jax.experimental.pallas import tpu as pltpu


_LRELU_SLOPE = 0.2
_IN_EPS = 1e-5
_VMEM_BUDGET_BYTES = 48 * 2 ** 20   # headroom under v7x's 64 MiB physical VMEM


# -----------------------------------------------------------------------------
# Fused whole-network kernel (single invocation, no grid, everything in VMEM)
# -----------------------------------------------------------------------------
def _fused_discriminator_kernel(x_ref, *refs, n_blocks, eps, negative_slope):
    """refs = (M'_1, P_1, B_1, ..., M'_nb, P_nb, B_nb, M_final, b_final, o_ref).

    Activations are NCHW-flattened: (N, C*H*W), channel-major / spatial-minor.
    Per block:
      c   = y @ M'        (reflect-pad + 4x4/s2 conv + mean-subtraction, MXU)
      var = (c*c) @ P      per-sample / per-channel spatial mean of squares
      inv = rsqrt(var+eps) @ B   broadcast back over spatial lanes
      y   = LeakyReLU(c * inv)
    No in-kernel reshapes / transposes.
    """
    o_ref = refs[-1]
    b_ref = refs[-2]          # (1, Coutf*HWf) final-conv bias (kept: no norm)
    mf_ref = refs[-3]         # (Cin*HW, Coutf*HWf) final 1x1-conv operator

    y = x_ref[...].astype(jnp.float32)                       # (N, C0*H0*W0)

    for l in range(n_blocks):
        m_ref = refs[3 * l]          # (K, D)  folded conv (+mean-sub), bf16/f32
        p_ref = refs[3 * l + 1]      # (D, C)  per-channel spatial average, f32
        bb_ref = refs[3 * l + 2]     # (C, D)  per-channel broadcast, f32

        # Conv + mean-subtraction as one MXU matmul; f32 accumulation.
        c = jnp.dot(y.astype(m_ref.dtype), m_ref[...],
                    preferred_element_type=jnp.float32)       # (N, D) centered

        # InstanceNorm2d (affine=False) variance: E[c^2] per (sample, channel).
        var_c = jnp.dot(c * c, p_ref[...],
                        preferred_element_type=jnp.float32)   # (N, C)
        inv_c = jax.lax.rsqrt(var_c + eps)                    # EUP, (N, C)
        inv = jnp.dot(inv_c, bb_ref[...],
                      preferred_element_type=jnp.float32)     # (N, D)
        hn = c * inv

        # LeakyReLU(0.2)
        y = jnp.where(hn > 0, hn, negative_slope * hn)

    # Final 1x1 conv (no norm / no activation) — bias kept here.
    out = jnp.dot(y.astype(mf_ref.dtype), mf_ref[...],
                  preferred_element_type=jnp.float32) + b_ref[...]
    o_ref[...] = out.astype(o_ref.dtype)


# -----------------------------------------------------------------------------
# One-time weight folding (numpy f64; standard conv/norm folding)
# -----------------------------------------------------------------------------
def _reflect_idx(i, n):
    if i < 0:
        return -i
    if i >= n:
        return 2 * n - 2 - i
    return i


def _conv_block_operator(w4, hin, win):
    """Fold reflect-pad(1) + 4x4 stride-2 conv into a dense operator (f64).

    Returns M with shape (Cin*Hin*Win, Cout*Hout*Wout) such that, for NCHW-
    flattened activations x (N, Cin*Hin*Win), `x @ M` is the NCHW-flattened
    conv output (bias omitted; it cancels under the following InstanceNorm).
    """
    w = np.asarray(w4, dtype=np.float64)                  # (4, 4, Cin, Cout)
    cin, cout = w.shape[2], w.shape[3]
    hout, wout = hin // 2, win // 2
    m = np.zeros((cin, hin * win, cout, hout * wout), dtype=np.float64)
    for ho in range(hout):
        for wo in range(wout):
            p = ho * wout + wo
            for kh in range(4):
                for kw in range(4):
                    hi = _reflect_idx(2 * ho + kh - 1, hin)
                    wi = _reflect_idx(2 * wo + kw - 1, win)
                    q = hi * win + wi
                    m[:, q, :, p] += w[kh, kw, :, :]
    return m.reshape(cin * hin * win, cout * hout * wout)


def _final_conv_operator(wf, hw):
    """1x1 conv as a dense operator: (Cin*HW, Coutf*HW)."""
    w = np.asarray(wf, dtype=np.float32)                  # (Cin, Coutf)
    cin, coutf = w.shape
    m = np.zeros((cin, hw, coutf, hw), dtype=np.float32)
    for p in range(hw):
        m[:, p, :, p] = w
    return m.reshape(cin * hw, coutf * hw)


def prepare_operator_params(params, height, width, matmul_dtype=jnp.bfloat16):
    """Fold conv weights (+ reflect padding + striding + IN mean-subtraction)
    into dense per-layer operators over NCHW-flattened activations.

    Folding M' = M @ (I - A) is done in f64 BEFORE any dtype cast, so the
    conv-bias / mean cancellation stays exact.  Conv operators are stored in
    `matmul_dtype` (bf16 by default: native MXU on v5e/v6e/v7x; accumulation
    stays f32 in-kernel).  Norm matrices (P, B) stay f32.
    """
    layers = []
    total_bytes = 0
    itemsize = jnp.dtype(matmul_dtype).itemsize
    h, w = height, width
    for (w4, _b) in params["blocks"]:        # bias dropped: cancels under IN
        cout = int(w4.shape[3])
        m = _conv_block_operator(w4, h, w)                     # (K, D), f64
        h, w = h // 2, w // 2
        hw = h * w
        d = cout * hw
        # Fold the InstanceNorm mean subtraction: M' = M @ (I - A),
        # A = kron(I_C, ones(hw,hw)/hw).  Done in f64, then cast.
        a = np.kron(np.eye(cout), np.full((hw, hw), 1.0 / hw))
        m_centered = (m @ (np.eye(d) - a)).astype(np.float32)
        m_j = jnp.asarray(m_centered).astype(matmul_dtype)
        # Skinny per-channel averaging (D, C) and broadcast (C, D) matrices.
        p_mat = np.kron(np.eye(cout, dtype=np.float32),
                        np.full((hw, 1), 1.0 / hw, dtype=np.float32))
        b_mat = np.kron(np.eye(cout, dtype=np.float32),
                        np.ones((1, hw), dtype=np.float32))
        layers.append((m_j, jnp.asarray(p_mat), jnp.asarray(b_mat)))
        total_bytes += m_centered.size * itemsize + (p_mat.size + b_mat.size) * 4

    wf, bf = params["final"]                 # (Cin, Coutf), (Coutf,)
    hw = h * w
    mf_np = _final_conv_operator(wf, hw)
    mf = jnp.asarray(mf_np).astype(matmul_dtype)
    bflat = jnp.asarray(
        np.repeat(np.asarray(bf, dtype=np.float32), hw)[None, :])  # (1, Coutf*HW)
    total_bytes += mf_np.size * itemsize + bflat.size * 4

    # Generation guard: the dense folding grows quadratically with H*W and
    # hits v7x's 64 MiB VMEM first (v5e/v6e have 128 MiB).
    assert total_bytes < _VMEM_BUDGET_BYTES, (
        f"folded operators ({total_bytes/2**20:.1f} MiB) exceed the dense-fold "
        f"VMEM budget; tile the spatial axis instead of dense folding")
    return {"layers": layers, "final": (mf, bflat), "op_bytes": total_bytes}


# -----------------------------------------------------------------------------
# Public forward: one pallas_call for the whole network and whole batch
# -----------------------------------------------------------------------------
def discriminator_forward(x_nchw, ops):
    n, _c, h, w = x_nchw.shape
    n_blocks = len(ops["layers"])
    h_out, w_out = h // (2 ** n_blocks), w // (2 ** n_blocks)
    mf, bflat = ops["final"]
    d_out = bflat.shape[1]
    cout_f = d_out // (h_out * w_out)

    flat_layer_args = [a for trip in ops["layers"] for a in trip]
    kernel = functools.partial(
        _fused_discriminator_kernel,
        n_blocks=n_blocks, eps=_IN_EPS, negative_slope=_LRELU_SLOPE)

    # NCHW flatten == (channel-major, spatial-minor): exactly the layout the
    # folded operators expect — no transpose / im2col glue.
    x_flat = x_nchw.reshape(n, -1).astype(jnp.float32)

    # Cost estimate (flops / bytes) — lets XLA schedule the weight HBM reads
    # early when this kernel sits inside a larger jit (e.g. a GAN train step).
    flops = 0
    transcendentals = 0
    bytes_accessed = x_flat.size * 4 + n * d_out * 4
    for (m, p_mat, b_mat) in ops["layers"]:
        k_dim, d_dim = m.shape
        c_dim = p_mat.shape[1]
        flops += 2 * n * (k_dim * d_dim + 2 * d_dim * c_dim)
        transcendentals += n * c_dim
        bytes_accessed += (m.size * jnp.dtype(m.dtype).itemsize
                           + (p_mat.size + b_mat.size) * 4)
    flops += 2 * n * mf.shape[0] * mf.shape[1]
    bytes_accessed += mf.size * jnp.dtype(mf.dtype).itemsize + bflat.size * 4

    # Explicit VMEM limit: v5e's scoped default is 16 MiB; give headroom but
    # stay under v7x's 64 MiB physical.
    vmem_limit = int(min(max(4 * bytes_accessed, 16 * 2 ** 20), 60 * 2 ** 20))

    n_inputs = 1 + len(flat_layer_args) + 2
    vmem_spec = pl.BlockSpec(memory_space=pltpu.MemorySpace.VMEM)
    y = pl.pallas_call(
        kernel,
        out_shape=jax.ShapeDtypeStruct((n, d_out), jnp.float32),
        in_specs=[vmem_spec] * n_inputs,
        out_specs=vmem_spec,
        cost_estimate=pl.CostEstimate(
            flops=int(flops), transcendentals=int(transcendentals),
            bytes_accessed=int(bytes_accessed)),
        compiler_params=pltpu.CompilerParams(vmem_limit_bytes=vmem_limit),
    )(x_flat, *flat_layer_args, mf, bflat)

    return y.reshape(n, cout_f, h_out, w_out)                # NCHW


# -----------------------------------------------------------------------------
# Deterministic parameter init (synthetic; not a checkpoint load)
# -----------------------------------------------------------------------------
def init_params(key, input_channels, dis_filters, dis_n_layer):
    params = {"blocks": [], "final": None}
    cin = input_channels
    cout = dis_filters
    for _ in range(dis_n_layer + 1):      # first block + dis_n_layer blocks
        key, kw, kb = jax.random.split(key, 3)
        fan_in = cin * 16
        w4 = jax.random.normal(kw, (4, 4, cin, cout), jnp.float32) / jnp.sqrt(fan_in)
        b = jax.random.normal(kb, (cout,), jnp.float32) * 0.01
        params["blocks"].append((w4, b))
        cin, cout = cout, cout * 2
    key, kw, kb = jax.random.split(key, 3)
    wf = jax.random.normal(kw, (cin, 1), jnp.float32) / jnp.sqrt(cin)
    bf = jax.random.normal(kb, (1,), jnp.float32) * 0.01
    params["final"] = (wf, bf)
    return params


# -----------------------------------------------------------------------------
# Pure-JAX reference (lax.conv) for a correctness sanity check
# -----------------------------------------------------------------------------
def _reference_forward(x_nchw, params, negative_slope=0.2, eps=1e-5):
    x = jnp.transpose(x_nchw, (0, 2, 3, 1)).astype(jnp.float32)
    for (w4, b) in params["blocks"]:
        xp = jnp.pad(x, ((0, 0), (1, 1), (1, 1), (0, 0)), mode="reflect")
        y = jax.lax.conv_general_dilated(
            xp, w4, window_strides=(2, 2), padding="VALID",
            dimension_numbers=("NHWC", "HWIO", "NHWC")) + b
        mean = jnp.mean(y, axis=(1, 2), keepdims=True)
        var = jnp.mean((y - mean) ** 2, axis=(1, 2), keepdims=True)
        y = (y - mean) * jax.lax.rsqrt(var + eps)
        x = jnp.where(y > 0, y, negative_slope * y)
    wf, bf = params["final"]
    y = jnp.einsum("nhwc,co->nhwo", x, wf) + bf
    return jnp.transpose(y, (0, 3, 1, 2))


if __name__ == "__main__":
    input_channels, dis_filters, dis_n_layer = 4, 8, 2
    height = width = 16

    key = jax.random.PRNGKey(0)
    key, kx = jax.random.split(key)
    x = jax.random.normal(kx, (2, input_channels, height, width), jnp.float32)
    params = init_params(key, input_channels, dis_filters, dis_n_layer)

    fwd = jax.jit(discriminator_forward)
    ref = _reference_forward(x, params)

    # f32 operator path: tight correctness check against the lax.conv reference.
    ops_f32 = prepare_operator_params(params, height, width, jnp.float32)
    out = jax.block_until_ready(fwd(x, ops_f32))
    assert out.shape == (2, 1, 2, 2), out.shape
    assert jnp.allclose(out, ref, rtol=5e-4, atol=5e-4), (
        float(jnp.max(jnp.abs(out - ref))))

    # Default path: bf16-stored conv operators (native MXU everywhere; f32
    # accumulation / norm math).  Loose tolerance: reduced-precision operands.
    ops_bf16 = prepare_operator_params(params, height, width)   # bf16 default
    out_bf16 = jax.block_until_ready(fwd(x, ops_bf16))
    assert out_bf16.shape == (2, 1, 2, 2), out_bf16.shape
    assert bool(jnp.all(jnp.isfinite(out_bf16)))
    assert jnp.allclose(out_bf16, ref, rtol=0.25, atol=0.25), (
        float(jnp.max(jnp.abs(out_bf16 - ref))))

    print("KERNEL_OK")
</pallas_src>

<mosaic_0001>
module attributes {stable_mosaic.version = 11 : i64} {
  func.func @_fused_discriminator_kernel(%arg0: memref<2x1024xf32, #tpu.memory_space<vmem>>, %arg1: memref<1024x512xf32, #tpu.memory_space<vmem>>, %arg2: memref<512x8xf32, #tpu.memory_space<vmem>>, %arg3: memref<8x512xf32, #tpu.memory_space<vmem>>, %arg4: memref<512x256xf32, #tpu.memory_space<vmem>>, %arg5: memref<256x16xf32, #tpu.memory_space<vmem>>, %arg6: memref<16x256xf32, #tpu.memory_space<vmem>>, %arg7: memref<256x128xf32, #tpu.memory_space<vmem>>, %arg8: memref<128x32xf32, #tpu.memory_space<vmem>>, %arg9: memref<32x128xf32, #tpu.memory_space<vmem>>, %arg10: memref<128x4xf32, #tpu.memory_space<vmem>>, %arg11: memref<1x4xf32, #tpu.memory_space<vmem>>, %arg12: memref<2x4xf32, #tpu.memory_space<vmem>>) attributes {dimension_semantics = [], scalar_prefetch = 0 : i64, scratch_operands = 0 : i64, tpu.core_type = #tpu.core_type<tc>} {
    %c0 = arith.constant 0 : index
    %c0_0 = arith.constant 0 : index
    %0 = vector.load %arg0[%c0, %c0_0] : memref<2x1024xf32, #tpu.memory_space<vmem>>, vector<2x1024xf32>
    %c0_1 = arith.constant 0 : index
    %c0_2 = arith.constant 0 : index
    %1 = vector.load %arg1[%c0_1, %c0_2] : memref<1024x512xf32, #tpu.memory_space<vmem>>, vector<1024x512xf32>
    %cst = arith.constant dense<0.000000e+00> : vector<2x512xf32>
    %2 = tpu.matmul %0, %1, %cst {dimension_numbers = #tpu.dot_dimension_numbers<[1], [0], [0], [1], [0, 0, 1, 1], [], []>} : vector<2x1024xf32>, vector<1024x512xf32>, vector<2x512xf32> -> vector<2x512xf32>
    %3 = arith.mulf %2, %2 : vector<2x512xf32>
    %c0_3 = arith.constant 0 : index
    %c0_4 = arith.constant 0 : index
    %4 = vector.load %arg2[%c0_3, %c0_4] : memref<512x8xf32, #tpu.memory_space<vmem>>, vector<512x8xf32>
    %cst_5 = arith.constant dense<0.000000e+00> : vector<2x8xf32>
    %5 = tpu.matmul %3, %4, %cst_5 {dimension_numbers = #tpu.dot_dimension_numbers<[1], [0], [0], [1], [0, 0, 1, 1], [], []>} : vector<2x512xf32>, vector<512x8xf32>, vector<2x8xf32> -> vector<2x8xf32>
    %cst_6 = arith.constant 9.99999974E-6 : f32
    %6 = vector.broadcast %cst_6 : f32 to vector<2x8xf32>
    %7 = arith.addf %5, %6 : vector<2x8xf32>
    %8 = math.rsqrt %7 : vector<2x8xf32>
    %c0_7 = arith.constant 0 : index
    %c0_8 = arith.constant 0 : index
    %9 = vector.load %arg3[%c0_7, %c0_8] : memref<8x512xf32, #tpu.memory_space<vmem>>, vector<8x512xf32>
    %cst_9 = arith.constant dense<0.000000e+00> : vector<2x512xf32>
    %10 = tpu.matmul %8, %9, %cst_9 {dimension_numbers = #tpu.dot_dimension_numbers<[1], [0], [0], [1], [0, 0, 1, 1], [], []>} : vector<2x8xf32>, vector<8x512xf32>, vector<2x512xf32> -> vector<2x512xf32>
    %11 = arith.mulf %2, %10 : vector<2x512xf32>
    %cst_10 = arith.constant 0.000000e+00 : f32
    %12 = vector.broadcast %cst_10 : f32 to vector<2x512xf32>
    %13 = arith.cmpf ogt, %11, %12 : vector<2x512xf32>
    %cst_11 = arith.constant 2.000000e-01 : f32
    %14 = vector.broadcast %cst_11 : f32 to vector<2x512xf32>
    %15 = arith.mulf %14, %11 : vector<2x512xf32>
    %16 = arith.select %13, %11, %15 : vector<2x512xi1>, vector<2x512xf32>
    %c0_12 = arith.constant 0 : index
    %c0_13 = arith.constant 0 : index
    %17 = vector.load %arg4[%c0_12, %c0_13] : memref<512x256xf32, #tpu.memory_space<vmem>>, vector<512x256xf32>
    %cst_14 = arith.constant dense<0.000000e+00> : vector<2x256xf32>
    %18 = tpu.matmul %16, %17, %cst_14 {dimension_numbers = #tpu.dot_dimension_numbers<[1], [0], [0], [1], [0, 0, 1, 1], [], []>} : vector<2x512xf32>, vector<512x256xf32>, vector<2x256xf32> -> vector<2x256xf32>
    %19 = arith.mulf %18, %18 : vector<2x256xf32>
    %c0_15 = arith.constant 0 : index
    %c0_16 = arith.constant 0 : index
    %20 = vector.load %arg5[%c0_15, %c0_16] : memref<256x16xf32, #tpu.memory_space<vmem>>, vector<256x16xf32>
    %cst_17 = arith.constant dense<0.000000e+00> : vector<2x16xf32>
    %21 = tpu.matmul %19, %20, %cst_17 {dimension_numbers = #tpu.dot_dimension_numbers<[1], [0], [0], [1], [0, 0, 1, 1], [], []>} : vector<2x256xf32>, vector<256x16xf32>, vector<2x16xf32> -> vector<2x16xf32>
    %cst_18 = arith.constant 9.99999974E-6 : f32
    %22 = vector.broadcast %cst_18 : f32 to vector<2x16xf32>
    %23 = arith.addf %21, %22 : vector<2x16xf32>
    %24 = math.rsqrt %23 : vector<2x16xf32>
    %c0_19 = arith.constant 0 : index
    %c0_20 = arith.constant 0 : index
    %25 = vector.load %arg6[%c0_19, %c0_20] : memref<16x256xf32, #tpu.memory_space<vmem>>, vector<16x256xf32>
    %cst_21 = arith.constant dense<0.000000e+00> : vector<2x256xf32>
    %26 = tpu.matmul %24, %25, %cst_21 {dimension_numbers = #tpu.dot_dimension_numbers<[1], [0], [0], [1], [0, 0, 1, 1], [], []>} : vector<2x16xf32>, vector<16x256xf32>, vector<2x256xf32> -> vector<2x256xf32>
    %27 = arith.mulf %18, %26 : vector<2x256xf32>
    %cst_22 = arith.constant 0.000000e+00 : f32
    %28 = vector.broadcast %cst_22 : f32 to vector<2x256xf32>
    %29 = arith.cmpf ogt, %27, %28 : vector<2x256xf32>
    %cst_23 = arith.constant 2.000000e-01 : f32
    %30 = vector.broadcast %cst_23 : f32 to vector<2x256xf32>
    %31 = arith.mulf %30, %27 : vector<2x256xf32>
    %32 = arith.select %29, %27, %31 : vector<2x256xi1>, vector<2x256xf32>
    %c0_24 = arith.constant 0 : index
    %c0_25 = arith.constant 0 : index
    %33 = vector.load %arg7[%c0_24, %c0_25] : memref<256x128xf32, #tpu.memory_space<vmem>>, vector<256x128xf32>
    %cst_26 = arith.constant dense<0.000000e+00> : vector<2x128xf32>
    %34 = tpu.matmul %32, %33, %cst_26 {dimension_numbers = #tpu.dot_dimension_numbers<[1], [0], [0], [1], [0, 0, 1, 1], [], []>} : vector<2x256xf32>, vector<256x128xf32>, vector<2x128xf32> -> vector<2x128xf32>
    %35 = arith.mulf %34, %34 : vector<2x128xf32>
    %c0_27 = arith.constant 0 : index
    %c0_28 = arith.constant 0 : index
    %36 = vector.load %arg8[%c0_27, %c0_28] : memref<128x32xf32, #tpu.memory_space<vmem>>, vector<128x32xf32>
    %cst_29 = arith.constant dense<0.000000e+00> : vector<2x32xf32>
    %37 = tpu.matmul %35, %36, %cst_29 {dimension_numbers = #tpu.dot_dimension_numbers<[1], [0], [0], [1], [0, 0, 1, 1], [], []>} : vector<2x128xf32>, vector<128x32xf32>, vector<2x32xf32> -> vector<2x32xf32>
    %cst_30 = arith.constant 9.99999974E-6 : f32
    %38 = vector.broadcast %cst_30 : f32 to vector<2x32xf32>
    %39 = arith.addf %37, %38 : vector<2x32xf32>
    %40 = math.rsqrt %39 : vector<2x32xf32>
    %c0_31 = arith.constant 0 : index
    %c0_32 = arith.constant 0 : index
    %41 = vector.load %arg9[%c0_31, %c0_32] : memref<32x128xf32, #tpu.memory_space<vmem>>, vector<32x128xf32>
    %cst_33 = arith.constant dense<0.000000e+00> : vector<2x128xf32>
    %42 = tpu.matmul %40, %41, %cst_33 {dimension_numbers = #tpu.dot_dimension_numbers<[1], [0], [0], [1], [0, 0, 1, 1], [], []>} : vector<2x32xf32>, vector<32x128xf32>, vector<2x128xf32> -> vector<2x128xf32>
    %43 = arith.mulf %34, %42 : vector<2x128xf32>
    %cst_34 = arith.constant 0.000000e+00 : f32
    %44 = vector.broadcast %cst_34 : f32 to vector<2x128xf32>
    %45 = arith.cmpf ogt, %43, %44 : vector<2x128xf32>
    %cst_35 = arith.constant 2.000000e-01 : f32
    %46 = vector.broadcast %cst_35 : f32 to vector<2x128xf32>
    %47 = arith.mulf %46, %43 : vector<2x128xf32>
    %48 = arith.select %45, %43, %47 : vector<2x128xi1>, vector<2x128xf32>
    %c0_36 = arith.constant 0 : index
    %c0_37 = arith.constant 0 : index
    %49 = vector.load %arg10[%c0_36, %c0_37] : memref<128x4xf32, #tpu.memory_space<vmem>>, vector<128x4xf32>
    %cst_38 = arith.constant dense<0.000000e+00> : vector<2x4xf32>
    %50 = tpu.matmul %48, %49, %cst_38 {dimension_numbers = #tpu.dot_dimension_numbers<[1], [0], [0], [1], [0, 0, 1, 1], [], []>} : vector<2x128xf32>, vector<128x4xf32>, vector<2x4xf32> -> vector<2x4xf32>
    %c0_39 = arith.constant 0 : index
    %c0_40 = arith.constant 0 : index
    %51 = vector.load %arg11[%c0_39, %c0_40] : memref<1x4xf32, #tpu.memory_space<vmem>>, vector<1x4xf32>
    %52 = vector.broadcast %51 : vector<1x4xf32> to vector<2x4xf32>
    %53 = arith.addf %50, %52 : vector<2x4xf32>
    %c0_41 = arith.constant 0 : index
    %c0_42 = arith.constant 0 : index
    %54 = vector.load %arg12[%c0_41, %c0_42] : memref<2x4xf32, #tpu.memory_space<vmem>>, vector<2x4xf32>
    tpu.vector_store %arg12[%c0_41, %c0_42], %53 {strides = array<i32>} : memref<2x4xf32, #tpu.memory_space<vmem>>, vector<2x4xf32>,
    return
  }
}

</mosaic_0001>

<bundles_post_ra>
// kernel: discriminator_forward.1
= control target key start
LH: loop header
LB: loop body
LE: loop exit
PB: predicated region body
PF: predicated region fallthrough
CT: control target
= control target key end

     0   :  { %17 = vsyncpa [#allocation3], 0  ;;  %s4451_s0 = inlined_call_operand.vmem [shape: f32[2,1024], index: 0, kind: input, shape index: {}]   ;;  %s4452_s1 = inlined_call_operand.hbm [shape: f32[1024,512], index: 1, kind: input, shape index: {}]   ;;  %s4453_s2 = inlined_call_operand.vmem [shape: f32[512,8], index: 2, kind: input, shape index: {}]   ;;  %s4454_s3 = inlined_call_operand.hbm [shape: f32[8,512], index: 3, kind: input, shape index: {}]   ;;  %s4455_s4 = inlined_call_operand.hbm [shape: f32[512,256], index: 4, kind: input, shape index: {}]   ;;  %s4456_s5 = inlined_call_operand.vmem [shape: f32[256,16], index: 5, kind: input, shape index: {}]   ;;  %s4457_s6 = inlined_call_operand.hbm [shape: f32[16,256], index: 6, kind: input, shape index: {}]   ;;  %s4458_s7 = inlined_call_operand.hbm [shape: f32[256,128], index: 7, kind: input, shape index: {}]   ;;  %s4459_s8 = inlined_call_operand.vmem [shape: f32[128,32], index: 8, kind: input, shape index: {}]   ;;  %s4460_s9 = inlined_call_operand.hbm [shape: f32[32,128], index: 9, kind: input, shape index: {}]   ;;  %s4461_s10 = inlined_call_operand.vmem [shape: f32[128,4], index: 10, kind: input, shape index: {}]   ;;  %s4462_s11 = inlined_call_operand.hbm [shape: f32[1,4], index: 11, kind: input, shape index: {}]   ;;  %s4463_s12 = inlined_call_operand.vmem [shape: f32[2,4], index: 12, kind: output, shape index: {}]  }
   0x1   :  { %18 = vsyncpa [#allocation5], 0 }
   0x2   :  { %19 = vsyncpa [#allocation8], 0 }
   0x3   :  { %20 = vsyncpa [#allocation11], 0  ;;  %s3762_s21 = smov [#allocation4]   ;;  %s3600_s25 = scalar_lea.hbm %s4454_s3, 512 }
   0x4   :  { %s43_s22 = sshll.u32 %s3762_s21, 4  ;;  %p3601_p0 = scmp.ne.s32.totalorder %s4454_s3, %s3600_s25  ;;  %s44_s22 = int_to_ptr.vmem [resolvable:$true] %s43_s22 }
   0x5   :  { %p3604_p1 = scmp.lt.u32.totalorder %s3600_s25, %s4454_s3 }
   0x7   :  { %p3606_p2 = pnand %p3604_p1, %p3601_p0 }
   0x9   :  { %3609 = shalt.err (!%p3606_p2)
}
   0xa   :  { %s3610_s30 = scalar_lea.vmem %s44_s22, 512  ;;  %p3615_p4 = scmp.lt.s32.totalorder %s44_s22, %s44_s22 }
   0xb   :  { %p3611_p3 = scmp.ne.s32.totalorder %s44_s22, %s3610_s30  ;;  %p3616_p5 = scmp.lt.s32.totalorder %s3610_s30, %s3610_s30 }
   0xd   :  { %p3617_p6 = por %p3616_p5, %p3615_p4 }
   0xf   :  { %p3618_p7 = pnand %p3617_p6, %p3611_p3 }
  0x11   :  { %3621 = shalt.err (!%p3618_p7)
}
  0x12   :  { %46 = dma.hbm_to_vmem [thread:$0]  %s4454_s3, 512, %s44_s22, [#allocation5]  }
  0x13   :  { %s3763_s15 = smov [#allocation7]   ;;  %s3622_s19 = scalar_lea.hbm %s4457_s6, 512 }
  0x14   :  { %s66_s16 = sshll.u32 %s3763_s15, 4  ;;  %p3623_p8 = scmp.ne.s32.totalorder %s4457_s6, %s3622_s19  ;;  %s67_s16 = int_to_ptr.vmem [resolvable:$true] %s66_s16 }
  0x15   :  { %p3626_p9 = scmp.lt.u32.totalorder %s3622_s19, %s4457_s6 }
  0x17   :  { %p3628_p10 = pnand %p3626_p9, %p3623_p8 }
  0x19   :  { %3631 = shalt.err (!%p3628_p10)
}
  0x1a   :  { %s3632_s25 = scalar_lea.vmem %s67_s16, 512  ;;  %p3637_p12 = scmp.lt.s32.totalorder %s67_s16, %s67_s16 }
  0x1b   :  { %p3633_p11 = scmp.ne.s32.totalorder %s67_s16, %s3632_s25  ;;  %p3638_p13 = scmp.lt.s32.totalorder %s3632_s25, %s3632_s25 }
  0x1d   :  { %p3639_p0 = por %p3638_p13, %p3637_p12 }
  0x1f   :  { %p3640_p1 = pnand %p3639_p0, %p3633_p11 }
  0x21   :  { %3643 = shalt.err (!%p3640_p1)
}
  0x22   :  { %s3764_s3 = smov 256   ;;  %s3765_s22 = smov 16  }
  0x23   :  { %72 = dma.hbm_to_vmem [thread:$0]  %s4457_s6, 512, %s67_s16, [#allocation8], %s3764_s3, %s3764_s3, %s3765_s22  }
  0x24   :  { %s3766_s28 = smov [#allocation10]   ;;  %s3767_s30 = smov [#allocation2]  }
  0x25   :  { %s92_s29 = sshll.u32 %s3766_s28, 4  ;;  %s28_s13 = sshll.u32 %s3767_s30, 4  ;;  %s93_s29 = int_to_ptr.vmem [resolvable:$true] %s92_s29  ;;  %s3871_s13 = int_to_ptr.vmem [resolvable:$true] %s28_s13 }
  0x26   :  { %s3644_s17 = scalar_lea.hbm %s4460_s9, 512 }
  0x27   :  { %p3645_p2 = scmp.ne.s32.totalorder %s4460_s9, %s3644_s17  ;;  %p3648_p3 = scmp.lt.u32.totalorder %s3644_s17, %s4460_s9 }
  0x29   :  { %p3650_p4 = pnand %p3648_p3, %p3645_p2 }
  0x2b   :  { %3653 = shalt.err (!%p3650_p4)
}
  0x2c   :  { %s3654_s6 = scalar_lea.vmem %s93_s29, 512  ;;  %p3659_p6 = scmp.lt.s32.totalorder %s93_s29, %s93_s29 }
  0x2d   :  { %p3655_p5 = scmp.ne.s32.totalorder %s93_s29, %s3654_s6  ;;  %p3660_p7 = scmp.lt.s32.totalorder %s3654_s6, %s3654_s6 }
  0x2f   :  { %p3661_p8 = por %p3660_p7, %p3659_p6 }
  0x31   :  { %p3662_p9 = pnand %p3661_p8, %p3655_p5 }
  0x33   :  { %3665 = shalt.err (!%p3662_p9)
}
  0x34   :  { %s3768_s16 = smov 128   ;;  %s3769_s23 = smov 8  }
  0x35   :  { %98 = dma.hbm_to_vmem [thread:$0]  %s4460_s9, 512, %s93_s29, [#allocation11], %s3768_s16, %s3768_s16, %s3769_s23  }
  0x36   :  { %s3666_s28 = scalar_lea.hbm %s4452_s1, 65536 }
  0x37   :  { %p3667_p10 = scmp.ne.s32.totalorder %s4452_s1, %s3666_s28  ;;  %p3670_p11 = scmp.lt.u32.totalorder %s3666_s28, %s4452_s1 }
  0x39   :  { %p3672_p12 = pnand %p3670_p11, %p3667_p10 }
  0x3b   :  { %3675 = shalt.err (!%p3672_p12)
}
  0x3c   :  { %s3676_s18 = scalar_lea.vmem %s3871_s13, 65536  ;;  %p3681_p0 = scmp.lt.s32.totalorder %s3871_s13, %s3871_s13 }
  0x3d   :  { %p3677_p13 = scmp.ne.s32.totalorder %s3871_s13, %s3676_s18  ;;  %p3682_p1 = scmp.lt.s32.totalorder %s3676_s18, %s3676_s18 }
  0x3f   :  { %p3683_p2 = por %p3682_p1, %p3681_p0 }
  0x41   :  { %p3684_p3 = pnand %p3683_p2, %p3677_p13 }
  0x43   :  { %3687 = shalt.err (!%p3684_p3)
}
  0x44   :  { %s3770_s9 = smov 512   ;;  %s3771_s29 = smov 32  }
  0x45   :  { %34 = dma.hbm_to_vmem [thread:$0]  %s4452_s1, 65536, %s3871_s13, [#allocation3], %s3770_s9, %s3770_s9, %s3771_s29  }
  0x46   :  { %s3772_s21 = smov [#allocation6]   ;;  %s3773_s24 = smov [#allocation9]  }
  0x47   :  { %s52_s6 = sshll.u32 %s3772_s21, 4  ;;  %s78_s25 = sshll.u32 %s3773_s24, 4  ;;  %s53_s6 = int_to_ptr.vmem [resolvable:$true] %s52_s6  ;;  %s3905_s25 = int_to_ptr.vmem [resolvable:$true] %s78_s25 }
  0x48   :  { %s3688_s28 = scalar_lea.hbm %s4455_s4, 16384 }
  0x49   :  { %p3689_p4 = scmp.ne.s32.totalorder %s4455_s4, %s3688_s28  ;;  %p3692_p5 = scmp.lt.u32.totalorder %s3688_s28, %s4455_s4 }
  0x4b   :  { %p3694_p6 = pnand %p3692_p5, %p3689_p4 }
  0x4d   :  { %3697 = shalt.err (!%p3694_p6)
}
  0x4e   :  { %s3698_s1 = scalar_lea.vmem %s53_s6, 16384  ;;  %p3703_p8 = scmp.lt.s32.totalorder %s53_s6, %s53_s6 }
  0x4f   :  { %p3699_p7 = scmp.ne.s32.totalorder %s53_s6, %s3698_s1  ;;  %p3704_p9 = scmp.lt.s32.totalorder %s3698_s1, %s3698_s1 }
  0x51   :  { %p3705_p10 = por %p3704_p9, %p3703_p8 }
  0x53   :  { %p3706_p11 = pnand %p3705_p10, %p3699_p7 }
  0x55   :  { %3709 = shalt.err (!%p3706_p11)
}
  0x56   :  { %58 = dma.hbm_to_vmem [thread:$0]  %s4455_s4, 16384, %s53_s6, [#allocation5], %s3764_s3, %s3764_s3, %s3765_s22  }
  0x57   :  { %s3710_s19 = scalar_lea.hbm %s4458_s7, 4096 }
  0x58   :  { %p3711_p12 = scmp.ne.s32.totalorder %s4458_s7, %s3710_s19  ;;  %p3714_p13 = scmp.lt.u32.totalorder %s3710_s19, %s4458_s7 }
  0x5a   :  { %p3716_p0 = pnand %p3714_p13, %p3711_p12 }
  0x5c   :  { %3719 = shalt.err (!%p3716_p0)
}
  0x5d   :  { %s3720_s27 = scalar_lea.vmem %s3905_s25, 4096  ;;  %p3725_p2 = scmp.lt.s32.totalorder %s3905_s25, %s3905_s25 }
  0x5e   :  { %p3721_p1 = scmp.ne.s32.totalorder %s3905_s25, %s3720_s27  ;;  %p3726_p3 = scmp.lt.s32.totalorder %s3720_s27, %s3720_s27 }
  0x60   :  { %p3727_p4 = por %p3726_p3, %p3725_p2 }
  0x62   :  { %p3728_p5 = pnand %p3727_p4, %p3721_p1 }
  0x64   :  { %3731 = shalt.err (!%p3728_p5)
}
  0x65   :  { %84 = dma.hbm_to_vmem [thread:$0]  %s4458_s7, 4096, %s3905_s25, [#allocation8], %s3768_s16, %s3768_s16, %s3769_s23  }
  0x66   :  { %s3774_s22 = smov [#allocation12]   ;;  %s3732_s14 = scalar_lea.hbm %s4462_s11, 16 }
  0x67   :  { %s107_s6 = sshll.u32 %s3774_s22, 4  ;;  %p3733_p6 = scmp.ne.s32.totalorder %s4462_s11, %s3732_s14  ;;  %s108_s6 = int_to_ptr.vmem [resolvable:$true] %s107_s6 }
  0x68   :  { %p3736_p7 = scmp.lt.u32.totalorder %s3732_s14, %s4462_s11 }
  0x6a   :  { %p3738_p8 = pnand %p3736_p7, %p3733_p6 }
  0x6c   :  { %3741 = shalt.err (!%p3738_p8)
}
  0x6d   :  { %s3742_s18 = scalar_lea.vmem %s108_s6, 16  ;;  %s3746_s7 = scalar_lea.vmem %s108_s6, 32 }
  0x6e   :  { %p3743_p9 = scmp.ne.s32.totalorder %s108_s6, %s3742_s18  ;;  %p3747_p10 = scmp.lt.s32.totalorder %s108_s6, %s108_s6 }
  0x6f   :  { %p3748_p11 = scmp.lt.s32.totalorder %s3746_s7, %s3742_s18 }
  0x71   :  { %p3749_p12 = por %p3748_p11, %p3747_p10 }
  0x73   :  { %p3750_p13 = pnand %p3749_p12, %p3743_p9 }
  0x75   :  { %3753 = shalt.err (!%p3750_p13)
}
  0x76   :  { %110 = dma.hbm_to_vmem [thread:$0]  %s4462_s11, 16, %s108_s6, [#allocation11]  }
  0x77   :  { %3754 = dma.done.wait [#allocation3], 65536  }
  0x78   :  { %3755 = vsyncadd [#allocation3], 4294901760 }
  0x79   :  { %3756 = dma.done.wait [#allocation5], 16896  }
  0x7a   :  { %3757 = vsyncadd [#allocation5], 4294950400 }
  0x7b   :  { %3758 = dma.done.wait [#allocation8], 4608  }
  0x7c   :  { %3759 = vsyncadd [#allocation8], 4294962688 }
  0x7d   :  { %3760 = dma.done.wait [#allocation11], 528  }
  0x7e   :  { %3761 = vsyncadd [#allocation11], 4294966768  ;;  %v135_v0 = vld [vmem:[#allocation2 + $0x8] sm:$0xff]  ;;  %v137_v2 = vld [vmem:[#allocation2 + $0x18] sm:$0xff]  ;;  %vm1471_vm0 = vcmask 64512   ;;  %vm2012_vm5 = vcmask 130048  }
  0x7f   :  { %v139_v1 = vld [vmem:[#allocation2 + $0x28] sm:$0xff]  ;;  %v141_v4 = vld [vmem:[#allocation2 + $0x38] sm:$0xff]  ;;  %v134_v5 = vld [vmem:[#allocation2] sm:$0xff]  ;;  %vm3778_vm8 = vmmov 0   ;;  %vm2289_vm9 = vcmask 261120   ;;  %vm2460_vm11 = vcmask 25600  }
  0x80   :  { %v2735_v3 = vpack.c.bf16 %v139_v1, %v135_v0  ;;  %v138_v6 = vld [vmem:[#allocation2 + $0x20] sm:$0xff]  ;;  %v2991_v7 = vpack.c.bf16 %v141_v4, %v137_v2  ;;  %v136_v9 = vld [vmem:[#allocation2 + $0x10] sm:$0xff]  ;;  %v143_v11 = vld [vmem:[#allocation2 + $0x48] sm:$0xff] }
  0x81   :  { %v2737_v8 = vpack.c.bf16 %v138_v6, %v134_v5  ;;  %v140_v10 = vld [vmem:[#allocation2 + $0x30] sm:$0xff]  ;;  %v147_v13 = vld [vmem:[#allocation2 + $0x68] sm:$0xff]  ;;  %v145_v14 = vld [vmem:[#allocation2 + $0x58] sm:$0xff] }
  0x82   :  { %2736 = vmatprep.subr.bf16.mxu0 %v2735_v3  ;;  %v2993_v12 = vpack.c.bf16 %v140_v10, %v136_v9  ;;  %v149_v15 = vld [vmem:[#allocation2 + $0x78] sm:$0xff]  ;;  %2992 = vmatprep.subr.bf16.mxu1 %v2991_v7  ;;  %v2739_v16 = vpack.c.bf16 %v147_v13, %v143_v11  ;;  %v142_v18 = vld [vmem:[#allocation2 + $0x40] sm:$0xff]  ;;  %v144_v20 = vld [vmem:[#allocation2 + $0x50] sm:$0xff] }
  0x83   :  { %2738 = vmatpush1.bf16.msra.mxu0 %v2737_v8  ;;  %v2995_v17 = vpack.c.bf16 %v149_v15, %v145_v14  ;;  %v146_v19 = vld [vmem:[#allocation2 + $0x60] sm:$0xff]  ;;  %v148_v22 = vld [vmem:[#allocation2 + $0x70] sm:$0xff]  ;;  %v151_v23 = vld [vmem:[#allocation2 + $0x88] sm:$0xff] }
  0x84   :  { %2994 = vmatpush1.bf16.msra.mxu1 %v2993_v12  ;;  %v2741_v21 = vpack.c.bf16 %v146_v19, %v142_v18  ;;  %v155_v24 = vld [vmem:[#allocation2 + $0xa8] sm:$0xff]  ;;  %2740 = vmatprep.subr.bf16.mxu0 %v2739_v16  ;;  %v2997_v25 = vpack.c.bf16 %v148_v22, %v144_v20  ;;  %v153_v27 = vld [vmem:[#allocation2 + $0x98] sm:$0xff]  ;;  %v150_v29 = vld [vmem:[#allocation2 + $0x80] sm:$0xff] }
  0x85   :  { %2996 = vmatprep.subr.bf16.mxu1 %v2995_v17  ;;  %v2743_v26 = vpack.c.bf16 %v155_v24, %v151_v23  ;;  %v157_v28 = vld [vmem:[#allocation2 + $0xb8] sm:$0xff]  ;;  %v154_v31 = vld [vmem:[#allocation2 + $0xa0] sm:$0xff]  ;;  %v152_v32 = vld [vmem:[#allocation2 + $0x90] sm:$0xff] }
  0x86   :  { %v2999_v30 = vpack.c.bf16 %v157_v28, %v153_v27  ;;  %v156_v33 = vld [vmem:[#allocation2 + $0xb0] sm:$0xff]  ;;  %v2745_v34 = vpack.c.bf16 %v154_v31, %v150_v29  ;;  %v159_v35 = vld [vmem:[#allocation2 + $0xc8] sm:$0xff]  ;;  %v161_v37 = vld [vmem:[#allocation2 + $0xd8] sm:$0xff] }
  0x87   :  { %2742 = vmatpush1.bf16.msra.mxu0 %v2741_v21  ;;  %v163_v36 = vld [vmem:[#allocation2 + $0xe8] sm:$0xff]  ;;  %v3001_v38 = vpack.c.bf16 %v156_v33, %v152_v32  ;;  %v165_v40 = vld [vmem:[#allocation2 + $0xf8] sm:$0xff]  ;;  %v158_v41 = vld [vmem:[#allocation2 + $0xc0] sm:$0xff] }
  0x88   :  { %2998 = vmatpush1.bf16.msra.mxu1 %v2997_v25  ;;  %2744 = vmatprep.subr.bf16.mxu0 %v2743_v26  ;;  %v2747_v39 = vpack.c.bf16 %v163_v36, %v159_v35  ;;  %v162_v42 = vld [vmem:[#allocation2 + $0xe0] sm:$0xff]  ;;  %v3003_v43 = vpack.c.bf16 %v165_v40, %v161_v37  ;;  %v160_v44 = vld [vmem:[#allocation2 + $0xd0] sm:$0xff]  ;;  %v167_v46 = vld [vmem:[#allocation2 + $0x108] sm:$0xff] }
  0x89   :  { %3000 = vmatprep.subr.bf16.mxu1 %v2999_v30  ;;  %v164_v45 = vld [vmem:[#allocation2 + $0xf0] sm:$0xff]  ;;  %v171_v47 = vld [vmem:[#allocation2 + $0x128] sm:$0xff]  ;;  %v169_v48 = vld [vmem:[#allocation2 + $0x118] sm:$0xff]  ;;  %v2749_v50 = vpack.c.bf16 %v162_v42, %v158_v41 }
  0x8a   :  { %v173_v49 = vld [vmem:[#allocation2 + $0x138] sm:$0xff]  ;;  %v3005_v51 = vpack.c.bf16 %v164_v45, %v160_v44  ;;  %v2751_v52 = vpack.c.bf16 %v171_v47, %v167_v46  ;;  %v166_v53 = vld [vmem:[#allocation2 + $0x100] sm:$0xff]  ;;  %v168_v55 = vld [vmem:[#allocation2 + $0x110] sm:$0xff]  ;;  %v3775_v46 = vmov 1983009808  }
  0x8b   :  { %2746 = vmatpush1.bf16.msra.mxu0 %v2745_v34  ;;  %v170_v54 = vld [vmem:[#allocation2 + $0x120] sm:$0xff]  ;;  %v3007_v56 = vpack.c.bf16 %v173_v49, %v169_v48  ;;  %v172_v57 = vld [vmem:[#allocation2 + $0x130] sm:$0xff]  ;;  %v175_v58 = vld [vmem:[#allocation2 + $0x148] sm:$0xff]  ;;  %v650_v47 = vunpack.c.l.s4 %v3775_v46  ;;  %v652_v48 = vlaneseq }
  0x8c   :  { %3002 = vmatpush1.bf16.msra.mxu1 %v3001_v38  ;;  %2748 = vmatprep.subr.bf16.mxu0 %v2747_v39  ;;  %v179_v59 = vld [vmem:[#allocation2 + $0x168] sm:$0xff]  ;;  %v177_v60 = vld [vmem:[#allocation2 + $0x158] sm:$0xff]  ;;  %v2753_v62 = vpack.c.bf16 %v170_v54, %v166_v53  ;;  %v3009_v63 = vpack.c.bf16 %v172_v57, %v168_v55  ;;  %v174_v1 = vld [vmem:[#allocation2 + $0x140] sm:$0xff] }
  0x8d   :  { %3004 = vmatprep.subr.bf16.mxu1 %v3003_v43  ;;  %v181_v61 = vld [vmem:[#allocation2 + $0x178] sm:$0xff]  ;;  %v2755_v0 = vpack.c.bf16 %v179_v59, %v175_v58  ;;  %v178_v2 = vld [vmem:[#allocation2 + $0x160] sm:$0xff]  ;;  %v176_v3 = vld [vmem:[#allocation2 + $0x150] sm:$0xff] }
  0x8e   :  { %v3011_v4 = vpack.c.bf16 %v181_v61, %v177_v60  ;;  %v180_v5 = vld [vmem:[#allocation2 + $0x170] sm:$0xff]  ;;  %v183_v6 = vld [vmem:[#allocation2 + $0x188] sm:$0xff]  ;;  %v185_v8 = vld [vmem:[#allocation2 + $0x198] sm:$0xff]  ;;  %v2757_v10 = vpack.c.bf16 %v178_v2, %v174_v1  ;;  %v651_v61 = vunpack.c.0.s8 %v650_v47 }
  0x8f   :  { %2750 = vmatpush1.bf16.msra.mxu0 %v2749_v50  ;;  %v187_v7 = vld [vmem:[#allocation2 + $0x1a8] sm:$0xff]  ;;  %v189_v9 = vld [vmem:[#allocation2 + $0x1b8] sm:$0xff]  ;;  %v3013_v11 = vpack.c.bf16 %v180_v5, %v176_v3  ;;  %v182_v13 = vld [vmem:[#allocation2 + $0x180] sm:$0xff] }
  0x90   :  { %3006 = vmatpush1.bf16.msra.mxu1 %v3005_v51  ;;  %2752 = vmatprep.subr.bf16.mxu0 %v2751_v52  ;;  %v2759_v12 = vpack.c.bf16 %v187_v7, %v183_v6  ;;  %v186_v14 = vld [vmem:[#allocation2 + $0x1a0] sm:$0xff]  ;;  %v184_v15 = vld [vmem:[#allocation2 + $0x190] sm:$0xff]  ;;  %v3015_v16 = vpack.c.bf16 %v189_v9, %v185_v8  ;;  %v191_v18 = vld [vmem:[#allocation2 + $0x1c8] sm:$0xff] }
  0x91   :  { %3008 = vmatprep.subr.bf16.mxu1 %v3007_v56  ;;  %v188_v17 = vld [vmem:[#allocation2 + $0x1b0] sm:$0xff]  ;;  %v195_v19 = vld [vmem:[#allocation2 + $0x1e8] sm:$0xff]  ;;  %v193_v20 = vld [vmem:[#allocation2 + $0x1d8] sm:$0xff]  ;;  %v2761_v22 = vpack.c.bf16 %v186_v14, %v182_v13 }
  0x92   :  { %v197_v21 = vld [vmem:[#allocation2 + $0x1f8] sm:$0xff]  ;;  %v3017_v23 = vpack.c.bf16 %v188_v17, %v184_v15  ;;  %v2763_v24 = vpack.c.bf16 %v195_v19, %v191_v18  ;;  %v190_v25 = vld [vmem:[#allocation2 + $0x1c0] sm:$0xff]  ;;  %v192_v27 = vld [vmem:[#allocation2 + $0x1d0] sm:$0xff] }
  0x93   :  { %2754 = vmatpush1.bf16.msra.mxu0 %v2753_v62  ;;  %v194_v26 = vld [vmem:[#allocation2 + $0x1e0] sm:$0xff]  ;;  %v3019_v28 = vpack.c.bf16 %v197_v21, %v193_v20  ;;  %v196_v29 = vld [vmem:[#allocation2 + $0x1f0] sm:$0xff]  ;;  %v199_v30 = vld [vmem:[#allocation2 + $0x208] sm:$0xff]  ;;  %v653_v62 = vshrl.u32 %v652_v48, 7 }
  0x94   :  { %3010 = vmatpush1.bf16.msra.mxu1 %v3009_v63  ;;  %2756 = vmatprep.subr.bf16.mxu0 %v2755_v0  ;;  %v203_v31 = vld [vmem:[#allocation2 + $0x228] sm:$0xff]  ;;  %v201_v32 = vld [vmem:[#allocation2 + $0x218] sm:$0xff]  ;;  %v2765_v34 = vpack.c.bf16 %v194_v26, %v190_v25  ;;  %v3021_v35 = vpack.c.bf16 %v196_v29, %v192_v27  ;;  %v198_v37 = vld [vmem:[#allocation2 + $0x200] sm:$0xff] }
  0x95   :  { %3012 = vmatprep.subr.bf16.mxu1 %v3011_v4  ;;  %v205_v33 = vld [vmem:[#allocation2 + $0x238] sm:$0xff]  ;;  %v2767_v36 = vpack.c.bf16 %v203_v31, %v199_v30  ;;  %v202_v38 = vld [vmem:[#allocation2 + $0x220] sm:$0xff]  ;;  %v200_v39 = vld [vmem:[#allocation2 + $0x210] sm:$0xff] }
  0x96   :  { %v3023_v40 = vpack.c.bf16 %v205_v33, %v201_v32  ;;  %v204_v41 = vld [vmem:[#allocation2 + $0x230] sm:$0xff]  ;;  %v207_v42 = vld [vmem:[#allocation2 + $0x248] sm:$0xff]  ;;  %v209_v44 = vld [vmem:[#allocation2 + $0x258] sm:$0xff]  ;;  %v2769_v49 = vpack.c.bf16 %v202_v38, %v198_v37 }
  0x97   :  { %2758 = vmatpush1.bf16.msra.mxu0 %v2757_v10  ;;  %v211_v43 = vld [vmem:[#allocation2 + $0x268] sm:$0xff]  ;;  %v213_v45 = vld [vmem:[#allocation2 + $0x278] sm:$0xff]  ;;  %v3025_v50 = vpack.c.bf16 %v204_v41, %v200_v39  ;;  %v206_v52 = vld [vmem:[#allocation2 + $0x240] sm:$0xff] }
  0x98   :  { %3014 = vmatpush1.bf16.msra.mxu1 %v3013_v11  ;;  %2760 = vmatprep.subr.bf16.mxu0 %v2759_v12  ;;  %v2771_v51 = vpack.c.bf16 %v211_v43, %v207_v42  ;;  %v210_v53 = vld [vmem:[#allocation2 + $0x260] sm:$0xff]  ;;  %v208_v54 = vld [vmem:[#allocation2 + $0x250] sm:$0xff]  ;;  %v3027_v55 = vpack.c.bf16 %v213_v45, %v209_v44  ;;  %v215_v57 = vld [vmem:[#allocation2 + $0x288] sm:$0xff]  ;;  %v3954_v11 = vsub.s32 %v651_v61, %v653_v62 }
  0x99   :  { %3016 = vmatprep.subr.bf16.mxu1 %v3015_v16  ;;  %v212_v56 = vld [vmem:[#allocation2 + $0x270] sm:$0xff]  ;;  %v219_v58 = vld [vmem:[#allocation2 + $0x2a8] sm:$0xff]  ;;  %v217_v59 = vld [vmem:[#allocation2 + $0x298] sm:$0xff]  ;;  %v2773_v63 = vpack.c.bf16 %v210_v53, %v206_v52 }
  0x9a   :  { %v221_v60 = vld [vmem:[#allocation2 + $0x2b8] sm:$0xff]  ;;  %v3029_v0 = vpack.c.bf16 %v212_v56, %v208_v54  ;;  %v2775_v1 = vpack.c.bf16 %v219_v58, %v215_v57  ;;  %v214_v2 = vld [vmem:[#allocation2 + $0x280] sm:$0xff]  ;;  %v216_v4 = vld [vmem:[#allocation2 + $0x290] sm:$0xff] }
  0x9b   :  { %2762 = vmatpush1.bf16.msra.mxu0 %v2761_v22  ;;  %v218_v3 = vld [vmem:[#allocation2 + $0x2a0] sm:$0xff]  ;;  %v3031_v5 = vpack.c.bf16 %v221_v60, %v217_v59  ;;  %v220_v6 = vld [vmem:[#allocation2 + $0x2b0] sm:$0xff]  ;;  %v223_v7 = vld [vmem:[#allocation2 + $0x2c8] sm:$0xff] }
  0x9c   :  { %3018 = vmatpush1.bf16.msra.mxu1 %v3017_v23  ;;  %2764 = vmatprep.subr.bf16.mxu0 %v2763_v24  ;;  %v227_v8 = vld [vmem:[#allocation2 + $0x2e8] sm:$0xff]  ;;  %v225_v9 = vld [vmem:[#allocation2 + $0x2d8] sm:$0xff]  ;;  %v2777_v12 = vpack.c.bf16 %v218_v3, %v214_v2  ;;  %v222_v13 = vld [vmem:[#allocation2 + $0x2c0] sm:$0xff]  ;;  %v3033_v14 = vpack.c.bf16 %v220_v6, %v216_v4 }
  0x9d   :  { %3020 = vmatprep.subr.bf16.mxu1 %v3019_v28  ;;  %v229_v10 = vld [vmem:[#allocation2 + $0x2f8] sm:$0xff]  ;;  %v2779_v15 = vpack.c.bf16 %v227_v8, %v223_v7  ;;  %v226_v16 = vld [vmem:[#allocation2 + $0x2e0] sm:$0xff]  ;;  %v224_v17 = vld [vmem:[#allocation2 + $0x2d0] sm:$0xff] }
  0x9e   :  { %v228_v18 = vld [vmem:[#allocation2 + $0x2f0] sm:$0xff]  ;;  %v3035_v19 = vpack.c.bf16 %v229_v10, %v225_v9  ;;  %v231_v20 = vld [vmem:[#allocation2 + $0x308] sm:$0xff]  ;;  %v3959_v22 = vld [vmem:[%s4451_s0] sm:$0xff]  ;;  %v2781_v26 = vpack.c.bf16 %v226_v16, %v222_v13 }
  0x9f   :  { %2766 = vmatpush1.bf16.msra.mxu0 %v2765_v34  ;;  %v235_v21 = vld [vmem:[#allocation2 + $0x328] sm:$0xff]  ;;  %v233_v23 = vld [vmem:[#allocation2 + $0x318] sm:$0xff]  ;;  %v3963_v25 = vrot.slane %v3959_v22, %v3954_v11  ;;  %v3037_v27 = vpack.c.bf16 %v228_v18, %v224_v17  ;;  %v230_v29 = vld [vmem:[#allocation2 + $0x300] sm:$0xff]  ;;  %v648_v7 = vcombine.high %v3959_v22, %v3959_v22 }
  0xa0   :  { %3022 = vmatpush1.bf16.msra.mxu1 %v3021_v35  ;;  %2768 = vmatprep.subr.bf16.mxu0 %v2767_v36  ;;  %v237_v24 = vld [vmem:[#allocation2 + $0x338] sm:$0xff]  ;;  %v2783_v28 = vpack.c.bf16 %v235_v21, %v231_v20  ;;  %v234_v30 = vld [vmem:[#allocation2 + $0x320] sm:$0xff]  ;;  %v232_v31 = vld [vmem:[#allocation2 + $0x310] sm:$0xff] }
  0xa1   :  { %3024 = vmatprep.subr.bf16.mxu1 %v3023_v40  ;;  %v663_v32 = vcombine.high %v3963_v25, %v3963_v25  ;;  %v3039_v33 = vpack.c.bf16 %v237_v24, %v233_v23  ;;  %v236_v34 = vld [vmem:[#allocation2 + $0x330] sm:$0xff]  ;;  %v239_v35 = vld [vmem:[#allocation2 + $0x348] sm:$0xff]  ;;  %v241_v37 = vld [vmem:[#allocation2 + $0x358] sm:$0xff]  ;;  %v2785_v39 = vpack.c.bf16 %v234_v30, %v230_v29  ;;  %v3970_v22 = vrot.slane %v648_v7, %v3954_v11 }
  0xa2   :  { %v243_v36 = vld [vmem:[#allocation2 + $0x368] sm:$0xff]  ;;  %v245_v38 = vld [vmem:[#allocation2 + $0x378] sm:$0xff]  ;;  %v3041_v40 = vpack.c.bf16 %v236_v34, %v232_v31  ;;  %v238_v42 = vld [vmem:[#allocation2 + $0x340] sm:$0xff] }
  0xa3   :  { %2770 = vmatpush1.bf16.msra.mxu0 %v2769_v49  ;;  %754 = vmatprep.mubr.f32.mxu0 %v663_v32  ;;  %v2787_v41 = vpack.c.bf16 %v243_v36, %v239_v35  ;;  %v242_v43 = vld [vmem:[#allocation2 + $0x360] sm:$0xff]  ;;  %v240_v44 = vld [vmem:[#allocation2 + $0x350] sm:$0xff]  ;;  %v3043_v45 = vpack.c.bf16 %v245_v38, %v241_v37  ;;  %v247_v47 = vld [vmem:[#allocation2 + $0x388] sm:$0xff]  ;;  %v664_v37 = vcombine.high %v3970_v22, %v3970_v22 }
  0xa4   :  { %3026 = vmatpush1.bf16.msra.mxu1 %v3025_v50  ;;  %2772 = vmatprep.subr.bf16.mxu0 %v2771_v51  ;;  %v244_v46 = vld [vmem:[#allocation2 + $0x370] sm:$0xff]  ;;  %v251_v48 = vld [vmem:[#allocation2 + $0x3a8] sm:$0xff]  ;;  %v249_v49 = vld [vmem:[#allocation2 + $0x398] sm:$0xff]  ;;  %v2789_v51 = vpack.c.bf16 %v242_v43, %v238_v42 }
  0xa5   :  { %3028 = vmatprep.subr.bf16.mxu1 %v3027_v55  ;;  %1038 = vmatprep.mubr.f32.mxu1 %v663_v32  ;;  %v253_v50 = vld [vmem:[#allocation2 + $0x3b8] sm:$0xff]  ;;  %v3045_v52 = vpack.c.bf16 %v244_v46, %v240_v44  ;;  %v2791_v53 = vpack.c.bf16 %v251_v48, %v247_v47  ;;  %v246_v54 = vld [vmem:[#allocation2 + $0x380] sm:$0xff]  ;;  %v248_v56 = vld [vmem:[#allocation2 + $0x390] sm:$0xff] }
  0xa6   :  { %v250_v55 = vld [vmem:[#allocation2 + $0x3a0] sm:$0xff]  ;;  %v3047_v57 = vpack.c.bf16 %v253_v50, %v249_v49  ;;  %v252_v58 = vld [vmem:[#allocation2 + $0x3b0] sm:$0xff]  ;;  %v255_v59 = vld [vmem:[#allocation2 + $0x3c8] sm:$0xff] }
  0xa7   :  { %2774 = vmatpush1.bf16.msra.mxu0 %v2773_v63  ;;  %v259_v60 = vld [vmem:[#allocation2 + $0x3e8] sm:$0xff]  ;;  %v257_v61 = vld [vmem:[#allocation2 + $0x3d8] sm:$0xff]  ;;  %v2793_v63 = vpack.c.bf16 %v250_v55, %v246_v54  ;;  %v254_v2 = vld [vmem:[#allocation2 + $0x3c0] sm:$0xff] }
  0xa8   :  { %3030 = vmatpush1.bf16.msra.mxu1 %v3029_v0  ;;  %2776 = vmatprep.subr.bf16.mxu0 %v2775_v1  ;;  %v261_v62 = vld [vmem:[#allocation2 + $0x3f8] sm:$0xff]  ;;  %v3049_v0 = vpack.c.bf16 %v252_v58, %v248_v56  ;;  %v2795_v1 = vpack.c.bf16 %v259_v60, %v255_v59  ;;  %v258_v3 = vld [vmem:[#allocation2 + $0x3e0] sm:$0xff]  ;;  %v256_v4 = vld [vmem:[#allocation2 + $0x3d0] sm:$0xff] }
  0xa9   :  { %3032 = vmatprep.subr.bf16.mxu1 %v3031_v5  ;;  %v3051_v5 = vpack.c.bf16 %v261_v62, %v257_v61  ;;  %v260_v6 = vld [vmem:[#allocation2 + $0x3f0] sm:$0xff]  ;;  %v263_v8 = vld [vmem:[#allocation2 + $0x408] sm:$0xff]  ;;  %v265_v10 = vld [vmem:[#allocation2 + $0x418] sm:$0xff]  ;;  %v2797_v13 = vpack.c.bf16 %v258_v3, %v254_v2 }
  0xaa   :  { %v267_v9 = vld [vmem:[#allocation2 + $0x428] sm:$0xff]  ;;  %v262_v16 = vld [vmem:[#allocation2 + $0x400] sm:$0xff]  ;;  %v264_v18 = vld [vmem:[#allocation2 + $0x410] sm:$0xff] }
  0xab   :  { %2778 = vmatpush1.bf16.msra.mxu0 %v2777_v12  ;;  %v269_v12 = vld [vmem:[#allocation2 + $0x438] sm:$0xff]  ;;  %v266_v17 = vld [vmem:[#allocation2 + $0x420] sm:$0xff]  ;;  %v268_v20 = vld [vmem:[#allocation2 + $0x430] sm:$0xff] }
  0xac   :  { %3034 = vmatpush1.bf16.msra.mxu1 %v3033_v14  ;;  %2780 = vmatprep.subr.bf16.mxu0 %v2779_v15  ;;  %v3053_v14 = vpack.c.bf16 %v260_v6, %v256_v4  ;;  %v2799_v15 = vpack.c.bf16 %v267_v9, %v263_v8  ;;  %v271_v21 = vld [vmem:[#allocation2 + $0x448] sm:$0xff]  ;;  %v273_v24 = vld [vmem:[#allocation2 + $0x458] sm:$0xff]  ;;  %v270_v30 = vld [vmem:[#allocation2 + $0x440] sm:$0xff] }
  0xad   :  { %3036 = vmatprep.subr.bf16.mxu1 %v3035_v19  ;;  %v3055_v19 = vpack.c.bf16 %v269_v12, %v265_v10  ;;  %v275_v23 = vld [vmem:[#allocation2 + $0x468] sm:$0xff]  ;;  %v274_v31 = vld [vmem:[#allocation2 + $0x460] sm:$0xff]  ;;  %v272_v32 = vld [vmem:[#allocation2 + $0x450] sm:$0xff] }
  0xae   :  { %v2803_v29 = vpack.c.bf16 %v275_v23, %v271_v21  ;;  %v276_v34 = vld [vmem:[#allocation2 + $0x470] sm:$0xff]  ;;  %v279_v35 = vld [vmem:[#allocation2 + $0x488] sm:$0xff]  ;;  %v281_v38 = vld [vmem:[#allocation2 + $0x498] sm:$0xff] }
  0xaf   :  { %2782 = vmatpush1.bf16.msra.mxu0 %v2781_v26  ;;  %v277_v26 = vld [vmem:[#allocation2 + $0x478] sm:$0xff]  ;;  %v283_v36 = vld [vmem:[#allocation2 + $0x4a8] sm:$0xff]  ;;  %v278_v43 = vld [vmem:[#allocation2 + $0x480] sm:$0xff] }
  0xb0   :  { %3038 = vmatpush1.bf16.msra.mxu1 %v3037_v27  ;;  %2784 = vmatprep.subr.bf16.mxu0 %v2783_v28  ;;  %v2801_v27 = vpack.c.bf16 %v266_v17, %v262_v16  ;;  %v3057_v28 = vpack.c.bf16 %v268_v20, %v264_v18  ;;  %v2807_v42 = vpack.c.bf16 %v283_v36, %v279_v35  ;;  %v282_v44 = vld [vmem:[#allocation2 + $0x4a0] sm:$0xff]  ;;  %v284_v47 = vld [vmem:[#allocation2 + $0x4b0] sm:$0xff]  ;;  %v287_v48 = vld [vmem:[#allocation2 + $0x4c8] sm:$0xff] }
  0xb1   :  { %3040 = vmatprep.subr.bf16.mxu1 %v3039_v33  ;;  %v3059_v33 = vpack.c.bf16 %v277_v26, %v273_v24  ;;  %v291_v49 = vld [vmem:[#allocation2 + $0x4e8] sm:$0xff]  ;;  %v289_v50 = vld [vmem:[#allocation2 + $0x4d8] sm:$0xff]  ;;  %v286_v54 = vld [vmem:[#allocation2 + $0x4c0] sm:$0xff] }
  0xb2   :  { %v290_v55 = vld [vmem:[#allocation2 + $0x4e0] sm:$0xff]  ;;  %v288_v56 = vld [vmem:[#allocation2 + $0x4d0] sm:$0xff]  ;;  %v295_v59 = vld [vmem:[#allocation2 + $0x508] sm:$0xff] }
  0xb3   :  { %2786 = vmatpush1.bf16.msra.mxu0 %v2785_v39  ;;  %v285_v39 = vld [vmem:[#allocation2 + $0x4b8] sm:$0xff]  ;;  %v292_v58 = vld [vmem:[#allocation2 + $0x4f0] sm:$0xff]  ;;  %v299_v60 = vld [vmem:[#allocation2 + $0x528] sm:$0xff] }
  0xb4   :  { %3042 = vmatpush1.bf16.msra.mxu1 %v3041_v40  ;;  %2788 = vmatprep.subr.bf16.mxu0 %v2787_v41  ;;  %v2805_v40 = vpack.c.bf16 %v274_v31, %v270_v30  ;;  %v3061_v41 = vpack.c.bf16 %v276_v34, %v272_v32  ;;  %v3063_v46 = vpack.c.bf16 %v285_v39, %v281_v38  ;;  %v297_v61 = vld [vmem:[#allocation2 + $0x518] sm:$0xff]  ;;  %v294_v2 = vld [vmem:[#allocation2 + $0x500] sm:$0xff]  ;;  %v296_v4 = vld [vmem:[#allocation2 + $0x510] sm:$0xff] }
  0xb5   :  { %3044 = vmatprep.subr.bf16.mxu1 %v3043_v45  ;;  %v280_v45 = vld [vmem:[#allocation2 + $0x490] sm:$0xff]  ;;  %v301_v62 = vld [vmem:[#allocation2 + $0x538] sm:$0xff]  ;;  %v298_v3 = vld [vmem:[#allocation2 + $0x520] sm:$0xff] }
  0xb6   :  { %v300_v6 = vld [vmem:[#allocation2 + $0x530] sm:$0xff]  ;;  %v303_v7 = vld [vmem:[#allocation2 + $0x548] sm:$0xff]  ;;  %v305_v9 = vld [vmem:[#allocation2 + $0x558] sm:$0xff]  ;;  %v2817_v12 = vpack.c.bf16 %v298_v3, %v294_v2 }
  0xb7   :  { %2790 = vmatpush1.bf16.msra.mxu0 %v2789_v51  ;;  %v293_v51 = vld [vmem:[#allocation2 + $0x4f8] sm:$0xff]  ;;  %v307_v8 = vld [vmem:[#allocation2 + $0x568] sm:$0xff]  ;;  %v306_v16 = vld [vmem:[#allocation2 + $0x560] sm:$0xff] }
  0xb8   :  { %3046 = vmatpush1.bf16.msra.mxu1 %v3045_v52  ;;  %2792 = vmatprep.subr.bf16.mxu0 %v2791_v53  ;;  %v2809_v52 = vpack.c.bf16 %v282_v44, %v278_v43  ;;  %v2811_v53 = vpack.c.bf16 %v291_v49, %v287_v48  ;;  %v309_v10 = vld [vmem:[#allocation2 + $0x578] sm:$0xff]  ;;  %v304_v17 = vld [vmem:[#allocation2 + $0x550] sm:$0xff]  ;;  %v311_v20 = vld [vmem:[#allocation2 + $0x588] sm:$0xff] }
  0xb9   :  { %3048 = vmatprep.subr.bf16.mxu1 %v3047_v57  ;;  %v3067_v57 = vpack.c.bf16 %v293_v51, %v289_v50  ;;  %v3075_v18 = vpack.c.bf16 %v309_v10, %v305_v9  ;;  %v315_v21 = vld [vmem:[#allocation2 + $0x5a8] sm:$0xff]  ;;  %v313_v23 = vld [vmem:[#allocation2 + $0x598] sm:$0xff]  ;;  %v314_v30 = vld [vmem:[#allocation2 + $0x5a0] sm:$0xff] }
  0xba   :  { %v317_v24 = vld [vmem:[#allocation2 + $0x5b8] sm:$0xff]  ;;  %v312_v31 = vld [vmem:[#allocation2 + $0x590] sm:$0xff]  ;;  %v319_v34 = vld [vmem:[#allocation2 + $0x5c8] sm:$0xff] }
  0xbb   :  { %2794 = vmatpush1.bf16.msra.mxu0 %v2793_v63  ;;  %v2813_v63 = vpack.c.bf16 %v290_v55, %v286_v54  ;;  %v3079_v32 = vpack.c.bf16 %v317_v24, %v313_v23  ;;  %v323_v35 = vld [vmem:[#allocation2 + $0x5e8] sm:$0xff]  ;;  %v321_v36 = vld [vmem:[#allocation2 + $0x5d8] sm:$0xff]  ;;  %v320_v43 = vld [vmem:[#allocation2 + $0x5d0] sm:$0xff] }
  0xbc   :  { %3050 = vmatpush1.bf16.msra.mxu1 %v3049_v0  ;;  %2796 = vmatprep.subr.bf16.mxu0 %v2795_v1  ;;  %v3069_v0 = vpack.c.bf16 %v292_v58, %v288_v56  ;;  %v2815_v1 = vpack.c.bf16 %v299_v60, %v295_v59  ;;  %v329_v48 = vld [vmem:[#allocation2 + $0x618] sm:$0xff]  ;;  %v328_v54 = vld [vmem:[#allocation2 + $0x610] sm:$0xff]  ;;  %v339_v58 = vld [vmem:[#allocation2 + $0x668] sm:$0xff] }
  0xbd   :  { %3052 = vmatprep.subr.bf16.mxu1 %v3051_v5  ;;  %v3071_v5 = vpack.c.bf16 %v301_v62, %v297_v61  ;;  %v333_v49 = vld [vmem:[#allocation2 + $0x638] sm:$0xff]  ;;  %v332_v56 = vld [vmem:[#allocation2 + $0x630] sm:$0xff] }
  0xbe   :  { %v3087_v55 = vpack.c.bf16 %v333_v49, %v329_v48  ;;  %v337_v59 = vld [vmem:[#allocation2 + $0x658] sm:$0xff]  ;;  %v3089_v62 = vpack.c.bf16 %v332_v56, %v328_v54  ;;  %v336_v2 = vld [vmem:[#allocation2 + $0x650] sm:$0xff]  ;;  %v379_v56 = vld [vmem:[#allocation2 + $0x7a8] sm:$0xff] }
  0xbf   :  { %2798 = vmatpush1.bf16.msra.mxu0 %v2797_v13  ;;  %v3073_v13 = vpack.c.bf16 %v300_v6, %v296_v4  ;;  %v341_v60 = vld [vmem:[#allocation2 + $0x678] sm:$0xff]  ;;  %v340_v4 = vld [vmem:[#allocation2 + $0x670] sm:$0xff]  ;;  %v347_v6 = vld [vmem:[#allocation2 + $0x6a8] sm:$0xff] }
  0xc0   :  { %3054 = vmatpush1.bf16.msra.mxu1 %v3053_v14  ;;  %2800 = vmatprep.subr.bf16.mxu0 %v2799_v15  ;;  %v2819_v14 = vpack.c.bf16 %v307_v8, %v303_v7  ;;  %v302_v15 = vld [vmem:[#allocation2 + $0x540] sm:$0xff]  ;;  %v3091_v3 = vpack.c.bf16 %v341_v60, %v337_v59  ;;  %v345_v7 = vld [vmem:[#allocation2 + $0x698] sm:$0xff]  ;;  %v3093_v10 = vpack.c.bf16 %v340_v4, %v336_v2  ;;  %v372_v54 = vld [vmem:[#allocation2 + $0x770] sm:$0xff] }
  0xc1   :  { %3056 = vmatprep.subr.bf16.mxu1 %v3055_v19  ;;  %v308_v19 = vld [vmem:[#allocation2 + $0x570] sm:$0xff]  ;;  %v2821_v26 = vpack.c.bf16 %v306_v16, %v302_v15  ;;  %v349_v8 = vld [vmem:[#allocation2 + $0x6b8] sm:$0xff]  ;;  %v387_v4 = vld [vmem:[#allocation2 + $0x7e8] sm:$0xff] }
  0xc2   :  { %755 = vmatmul.mubr.f32.vlgmr.msra.gmra.mrb[0].mxu0 %v3963_v25  ;;  %v344_v15 = vld [vmem:[#allocation2 + $0x690] sm:$0xff]  ;;  %v3095_v16 = vpack.c.bf16 %v349_v8, %v345_v7 }
  0xc3   :  { %2802 = vmatpush1.bf16.msra.mxu0 %v2801_v27  ;;  %1039 = vmatmul.mubr.f32.vlgmr.msra.gmra.mrb[0].mxu1 %v3963_v25  ;;  %v3065_v25 = vpack.c.bf16 %v284_v47, %v280_v45  ;;  %v3077_v27 = vpack.c.bf16 %v308_v19, %v304_v17  ;;  %v324_v45 = vld [vmem:[#allocation2 + $0x5f0] sm:$0xff]  ;;  %v331_v47 = vld [vmem:[#allocation2 + $0x628] sm:$0xff] }
  0xc4   :  { %3058 = vmatpush1.bf16.msra.mxu1 %v3057_v28  ;;  %2804 = vmatprep.subr.bf16.mxu0 %v2803_v29  ;;  %v2823_v28 = vpack.c.bf16 %v315_v21, %v311_v20  ;;  %v310_v29 = vld [vmem:[#allocation2 + $0x580] sm:$0xff]  ;;  %v3085_v51 = vpack.c.bf16 %v324_v45, %v320_v43  ;;  %v348_v17 = vld [vmem:[#allocation2 + $0x6b0] sm:$0xff]  ;;  %v355_v19 = vld [vmem:[#allocation2 + $0x6e8] sm:$0xff] }
  0xc5   :  { %3060 = vmatprep.subr.bf16.mxu1 %v3059_v33  ;;  %825 = vmatprep.mubr.f32.mxu0 %v664_v37  ;;  %v316_v33 = vld [vmem:[#allocation2 + $0x5b0] sm:$0xff]  ;;  %v2825_v38 = vpack.c.bf16 %v314_v30, %v310_v29  ;;  %v353_v20 = vld [vmem:[#allocation2 + $0x6d8] sm:$0xff]  ;;  %v3097_v24 = vpack.c.bf16 %v348_v17, %v344_v15  ;;  %v371_v45 = vld [vmem:[#allocation2 + $0x768] sm:$0xff] }
  0xc6   :  { %1109 = vmatprep.mubr.f32.mxu1 %v664_v37  ;;  %v325_v37 = vld [vmem:[#allocation2 + $0x5f8] sm:$0xff]  ;;  %v3081_v39 = vpack.c.bf16 %v316_v33, %v312_v31  ;;  %v352_v29 = vld [vmem:[#allocation2 + $0x6d0] sm:$0xff]  ;;  %v363_v33 = vld [vmem:[#allocation2 + $0x728] sm:$0xff] }
  0xc7   :  { %2806 = vmatpush1.bf16.msra.mxu0 %v2805_v40  ;;  %v2827_v40 = vpack.c.bf16 %v323_v35, %v319_v34  ;;  %v3083_v44 = vpack.c.bf16 %v325_v37, %v321_v36  ;;  %v357_v21 = vld [vmem:[#allocation2 + $0x6f8] sm:$0xff]  ;;  %v356_v31 = vld [vmem:[#allocation2 + $0x6f0] sm:$0xff]  ;;  %v395_v17 = vld [vmem:[#allocation2 + $0x828] sm:$0xff] }
  0xc8   :  { %3062 = vmatpush1.bf16.msra.mxu1 %v3061_v41  ;;  %2808 = vmatprep.subr.bf16.mxu0 %v2807_v42  ;;  %v318_v41 = vld [vmem:[#allocation2 + $0x5c0] sm:$0xff]  ;;  %v3099_v30 = vpack.c.bf16 %v357_v21, %v353_v20  ;;  %v361_v34 = vld [vmem:[#allocation2 + $0x718] sm:$0xff]  ;;  %v3101_v37 = vpack.c.bf16 %v356_v31, %v352_v29  ;;  %v364_v43 = vld [vmem:[#allocation2 + $0x730] sm:$0xff] }
  0xc9   :  { %3064 = vmatprep.subr.bf16.mxu1 %v3063_v46  ;;  %v322_v42 = vld [vmem:[#allocation2 + $0x5e0] sm:$0xff]  ;;  %v327_v46 = vld [vmem:[#allocation2 + $0x608] sm:$0xff]  ;;  %v365_v35 = vld [vmem:[#allocation2 + $0x738] sm:$0xff] }
  0xca   :  { %v2829_v50 = vpack.c.bf16 %v322_v42, %v318_v41  ;;  %v360_v41 = vld [vmem:[#allocation2 + $0x710] sm:$0xff]  ;;  %v3103_v42 = vpack.c.bf16 %v365_v35, %v361_v34  ;;  %v403_v31 = vld [vmem:[#allocation2 + $0x868] sm:$0xff] }
  0xcb   :  { %2810 = vmatpush1.bf16.msra.mxu0 %v2809_v52  ;;  %v2831_v52 = vpack.c.bf16 %v331_v47, %v327_v46  ;;  %v369_v46 = vld [vmem:[#allocation2 + $0x758] sm:$0xff]  ;;  %v3105_v49 = vpack.c.bf16 %v364_v43, %v360_v41  ;;  %v380_v2 = vld [vmem:[#allocation2 + $0x7b0] sm:$0xff]  ;;  %v3979_v35 = vld [vmem:[%s4451_s0 + $0x8] sm:$0xff] }
  0xcc   :  { %3066 = vmatpush1.bf16.msra.mxu1 %v3065_v25  ;;  %2812 = vmatprep.subr.bf16.mxu0 %v2811_v53  ;;  %v326_v25 = vld [vmem:[#allocation2 + $0x600] sm:$0xff]  ;;  %v373_v47 = vld [vmem:[#allocation2 + $0x778] sm:$0xff]  ;;  %v388_v15 = vld [vmem:[#allocation2 + $0x7f0] sm:$0xff]  ;;  %v3983_v41 = vrot.slane %v3979_v35, %v3954_v11 }
  0xcd   :  { %3068 = vmatprep.subr.bf16.mxu1 %v3067_v57  ;;  %v330_v53 = vld [vmem:[#allocation2 + $0x620] sm:$0xff]  ;;  %v335_v57 = vld [vmem:[#allocation2 + $0x648] sm:$0xff]  ;;  %v396_v29 = vld [vmem:[#allocation2 + $0x830] sm:$0xff] }
  0xce   :  { %v2833_v61 = vpack.c.bf16 %v330_v53, %v326_v25  ;;  %v368_v25 = vld [vmem:[#allocation2 + $0x750] sm:$0xff]  ;;  %v3107_v53 = vpack.c.bf16 %v373_v47, %v369_v46  ;;  %v409_v46 = vld [vmem:[#allocation2 + $0x898] sm:$0xff] }
  0xcf   :  { %2814 = vmatpush1.bf16.msra.mxu0 %v2813_v63  ;;  %v2835_v63 = vpack.c.bf16 %v339_v58, %v335_v57  ;;  %v377_v57 = vld [vmem:[#allocation2 + $0x798] sm:$0xff]  ;;  %v3109_v60 = vpack.c.bf16 %v372_v54, %v368_v25  ;;  %v404_v43 = vld [vmem:[#allocation2 + $0x870] sm:$0xff]  ;;  %v410_v25 = vld [vmem:[#allocation2 + $0x8a0] sm:$0xff] }
  0xd0   :  { %3070 = vmatpush1.bf16.msra.mxu1 %v3069_v0  ;;  %2816 = vmatprep.subr.bf16.mxu0 %v2815_v1  ;;  %v334_v0 = vld [vmem:[#allocation2 + $0x640] sm:$0xff]  ;;  %v381_v58 = vld [vmem:[#allocation2 + $0x7b8] sm:$0xff] }
  0xd1   :  { %3072 = vmatprep.subr.bf16.mxu1 %v3071_v5  ;;  %v338_v1 = vld [vmem:[#allocation2 + $0x660] sm:$0xff]  ;;  %v343_v5 = vld [vmem:[#allocation2 + $0x688] sm:$0xff]  ;;  %v413_v47 = vld [vmem:[#allocation2 + $0x8b8] sm:$0xff] }
  0xd2   :  { %v2837_v9 = vpack.c.bf16 %v338_v1, %v334_v0  ;;  %v376_v0 = vld [vmem:[#allocation2 + $0x790] sm:$0xff]  ;;  %v3111_v1 = vpack.c.bf16 %v381_v58, %v377_v57  ;;  %v3127_v54 = vpack.c.bf16 %v413_v47, %v409_v46  ;;  %v419_v57 = vld [vmem:[#allocation2 + $0x8e8] sm:$0xff]  ;;  %v417_v58 = vld [vmem:[#allocation2 + $0x8d8] sm:$0xff] }
  0xd3   :  { %2818 = vmatpush1.bf16.msra.mxu0 %v2817_v12  ;;  %v2839_v12 = vpack.c.bf16 %v347_v6, %v343_v5  ;;  %v385_v5 = vld [vmem:[#allocation2 + $0x7d8] sm:$0xff]  ;;  %v3113_v8 = vpack.c.bf16 %v380_v2, %v376_v0  ;;  %v416_v0 = vld [vmem:[#allocation2 + $0x8d0] sm:$0xff] }
  0xd4   :  { %3074 = vmatpush1.bf16.msra.mxu1 %v3073_v13  ;;  %2820 = vmatprep.subr.bf16.mxu0 %v2819_v14  ;;  %v342_v13 = vld [vmem:[#allocation2 + $0x680] sm:$0xff]  ;;  %v389_v6 = vld [vmem:[#allocation2 + $0x7f8] sm:$0xff]  ;;  %v420_v2 = vld [vmem:[#allocation2 + $0x8f0] sm:$0xff] }
  0xd5   :  { %3076 = vmatprep.subr.bf16.mxu1 %v3075_v18  ;;  %v346_v14 = vld [vmem:[#allocation2 + $0x6a0] sm:$0xff]  ;;  %v351_v18 = vld [vmem:[#allocation2 + $0x6c8] sm:$0xff]  ;;  %v449_v46 = vld [vmem:[#allocation2 + $0x9d8] sm:$0xff] }
  0xd6   :  { %v2841_v23 = vpack.c.bf16 %v346_v14, %v342_v13  ;;  %v384_v13 = vld [vmem:[#allocation2 + $0x7d0] sm:$0xff]  ;;  %v3115_v14 = vpack.c.bf16 %v389_v6, %v385_v5  ;;  %v425_v5 = vld [vmem:[#allocation2 + $0x918] sm:$0xff] }
  0xd7   :  { %2822 = vmatpush1.bf16.msra.mxu0 %v2821_v26  ;;  %v2843_v26 = vpack.c.bf16 %v355_v19, %v351_v18  ;;  %v393_v18 = vld [vmem:[#allocation2 + $0x818] sm:$0xff]  ;;  %v3117_v21 = vpack.c.bf16 %v388_v15, %v384_v13  ;;  %v424_v13 = vld [vmem:[#allocation2 + $0x910] sm:$0xff] }
  0xd8   :  { %3078 = vmatpush1.bf16.msra.mxu1 %v3077_v27  ;;  %2824 = vmatprep.subr.bf16.mxu0 %v2823_v28  ;;  %v350_v27 = vld [vmem:[#allocation2 + $0x6c0] sm:$0xff]  ;;  %v397_v19 = vld [vmem:[#allocation2 + $0x838] sm:$0xff]  ;;  %v428_v15 = vld [vmem:[#allocation2 + $0x930] sm:$0xff] }
  0xd9   :  { %3080 = vmatprep.subr.bf16.mxu1 %v3079_v32  ;;  %v354_v28 = vld [vmem:[#allocation2 + $0x6e0] sm:$0xff]  ;;  %v359_v32 = vld [vmem:[#allocation2 + $0x708] sm:$0xff]  ;;  %v429_v6 = vld [vmem:[#allocation2 + $0x938] sm:$0xff] }
  0xda   :  { %v2845_v36 = vpack.c.bf16 %v354_v28, %v350_v27  ;;  %v392_v27 = vld [vmem:[#allocation2 + $0x810] sm:$0xff]  ;;  %v3119_v28 = vpack.c.bf16 %v397_v19, %v393_v18  ;;  %v433_v18 = vld [vmem:[#allocation2 + $0x958] sm:$0xff] }
  0xdb   :  { %2826 = vmatpush1.bf16.msra.mxu0 %v2825_v38  ;;  %v2847_v38 = vpack.c.bf16 %v363_v33, %v359_v32  ;;  %v401_v32 = vld [vmem:[#allocation2 + $0x858] sm:$0xff] }
  0xdc   :  { %3082 = vmatpush1.bf16.msra.mxu1 %v3081_v39  ;;  %2828 = vmatprep.subr.bf16.mxu0 %v2827_v40  ;;  %v358_v39 = vld [vmem:[#allocation2 + $0x700] sm:$0xff]  ;;  %v405_v33 = vld [vmem:[#allocation2 + $0x878] sm:$0xff] }
  0xdd   :  { %3084 = vmatprep.subr.bf16.mxu1 %v3083_v44  ;;  %v362_v40 = vld [vmem:[#allocation2 + $0x720] sm:$0xff]  ;;  %v367_v44 = vld [vmem:[#allocation2 + $0x748] sm:$0xff]  ;;  %v437_v19 = vld [vmem:[#allocation2 + $0x978] sm:$0xff] }
  0xde   :  { %v2849_v48 = vpack.c.bf16 %v362_v40, %v358_v39  ;;  %v402_v39 = vld [vmem:[#allocation2 + $0x860] sm:$0xff]  ;;  %v400_v40 = vld [vmem:[#allocation2 + $0x850] sm:$0xff]  ;;  %v453_v47 = vld [vmem:[#allocation2 + $0x9f8] sm:$0xff] }
  0xdf   :  { %2830 = vmatpush1.bf16.msra.mxu0 %v2829_v50  ;;  %v2851_v50 = vpack.c.bf16 %v371_v45, %v367_v44  ;;  %v407_v44 = vld [vmem:[#allocation2 + $0x888] sm:$0xff] }
  0xe0   :  { %3086 = vmatpush1.bf16.msra.mxu1 %v3085_v51  ;;  %2832 = vmatprep.subr.bf16.mxu0 %v2831_v52  ;;  %v366_v51 = vld [vmem:[#allocation2 + $0x740] sm:$0xff]  ;;  %v411_v45 = vld [vmem:[#allocation2 + $0x8a8] sm:$0xff] }
  0xe1   :  { %3088 = vmatprep.subr.bf16.mxu1 %v3087_v55  ;;  %v370_v52 = vld [vmem:[#allocation2 + $0x760] sm:$0xff]  ;;  %v375_v55 = vld [vmem:[#allocation2 + $0x788] sm:$0xff] }
  0xe2   :  { %v2853_v59 = vpack.c.bf16 %v370_v52, %v366_v51  ;;  %v2871_v51 = vpack.c.bf16 %v411_v45, %v407_v44  ;;  %v406_v52 = vld [vmem:[#allocation2 + $0x880] sm:$0xff]  ;;  %v447_v44 = vld [vmem:[#allocation2 + $0x9c8] sm:$0xff] }
  0xe3   :  { %2834 = vmatpush1.bf16.msra.mxu0 %v2833_v61  ;;  %v2855_v61 = vpack.c.bf16 %v379_v56, %v375_v55  ;;  %v412_v55 = vld [vmem:[#allocation2 + $0x8b0] sm:$0xff]  ;;  %v415_v56 = vld [vmem:[#allocation2 + $0x8c8] sm:$0xff] }
  0xe4   :  { %3090 = vmatpush1.bf16.msra.mxu1 %v3089_v62  ;;  %2836 = vmatprep.subr.bf16.mxu0 %v2835_v63  ;;  %v374_v62 = vld [vmem:[#allocation2 + $0x780] sm:$0xff]  ;;  %v451_v45 = vld [vmem:[#allocation2 + $0x9e8] sm:$0xff] }
  0xe5   :  { %3092 = vmatprep.subr.bf16.mxu1 %v3091_v3  ;;  %v378_v63 = vld [vmem:[#allocation2 + $0x7a0] sm:$0xff]  ;;  %v383_v3 = vld [vmem:[#allocation2 + $0x7c8] sm:$0xff] }
  0xe6   :  { %v2857_v7 = vpack.c.bf16 %v378_v63, %v374_v62  ;;  %v414_v62 = vld [vmem:[#allocation2 + $0x8c0] sm:$0xff] }
  0xe7   :  { %2838 = vmatpush1.bf16.msra.mxu0 %v2837_v9  ;;  %v2859_v9 = vpack.c.bf16 %v387_v4, %v383_v3  ;;  %v418_v63 = vld [vmem:[#allocation2 + $0x8e0] sm:$0xff]  ;;  %v423_v3 = vld [vmem:[#allocation2 + $0x908] sm:$0xff] }
  0xe8   :  { %3094 = vmatpush1.bf16.msra.mxu1 %v3093_v10  ;;  %2840 = vmatprep.subr.bf16.mxu0 %v2839_v12  ;;  %v382_v10 = vld [vmem:[#allocation2 + $0x7c0] sm:$0xff]  ;;  %v427_v4 = vld [vmem:[#allocation2 + $0x928] sm:$0xff] }
  0xe9   :  { %3096 = vmatprep.subr.bf16.mxu1 %v3095_v16  ;;  %v386_v12 = vld [vmem:[#allocation2 + $0x7e0] sm:$0xff]  ;;  %v391_v16 = vld [vmem:[#allocation2 + $0x808] sm:$0xff] }
  0xea   :  { %v2861_v20 = vpack.c.bf16 %v386_v12, %v382_v10  ;;  %v422_v10 = vld [vmem:[#allocation2 + $0x900] sm:$0xff] }
  0xeb   :  { %2842 = vmatpush1.bf16.msra.mxu0 %v2841_v23  ;;  %v2863_v23 = vpack.c.bf16 %v395_v17, %v391_v16  ;;  %v426_v12 = vld [vmem:[#allocation2 + $0x920] sm:$0xff]  ;;  %v431_v16 = vld [vmem:[#allocation2 + $0x948] sm:$0xff] }
  0xec   :  { %3098 = vmatpush1.bf16.msra.mxu1 %v3097_v24  ;;  %2844 = vmatprep.subr.bf16.mxu0 %v2843_v26  ;;  %v390_v24 = vld [vmem:[#allocation2 + $0x800] sm:$0xff]  ;;  %v435_v17 = vld [vmem:[#allocation2 + $0x968] sm:$0xff] }
  0xed   :  { %3100 = vmatprep.subr.bf16.mxu1 %v3099_v30  ;;  %v394_v26 = vld [vmem:[#allocation2 + $0x820] sm:$0xff]  ;;  %v399_v30 = vld [vmem:[#allocation2 + $0x848] sm:$0xff] }
  0xee   :  { %v2865_v34 = vpack.c.bf16 %v394_v26, %v390_v24  ;;  %v430_v24 = vld [vmem:[#allocation2 + $0x940] sm:$0xff] }
  0xef   :  { %2846 = vmatpush1.bf16.msra.mxu0 %v2845_v36  ;;  %v3121_v36 = vpack.c.bf16 %v396_v29, %v392_v27  ;;  %v434_v26 = vld [vmem:[#allocation2 + $0x960] sm:$0xff]  ;;  %v432_v27 = vld [vmem:[#allocation2 + $0x950] sm:$0xff] }
  0xf0   :  { %3102 = vmatpush1.bf16.msra.mxu1 %v3101_v37  ;;  %2848 = vmatprep.subr.bf16.mxu0 %v2847_v38  ;;  %v2867_v37 = vpack.c.bf16 %v403_v31, %v399_v30  ;;  %v398_v38 = vld [vmem:[#allocation2 + $0x840] sm:$0xff]  ;;  %v436_v29 = vld [vmem:[#allocation2 + $0x970] sm:$0xff]  ;;  %v439_v30 = vld [vmem:[#allocation2 + $0x988] sm:$0xff] }
  0xf1   :  { %3104 = vmatprep.subr.bf16.mxu1 %v3103_v42  ;;  %v3123_v42 = vpack.c.bf16 %v405_v33, %v401_v32  ;;  %v443_v31 = vld [vmem:[#allocation2 + $0x9a8] sm:$0xff]  ;;  %v441_v32 = vld [vmem:[#allocation2 + $0x998] sm:$0xff] }
  0xf2   :  { %v445_v33 = vld [vmem:[#allocation2 + $0x9b8] sm:$0xff] }
  0xf3   :  { %2850 = vmatpush1.bf16.msra.mxu0 %v2849_v48  ;;  %v680_v48 = vcombine.high %v3983_v41, %v3983_v41 }
  0xf4   :  { %3106 = vmatpush1.bf16.msra.mxu1 %v3105_v49  ;;  %2852 = vmatprep.subr.bf16.mxu0 %v2851_v50  ;;  %v2869_v49 = vpack.c.bf16 %v402_v39, %v398_v38  ;;  %v3125_v50 = vpack.c.bf16 %v404_v43, %v400_v40  ;;  %v438_v38 = vld [vmem:[#allocation2 + $0x980] sm:$0xff]  ;;  %v440_v40 = vld [vmem:[#allocation2 + $0x990] sm:$0xff] }
  0xf5   :  { %3108 = vmatprep.subr.bf16.mxu1 %v3107_v53  ;;  %v408_v53 = vld [vmem:[#allocation2 + $0x890] sm:$0xff]  ;;  %v442_v39 = vld [vmem:[#allocation2 + $0x9a0] sm:$0xff] }
  0xf6   :  { %v444_v43 = vld [vmem:[#allocation2 + $0x9b0] sm:$0xff] }
  0xf7   :  { %2854 = vmatpush1.bf16.msra.mxu0 %v2853_v59  ;;  %v421_v59 = vld [vmem:[#allocation2 + $0x8f8] sm:$0xff] }
  0xf8   :  { %3110 = vmatpush1.bf16.msra.mxu1 %v3109_v60  ;;  %2856 = vmatprep.subr.bf16.mxu0 %v2855_v61  ;;  %v2873_v60 = vpack.c.bf16 %v410_v25, %v406_v52  ;;  %v2875_v61 = vpack.c.bf16 %v419_v57, %v415_v56  ;;  %v450_v52 = vld [vmem:[#allocation2 + $0x9e0] sm:$0xff]  ;;  %v448_v25 = vld [vmem:[#allocation2 + $0x9d0] sm:$0xff]  ;;  %v459_v56 = vld [vmem:[#allocation2 + $0xa28] sm:$0xff] }
  0xf9   :  { %3112 = vmatprep.subr.bf16.mxu1 %v3111_v1  ;;  %v3131_v1 = vpack.c.bf16 %v421_v59, %v417_v58  ;;  %v457_v57 = vld [vmem:[#allocation2 + $0xa18] sm:$0xff] }
  0xfa   :  { %v461_v58 = vld [vmem:[#allocation2 + $0xa38] sm:$0xff] }
  0xfb   :  { %2858 = vmatpush1.bf16.msra.mxu0 %v2857_v7  ;;  %v2877_v7 = vpack.c.bf16 %v418_v63, %v414_v62  ;;  %v458_v62 = vld [vmem:[#allocation2 + $0xa20] sm:$0xff]  ;;  %v456_v63 = vld [vmem:[#allocation2 + $0xa10] sm:$0xff] }
  0xfc   :  { %3114 = vmatpush1.bf16.msra.mxu1 %v3113_v8  ;;  %2860 = vmatprep.subr.bf16.mxu0 %v2859_v9  ;;  %v3133_v8 = vpack.c.bf16 %v420_v2, %v416_v0  ;;  %v2879_v9 = vpack.c.bf16 %v427_v4, %v423_v3  ;;  %v3151_v0 = vpack.c.bf16 %v461_v58, %v457_v57  ;;  %v463_v2 = vld [vmem:[#allocation2 + $0xa48] sm:$0xff]  ;;  %v465_v4 = vld [vmem:[#allocation2 + $0xa58] sm:$0xff] }
  0xfd   :  { %3116 = vmatprep.subr.bf16.mxu1 %v3115_v14  ;;  %v3135_v14 = vpack.c.bf16 %v429_v6, %v425_v5  ;;  %v467_v3 = vld [vmem:[#allocation2 + $0xa68] sm:$0xff]  ;;  %v469_v5 = vld [vmem:[#allocation2 + $0xa78] sm:$0xff] }
  0xfe   :  { %v501_v57 = vld [vmem:[#allocation2 + $0xb78] sm:$0xff] }
  0xff   :  { %2862 = vmatpush1.bf16.msra.mxu0 %v2861_v20  ;;  %v2881_v20 = vpack.c.bf16 %v426_v12, %v422_v10  ;;  %v466_v10 = vld [vmem:[#allocation2 + $0xa60] sm:$0xff]  ;;  %v464_v12 = vld [vmem:[#allocation2 + $0xa50] sm:$0xff] }
 0x100   :  { %3118 = vmatpush1.bf16.msra.mxu1 %v3117_v21  ;;  %2864 = vmatprep.subr.bf16.mxu0 %v2863_v23  ;;  %v3137_v21 = vpack.c.bf16 %v428_v15, %v424_v13  ;;  %v2883_v23 = vpack.c.bf16 %v435_v17, %v431_v16  ;;  %v3155_v13 = vpack.c.bf16 %v469_v5, %v465_v4  ;;  %v471_v15 = vld [vmem:[#allocation2 + $0xa88] sm:$0xff]  ;;  %v473_v17 = vld [vmem:[#allocation2 + $0xa98] sm:$0xff] }
 0x101   :  { %3120 = vmatprep.subr.bf16.mxu1 %v3119_v28  ;;  %v3139_v28 = vpack.c.bf16 %v437_v19, %v433_v18  ;;  %v475_v16 = vld [vmem:[#allocation2 + $0xaa8] sm:$0xff]  ;;  %v477_v18 = vld [vmem:[#allocation2 + $0xab8] sm:$0xff] }
 0x102   :  { %826 = vmatmul.mubr.f32.vlgmr.msra.gmra.mrb[0].mxu0 %v3970_v22  ;;  %v509_v4 = vld [vmem:[#allocation2 + $0xbb8] sm:$0xff] }
 0x103   :  { %2866 = vmatpush1.bf16.msra.mxu0 %v2865_v34  ;;  %1110 = vmatmul.mubr.f32.vlgmr.msra.gmra.mrb[0].mxu1 %v3970_v22  ;;  %v3129_v22 = vpack.c.bf16 %v412_v55, %v408_v53  ;;  %v2885_v34 = vpack.c.bf16 %v434_v26, %v430_v24  ;;  %v3147_v53 = vpack.c.bf16 %v453_v47, %v449_v46  ;;  %v455_v55 = vld [vmem:[#allocation2 + $0xa08] sm:$0xff]  ;;  %v474_v24 = vld [vmem:[#allocation2 + $0xaa0] sm:$0xff]  ;;  %v472_v26 = vld [vmem:[#allocation2 + $0xa90] sm:$0xff] }
 0x104   :  { %3122 = vmatpush1.bf16.msra.mxu1 %v3121_v36  ;;  %2868 = vmatprep.subr.bf16.mxu0 %v2867_v37  ;;  %v3141_v36 = vpack.c.bf16 %v436_v29, %v432_v27  ;;  %v2887_v37 = vpack.c.bf16 %v443_v31, %v439_v30  ;;  %v3159_v27 = vpack.c.bf16 %v477_v18, %v473_v17  ;;  %v479_v29 = vld [vmem:[#allocation2 + $0xac8] sm:$0xff]  ;;  %v481_v31 = vld [vmem:[#allocation2 + $0xad8] sm:$0xff] }
 0x105   :  { %3124 = vmatprep.subr.bf16.mxu1 %v3123_v42  ;;  %896 = vmatprep.mubr.f32.mxu0 %v680_v48  ;;  %v3143_v42 = vpack.c.bf16 %v445_v33, %v441_v32  ;;  %v483_v30 = vld [vmem:[#allocation2 + $0xae8] sm:$0xff]  ;;  %v485_v32 = vld [vmem:[#allocation2 + $0xaf8] sm:$0xff] }
 0x106   :  { %1180 = vmatprep.mubr.f32.mxu1 %v680_v48  ;;  %v2889_v48 = vpack.c.bf16 %v442_v39, %v438_v38  ;;  %v482_v38 = vld [vmem:[#allocation2 + $0xae0] sm:$0xff]  ;;  %v480_v39 = vld [vmem:[#allocation2 + $0xad0] sm:$0xff]  ;;  %v493_v46 = vld [vmem:[#allocation2 + $0xb38] sm:$0xff] }
 0x107   :  { %2870 = vmatpush1.bf16.msra.mxu0 %v2869_v49  ;;  %v3145_v49 = vpack.c.bf16 %v444_v43, %v440_v40  ;;  %v3163_v40 = vpack.c.bf16 %v485_v32, %v481_v31  ;;  %v487_v43 = vld [vmem:[#allocation2 + $0xb08] sm:$0xff]  ;;  %v517_v17 = vld [vmem:[#allocation2 + $0xbf8] sm:$0xff] }
 0x108   :  { %3126 = vmatpush1.bf16.msra.mxu1 %v3125_v50  ;;  %2872 = vmatprep.subr.bf16.mxu0 %v2871_v51  ;;  %v2891_v50 = vpack.c.bf16 %v451_v45, %v447_v44  ;;  %v446_v51 = vld [vmem:[#allocation2 + $0x9c0] sm:$0xff]  ;;  %v491_v44 = vld [vmem:[#allocation2 + $0xb28] sm:$0xff]  ;;  %v489_v45 = vld [vmem:[#allocation2 + $0xb18] sm:$0xff] }
 0x109   :  { %3128 = vmatprep.subr.bf16.mxu1 %v3127_v54  ;;  %v452_v54 = vld [vmem:[#allocation2 + $0x9f0] sm:$0xff]  ;;  %v2893_v59 = vpack.c.bf16 %v450_v52, %v446_v51  ;;  %v490_v51 = vld [vmem:[#allocation2 + $0xb20] sm:$0xff]  ;;  %v521_v31 = vld [vmem:[#allocation2 + $0xc18] sm:$0xff] }
 0x10a   :  { %v488_v52 = vld [vmem:[#allocation2 + $0xb10] sm:$0xff]  ;;  %v525_v32 = vld [vmem:[#allocation2 + $0xc38] sm:$0xff] }
 0x10b   :  { %2874 = vmatpush1.bf16.msra.mxu0 %v2873_v60  ;;  %v3149_v60 = vpack.c.bf16 %v452_v54, %v448_v25  ;;  %v3167_v25 = vpack.c.bf16 %v493_v46, %v489_v45  ;;  %v495_v54 = vld [vmem:[#allocation2 + $0xb48] sm:$0xff]  ;;  %v533_v46 = vld [vmem:[#allocation2 + $0xc78] sm:$0xff] }
 0x10c   :  { %3130 = vmatpush1.bf16.msra.mxu1 %v3129_v22  ;;  %2876 = vmatprep.subr.bf16.mxu0 %v2875_v61  ;;  %v2895_v22 = vpack.c.bf16 %v459_v56, %v455_v55  ;;  %v454_v61 = vld [vmem:[#allocation2 + $0xa00] sm:$0xff]  ;;  %v499_v55 = vld [vmem:[#allocation2 + $0xb68] sm:$0xff]  ;;  %v497_v56 = vld [vmem:[#allocation2 + $0xb58] sm:$0xff] }
 0x10d   :  { %3132 = vmatprep.subr.bf16.mxu1 %v3131_v1  ;;  %v460_v1 = vld [vmem:[#allocation2 + $0xa30] sm:$0xff]  ;;  %v2897_v6 = vpack.c.bf16 %v458_v62, %v454_v61  ;;  %v498_v61 = vld [vmem:[#allocation2 + $0xb60] sm:$0xff] }
 0x10e   :  { %v496_v62 = vld [vmem:[#allocation2 + $0xb50] sm:$0xff] }
 0x10f   :  { %2878 = vmatpush1.bf16.msra.mxu0 %v2877_v7  ;;  %v3153_v7 = vpack.c.bf16 %v460_v1, %v456_v63  ;;  %v3171_v63 = vpack.c.bf16 %v501_v57, %v497_v56  ;;  %v503_v1 = vld [vmem:[#allocation2 + $0xb88] sm:$0xff]  ;;  %v537_v56 = vld [vmem:[#allocation2 + $0xc98] sm:$0xff] }
 0x110   :  { %3134 = vmatpush1.bf16.msra.mxu1 %v3133_v8  ;;  %2880 = vmatprep.subr.bf16.mxu0 %v2879_v9  ;;  %v2899_v8 = vpack.c.bf16 %v467_v3, %v463_v2  ;;  %v462_v9 = vld [vmem:[#allocation2 + $0xa40] sm:$0xff]  ;;  %v507_v2 = vld [vmem:[#allocation2 + $0xba8] sm:$0xff]  ;;  %v505_v3 = vld [vmem:[#allocation2 + $0xb98] sm:$0xff] }
 0x111   :  { %3136 = vmatprep.subr.bf16.mxu1 %v3135_v14  ;;  %v468_v14 = vld [vmem:[#allocation2 + $0xa70] sm:$0xff]  ;;  %v2901_v19 = vpack.c.bf16 %v466_v10, %v462_v9  ;;  %v506_v9 = vld [vmem:[#allocation2 + $0xba0] sm:$0xff]  ;;  %v541_v57 = vld [vmem:[#allocation2 + $0xcb8] sm:$0xff] }
 0x112   :  { %v504_v10 = vld [vmem:[#allocation2 + $0xb90] sm:$0xff] }
 0x113   :  { %2882 = vmatpush1.bf16.msra.mxu0 %v2881_v20  ;;  %v3157_v20 = vpack.c.bf16 %v468_v14, %v464_v12  ;;  %v3175_v12 = vpack.c.bf16 %v509_v4, %v505_v3  ;;  %v511_v14 = vld [vmem:[#allocation2 + $0xbc8] sm:$0xff]  ;;  %v545_v3 = vld [vmem:[#allocation2 + $0xcd8] sm:$0xff] }
 0x114   :  { %3138 = vmatpush1.bf16.msra.mxu1 %v3137_v21  ;;  %2884 = vmatprep.subr.bf16.mxu0 %v2883_v23  ;;  %v2903_v21 = vpack.c.bf16 %v475_v16, %v471_v15  ;;  %v470_v23 = vld [vmem:[#allocation2 + $0xa80] sm:$0xff]  ;;  %v515_v15 = vld [vmem:[#allocation2 + $0xbe8] sm:$0xff]  ;;  %v513_v16 = vld [vmem:[#allocation2 + $0xbd8] sm:$0xff] }
 0x115   :  { %3140 = vmatprep.subr.bf16.mxu1 %v3139_v28  ;;  %v476_v28 = vld [vmem:[#allocation2 + $0xab0] sm:$0xff]  ;;  %v2905_v33 = vpack.c.bf16 %v474_v24, %v470_v23  ;;  %v514_v23 = vld [vmem:[#allocation2 + $0xbe0] sm:$0xff]  ;;  %v549_v4 = vld [vmem:[#allocation2 + $0xcf8] sm:$0xff] }
 0x116   :  { %v512_v24 = vld [vmem:[#allocation2 + $0xbd0] sm:$0xff] }
 0x117   :  { %2886 = vmatpush1.bf16.msra.mxu0 %v2885_v34  ;;  %v3161_v34 = vpack.c.bf16 %v476_v28, %v472_v26  ;;  %v3179_v26 = vpack.c.bf16 %v517_v17, %v513_v16  ;;  %v519_v28 = vld [vmem:[#allocation2 + $0xc08] sm:$0xff]  ;;  %v557_v16 = vld [vmem:[#allocation2 + $0xd38] sm:$0xff] }
 0x118   :  { %3142 = vmatpush1.bf16.msra.mxu1 %v3141_v36  ;;  %2888 = vmatprep.subr.bf16.mxu0 %v2887_v37  ;;  %v2907_v36 = vpack.c.bf16 %v483_v30, %v479_v29  ;;  %v478_v37 = vld [vmem:[#allocation2 + $0xac0] sm:$0xff]  ;;  %v523_v29 = vld [vmem:[#allocation2 + $0xc28] sm:$0xff]  ;;  %v665_v30 = vcombine.high %v3979_v35, %v3979_v35  ;;  %v529_v35 = vld [vmem:[#allocation2 + $0xc58] sm:$0xff] }
 0x119   :  { %3144 = vmatprep.subr.bf16.mxu1 %v3143_v42  ;;  %v484_v42 = vld [vmem:[#allocation2 + $0xaf0] sm:$0xff]  ;;  %v2909_v47 = vpack.c.bf16 %v482_v38, %v478_v37  ;;  %v518_v37 = vld [vmem:[#allocation2 + $0xc00] sm:$0xff] }
 0x11a   :  { %v522_v38 = vld [vmem:[#allocation2 + $0xc20] sm:$0xff]  ;;  %v3992_v45 = vrot.slane %v665_v30, %v3954_v11  ;;  %v565_v30 = vld [vmem:[#allocation2 + $0xd78] sm:$0xff] }
 0x11b   :  { %2890 = vmatpush1.bf16.msra.mxu0 %v2889_v48  ;;  %v3165_v48 = vpack.c.bf16 %v484_v42, %v480_v39  ;;  %v520_v39 = vld [vmem:[#allocation2 + $0xc10] sm:$0xff] }
 0x11c   :  { %3146 = vmatpush1.bf16.msra.mxu1 %v3145_v49  ;;  %2892 = vmatprep.subr.bf16.mxu0 %v2891_v50  ;;  %v2911_v49 = vpack.c.bf16 %v491_v44, %v487_v43  ;;  %v486_v50 = vld [vmem:[#allocation2 + $0xb00] sm:$0xff]  ;;  %v524_v42 = vld [vmem:[#allocation2 + $0xc30] sm:$0xff]  ;;  %v527_v43 = vld [vmem:[#allocation2 + $0xc48] sm:$0xff]  ;;  %v681_v11 = vcombine.high %v3992_v45, %v3992_v45 }
 0x11d   :  { %3148 = vmatprep.subr.bf16.mxu1 %v3147_v53  ;;  %v492_v53 = vld [vmem:[#allocation2 + $0xb30] sm:$0xff]  ;;  %v2913_v58 = vpack.c.bf16 %v490_v51, %v486_v50  ;;  %v531_v44 = vld [vmem:[#allocation2 + $0xc68] sm:$0xff]  ;;  %v526_v50 = vld [vmem:[#allocation2 + $0xc40] sm:$0xff] }
 0x11e   :  { %v530_v51 = vld [vmem:[#allocation2 + $0xc60] sm:$0xff] }
 0x11f   :  { %2894 = vmatpush1.bf16.msra.mxu0 %v2893_v59  ;;  %v3169_v59 = vpack.c.bf16 %v492_v53, %v488_v52  ;;  %v528_v52 = vld [vmem:[#allocation2 + $0xc50] sm:$0xff] }
 0x120   :  { %3150 = vmatpush1.bf16.msra.mxu1 %v3149_v60  ;;  %2896 = vmatprep.subr.bf16.mxu0 %v2895_v22  ;;  %v2915_v60 = vpack.c.bf16 %v499_v55, %v495_v54  ;;  %v494_v22 = vld [vmem:[#allocation2 + $0xb40] sm:$0xff]  ;;  %v532_v53 = vld [vmem:[#allocation2 + $0xc70] sm:$0xff]  ;;  %v535_v54 = vld [vmem:[#allocation2 + $0xc88] sm:$0xff] }
 0x121   :  { %3152 = vmatprep.subr.bf16.mxu1 %v3151_v0  ;;  %v500_v0 = vld [vmem:[#allocation2 + $0xb70] sm:$0xff]  ;;  %v2917_v5 = vpack.c.bf16 %v498_v61, %v494_v22  ;;  %v539_v55 = vld [vmem:[#allocation2 + $0xca8] sm:$0xff]  ;;  %v534_v22 = vld [vmem:[#allocation2 + $0xc80] sm:$0xff] }
 0x122   :  { %v538_v61 = vld [vmem:[#allocation2 + $0xca0] sm:$0xff] }
 0x123   :  { %2898 = vmatpush1.bf16.msra.mxu0 %v2897_v6  ;;  %v3173_v6 = vpack.c.bf16 %v500_v0, %v496_v62  ;;  %v536_v62 = vld [vmem:[#allocation2 + $0xc90] sm:$0xff] }
 0x124   :  { %3154 = vmatpush1.bf16.msra.mxu1 %v3153_v7  ;;  %2900 = vmatprep.subr.bf16.mxu0 %v2899_v8  ;;  %v2919_v7 = vpack.c.bf16 %v507_v2, %v503_v1  ;;  %v502_v8 = vld [vmem:[#allocation2 + $0xb80] sm:$0xff]  ;;  %v540_v0 = vld [vmem:[#allocation2 + $0xcb0] sm:$0xff]  ;;  %v543_v1 = vld [vmem:[#allocation2 + $0xcc8] sm:$0xff] }
 0x125   :  { %3156 = vmatprep.subr.bf16.mxu1 %v3155_v13  ;;  %v508_v13 = vld [vmem:[#allocation2 + $0xbb0] sm:$0xff]  ;;  %v2921_v18 = vpack.c.bf16 %v506_v9, %v502_v8  ;;  %v547_v2 = vld [vmem:[#allocation2 + $0xce8] sm:$0xff]  ;;  %v546_v8 = vld [vmem:[#allocation2 + $0xce0] sm:$0xff] }
 0x126   :  { %v544_v9 = vld [vmem:[#allocation2 + $0xcd0] sm:$0xff] }
 0x127   :  { %2902 = vmatpush1.bf16.msra.mxu0 %v2901_v19  ;;  %v3177_v19 = vpack.c.bf16 %v508_v13, %v504_v10  ;;  %v3195_v10 = vpack.c.bf16 %v549_v4, %v545_v3  ;;  %v551_v13 = vld [vmem:[#allocation2 + $0xd08] sm:$0xff] }
 0x128   :  { %3158 = vmatpush1.bf16.msra.mxu1 %v3157_v20  ;;  %2904 = vmatprep.subr.bf16.mxu0 %v2903_v21  ;;  %v2923_v20 = vpack.c.bf16 %v515_v15, %v511_v14  ;;  %v510_v21 = vld [vmem:[#allocation2 + $0xbc0] sm:$0xff]  ;;  %v555_v14 = vld [vmem:[#allocation2 + $0xd28] sm:$0xff]  ;;  %v553_v15 = vld [vmem:[#allocation2 + $0xd18] sm:$0xff] }
 0x129   :  { %3160 = vmatprep.subr.bf16.mxu1 %v3159_v27  ;;  %v516_v27 = vld [vmem:[#allocation2 + $0xbf0] sm:$0xff] }
 0x12b   :  { %2906 = vmatpush1.bf16.msra.mxu0 %v2905_v33  ;;  %v2925_v33 = vpack.c.bf16 %v514_v23, %v510_v21  ;;  %v554_v21 = vld [vmem:[#allocation2 + $0xd20] sm:$0xff]  ;;  %v552_v23 = vld [vmem:[#allocation2 + $0xd10] sm:$0xff] }
 0x12c   :  { %3162 = vmatpush1.bf16.msra.mxu1 %v3161_v34  ;;  %2908 = vmatprep.subr.bf16.mxu0 %v2907_v36  ;;  %v3181_v34 = vpack.c.bf16 %v516_v27, %v512_v24  ;;  %v2927_v36 = vpack.c.bf16 %v523_v29, %v519_v28  ;;  %v3199_v24 = vpack.c.bf16 %v557_v16, %v553_v15  ;;  %v559_v27 = vld [vmem:[#allocation2 + $0xd48] sm:$0xff]  ;;  %v561_v29 = vld [vmem:[#allocation2 + $0xd58] sm:$0xff] }
 0x12d   :  { %3164 = vmatprep.subr.bf16.mxu1 %v3163_v40  ;;  %v3183_v40 = vpack.c.bf16 %v525_v32, %v521_v31  ;;  %v563_v28 = vld [vmem:[#allocation2 + $0xd68] sm:$0xff] }
 0x12f   :  { %2910 = vmatpush1.bf16.msra.mxu0 %v2909_v47  ;;  %v2929_v47 = vpack.c.bf16 %v522_v38, %v518_v37  ;;  %v560_v37 = vld [vmem:[#allocation2 + $0xd50] sm:$0xff]  ;;  %v3203_v38 = vpack.c.bf16 %v565_v30, %v561_v29 }
 0x130   :  { %3166 = vmatpush1.bf16.msra.mxu1 %v3165_v48  ;;  %2912 = vmatprep.subr.bf16.mxu0 %v2911_v49  ;;  %v3185_v48 = vpack.c.bf16 %v524_v42, %v520_v39  ;;  %v2931_v49 = vpack.c.bf16 %v531_v44, %v527_v43  ;;  %v564_v39 = vld [vmem:[#allocation2 + $0xd70] sm:$0xff]  ;;  %v571_v42 = vld [vmem:[#allocation2 + $0xda8] sm:$0xff]  ;;  %v569_v43 = vld [vmem:[#allocation2 + $0xd98] sm:$0xff] }
 0x131   :  { %3168 = vmatprep.subr.bf16.mxu1 %v3167_v25  ;;  %v3187_v25 = vpack.c.bf16 %v533_v46, %v529_v35  ;;  %v573_v44 = vld [vmem:[#allocation2 + $0xdb8] sm:$0xff]  ;;  %v3205_v46 = vpack.c.bf16 %v564_v39, %v560_v37  ;;  %v607_v37 = vld [vmem:[#allocation2 + $0xec8] sm:$0xff] }
 0x132   :  { %v609_v39 = vld [vmem:[#allocation2 + $0xed8] sm:$0xff] }
 0x133   :  { %2914 = vmatpush1.bf16.msra.mxu0 %v2913_v58  ;;  %v2933_v58 = vpack.c.bf16 %v530_v51, %v526_v50  ;;  %v568_v50 = vld [vmem:[#allocation2 + $0xd90] sm:$0xff]  ;;  %v3207_v51 = vpack.c.bf16 %v573_v44, %v569_v43 }
 0x134   :  { %3170 = vmatpush1.bf16.msra.mxu1 %v3169_v59  ;;  %2916 = vmatprep.subr.bf16.mxu0 %v2915_v60  ;;  %v3189_v59 = vpack.c.bf16 %v532_v53, %v528_v52  ;;  %v2935_v60 = vpack.c.bf16 %v539_v55, %v535_v54  ;;  %v572_v52 = vld [vmem:[#allocation2 + $0xdb0] sm:$0xff]  ;;  %v579_v53 = vld [vmem:[#allocation2 + $0xde8] sm:$0xff]  ;;  %v577_v54 = vld [vmem:[#allocation2 + $0xdd8] sm:$0xff] }
 0x135   :  { %3172 = vmatprep.subr.bf16.mxu1 %v3171_v63  ;;  %v3191_v63 = vpack.c.bf16 %v541_v57, %v537_v56  ;;  %v581_v55 = vld [vmem:[#allocation2 + $0xdf8] sm:$0xff]  ;;  %v3209_v56 = vpack.c.bf16 %v572_v52, %v568_v50  ;;  %v615_v50 = vld [vmem:[#allocation2 + $0xf08] sm:$0xff] }
 0x136   :  { %v617_v52 = vld [vmem:[#allocation2 + $0xf18] sm:$0xff] }
 0x137   :  { %2918 = vmatpush1.bf16.msra.mxu0 %v2917_v5  ;;  %v2937_v5 = vpack.c.bf16 %v538_v61, %v534_v22  ;;  %v3211_v22 = vpack.c.bf16 %v581_v55, %v577_v54  ;;  %v580_v61 = vld [vmem:[#allocation2 + $0xdf0] sm:$0xff] }
 0x138   :  { %3174 = vmatpush1.bf16.msra.mxu1 %v3173_v6  ;;  %2920 = vmatprep.subr.bf16.mxu0 %v2919_v7  ;;  %v2939_v6 = vpack.c.bf16 %v547_v2, %v543_v1  ;;  %v542_v7 = vld [vmem:[#allocation2 + $0xcc0] sm:$0xff]  ;;  %v589_v1 = vld [vmem:[#allocation2 + $0xe38] sm:$0xff] }
 0x139   :  { %3176 = vmatprep.subr.bf16.mxu1 %v3175_v12  ;;  %v548_v12 = vld [vmem:[#allocation2 + $0xcf0] sm:$0xff]  ;;  %v2941_v17 = vpack.c.bf16 %v546_v8, %v542_v7 }
 0x13a   :  { %v588_v8 = vld [vmem:[#allocation2 + $0xe30] sm:$0xff] }
 0x13b   :  { %2922 = vmatpush1.bf16.msra.mxu0 %v2921_v18  ;;  %v3197_v18 = vpack.c.bf16 %v548_v12, %v544_v9  ;;  %v591_v9 = vld [vmem:[#allocation2 + $0xe48] sm:$0xff]  ;;  %v593_v12 = vld [vmem:[#allocation2 + $0xe58] sm:$0xff] }
 0x13c   :  { %3178 = vmatpush1.bf16.msra.mxu1 %v3177_v19  ;;  %2924 = vmatprep.subr.bf16.mxu0 %v2923_v20  ;;  %v2943_v19 = vpack.c.bf16 %v555_v14, %v551_v13  ;;  %v550_v20 = vld [vmem:[#allocation2 + $0xd00] sm:$0xff]  ;;  %v597_v13 = vld [vmem:[#allocation2 + $0xe78] sm:$0xff] }
 0x13d   :  { %3180 = vmatprep.subr.bf16.mxu1 %v3179_v26  ;;  %v556_v26 = vld [vmem:[#allocation2 + $0xd30] sm:$0xff]  ;;  %v2945_v31 = vpack.c.bf16 %v554_v21, %v550_v20  ;;  %v3219_v20 = vpack.c.bf16 %v597_v13, %v593_v12 }
 0x13e   :  { %v3201_v32 = vpack.c.bf16 %v556_v26, %v552_v23  ;;  %v596_v21 = vld [vmem:[#allocation2 + $0xe70] sm:$0xff]  ;;  %v599_v23 = vld [vmem:[#allocation2 + $0xe88] sm:$0xff]  ;;  %v601_v26 = vld [vmem:[#allocation2 + $0xe98] sm:$0xff] }
 0x13f   :  { %2926 = vmatpush1.bf16.msra.mxu0 %v2925_v33  ;;  %v2947_v33 = vpack.c.bf16 %v563_v28, %v559_v27  ;;  %v605_v27 = vld [vmem:[#allocation2 + $0xeb8] sm:$0xff] }
 0x140   :  { %3182 = vmatpush1.bf16.msra.mxu1 %v3181_v34  ;;  %2928 = vmatprep.subr.bf16.mxu0 %v2927_v36  ;;  %v558_v34 = vld [vmem:[#allocation2 + $0xd40] sm:$0xff] }
 0x141   :  { %3184 = vmatprep.subr.bf16.mxu1 %v3183_v40  ;;  %v562_v36 = vld [vmem:[#allocation2 + $0xd60] sm:$0xff]  ;;  %v567_v40 = vld [vmem:[#allocation2 + $0xd88] sm:$0xff] }
 0x142   :  { %897 = vmatmul.mubr.f32.vlgmr.msra.gmra.mrb[0].mxu0 %v3983_v41  ;;  %v2949_v35 = vpack.c.bf16 %v562_v36, %v558_v34  ;;  %v3223_v34 = vpack.c.bf16 %v605_v27, %v601_v26  ;;  %v604_v36 = vld [vmem:[#allocation2 + $0xeb0] sm:$0xff] }
 0x143   :  { %2930 = vmatpush1.bf16.msra.mxu0 %v2929_v47  ;;  %1181 = vmatmul.mubr.f32.vlgmr.msra.gmra.mrb[0].mxu1 %v3983_v41  ;;  %v3193_v41 = vpack.c.bf16 %v540_v0, %v536_v62  ;;  %v2951_v47 = vpack.c.bf16 %v571_v42, %v567_v40  ;;  %v583_v62 = vld [vmem:[#allocation2 + $0xe08] sm:$0xff]  ;;  %v585_v0 = vld [vmem:[#allocation2 + $0xe18] sm:$0xff] }
 0x144   :  { %3186 = vmatpush1.bf16.msra.mxu1 %v3185_v48  ;;  %2932 = vmatprep.subr.bf16.mxu0 %v2931_v49  ;;  %v566_v48 = vld [vmem:[#allocation2 + $0xd80] sm:$0xff]  ;;  %v3215_v7 = vpack.c.bf16 %v589_v1, %v585_v0  ;;  %v613_v40 = vld [vmem:[#allocation2 + $0xef8] sm:$0xff] }
 0x145   :  { %3188 = vmatprep.subr.bf16.mxu1 %v3187_v25  ;;  %967 = vmatprep.mubr.f32.mxu0 %v681_v11  ;;  %v570_v49 = vld [vmem:[#allocation2 + $0xda0] sm:$0xff]  ;;  %v575_v25 = vld [vmem:[#allocation2 + $0xdc8] sm:$0xff] }
 0x146   :  { %1251 = vmatprep.mubr.f32.mxu1 %v681_v11  ;;  %v2953_v11 = vpack.c.bf16 %v570_v49, %v566_v48  ;;  %v2955_v57 = vpack.c.bf16 %v579_v53, %v575_v25  ;;  %v3227_v48 = vpack.c.bf16 %v613_v40, %v609_v39  ;;  %v612_v49 = vld [vmem:[#allocation2 + $0xef0] sm:$0xff]  ;;  %v621_v25 = vld [vmem:[#allocation2 + $0xf38] sm:$0xff] }
 0x147   :  { %2934 = vmatpush1.bf16.msra.mxu0 %v2933_v58  ;;  %v574_v58 = vld [vmem:[#allocation2 + $0xdc0] sm:$0xff] }
 0x148   :  { %3190 = vmatpush1.bf16.msra.mxu1 %v3189_v59  ;;  %2936 = vmatprep.subr.bf16.mxu0 %v2935_v60  ;;  %v578_v59 = vld [vmem:[#allocation2 + $0xde0] sm:$0xff]  ;;  %v576_v60 = vld [vmem:[#allocation2 + $0xdd0] sm:$0xff] }
 0x149   :  { %3192 = vmatprep.subr.bf16.mxu1 %v3191_v63  ;;  %v587_v63 = vld [vmem:[#allocation2 + $0xe28] sm:$0xff]  ;;  %v2957_v2 = vpack.c.bf16 %v578_v59, %v574_v58  ;;  %v3213_v3 = vpack.c.bf16 %v580_v61, %v576_v60  ;;  %v3231_v58 = vpack.c.bf16 %v621_v25, %v617_v52  ;;  %v620_v59 = vld [vmem:[#allocation2 + $0xf30] sm:$0xff]  ;;  %v625_v61 = vld [vmem:[#allocation2 + $0xf58] sm:$0xff] }
 0x14a   :  { %v2959_v4 = vpack.c.bf16 %v587_v63, %v583_v62  ;;  %v623_v60 = vld [vmem:[#allocation2 + $0xf48] sm:$0xff]  ;;  %v629_v62 = vld [vmem:[#allocation2 + $0xf78] sm:$0xff] }
 0x14b   :  { %2938 = vmatpush1.bf16.msra.mxu0 %v2937_v5  ;;  %v582_v5 = vld [vmem:[#allocation2 + $0xe00] sm:$0xff] }
 0x14c   :  { %3194 = vmatpush1.bf16.msra.mxu1 %v3193_v41  ;;  %2940 = vmatprep.subr.bf16.mxu0 %v2939_v6  ;;  %v586_v41 = vld [vmem:[#allocation2 + $0xe20] sm:$0xff]  ;;  %v584_v6 = vld [vmem:[#allocation2 + $0xe10] sm:$0xff] }
 0x14d   :  { %3196 = vmatprep.subr.bf16.mxu1 %v3195_v10  ;;  %v595_v10 = vld [vmem:[#allocation2 + $0xe68] sm:$0xff]  ;;  %v2961_v14 = vpack.c.bf16 %v586_v41, %v582_v5  ;;  %v3217_v15 = vpack.c.bf16 %v588_v8, %v584_v6  ;;  %v3235_v5 = vpack.c.bf16 %v629_v62, %v625_v61  ;;  %v628_v41 = vld [vmem:[#allocation2 + $0xf70] sm:$0xff]  ;;  %v633_v8 = vld [vmem:[#allocation2 + $0xf98] sm:$0xff] }
 0x14e   :  { %v2963_v16 = vpack.c.bf16 %v595_v10, %v591_v9  ;;  %v631_v6 = vld [vmem:[#allocation2 + $0xf88] sm:$0xff]  ;;  %v637_v9 = vld [vmem:[#allocation2 + $0xfb8] sm:$0xff] }
 0x14f   :  { %2942 = vmatpush1.bf16.msra.mxu0 %v2941_v17  ;;  %v590_v17 = vld [vmem:[#allocation2 + $0xe40] sm:$0xff] }
 0x150   :  { %3198 = vmatpush1.bf16.msra.mxu1 %v3197_v18  ;;  %2944 = vmatprep.subr.bf16.mxu0 %v2943_v19  ;;  %v594_v18 = vld [vmem:[#allocation2 + $0xe60] sm:$0xff]  ;;  %v592_v19 = vld [vmem:[#allocation2 + $0xe50] sm:$0xff] }
 0x151   :  { %3200 = vmatprep.subr.bf16.mxu1 %v3199_v24  ;;  %v603_v24 = vld [vmem:[#allocation2 + $0xea8] sm:$0xff]  ;;  %v2965_v28 = vpack.c.bf16 %v594_v18, %v590_v17  ;;  %v3221_v29 = vpack.c.bf16 %v596_v21, %v592_v19  ;;  %v3239_v17 = vpack.c.bf16 %v637_v9, %v633_v8  ;;  %v636_v18 = vld [vmem:[#allocation2 + $0xfb0] sm:$0xff]  ;;  %v641_v21 = vld [vmem:[#allocation2 + $0xfd8] sm:$0xff] }
 0x152   :  { %v2967_v30 = vpack.c.bf16 %v603_v24, %v599_v23  ;;  %v639_v19 = vld [vmem:[#allocation2 + $0xfc8] sm:$0xff]  ;;  %v645_v23 = vld [vmem:[#allocation2 + $0xff8] sm:$0xff]  ;;  %v1268_v9 = vld [vmem:[%s4453_s2 + $0x30] sm:$0xff] }
 0x153   :  { %2946 = vmatpush1.bf16.msra.mxu0 %v2945_v31  ;;  %v598_v31 = vld [vmem:[#allocation2 + $0xe80] sm:$0xff] }
 0x154   :  { %3202 = vmatpush1.bf16.msra.mxu1 %v3201_v32  ;;  %2948 = vmatprep.subr.bf16.mxu0 %v2947_v33  ;;  %v602_v32 = vld [vmem:[#allocation2 + $0xea0] sm:$0xff]  ;;  %v600_v33 = vld [vmem:[#allocation2 + $0xe90] sm:$0xff] }
 0x155   :  { %3204 = vmatprep.subr.bf16.mxu1 %v3203_v38  ;;  %v611_v38 = vld [vmem:[#allocation2 + $0xee8] sm:$0xff]  ;;  %v2969_v42 = vpack.c.bf16 %v602_v32, %v598_v31  ;;  %v3225_v43 = vpack.c.bf16 %v604_v36, %v600_v33  ;;  %v3243_v31 = vpack.c.bf16 %v645_v23, %v641_v21  ;;  %v644_v32 = vld [vmem:[#allocation2 + $0xff0] sm:$0xff]  ;;  %v1278_v33 = vld [vmem:[%s4453_s2 + $0x80] sm:$0xff] }
 0x156   :  { %v2971_v44 = vpack.c.bf16 %v611_v38, %v607_v37  ;;  %v1310_v36 = vld [vmem:[%s4453_s2 + $0x180] sm:$0xff]  ;;  %v1311_v37 = vld [vmem:[%s4453_s2 + $0x188] sm:$0xff] }
 0x157   :  { %2950 = vmatpush1.bf16.msra.mxu0 %v2949_v35  ;;  %v606_v35 = vld [vmem:[#allocation2 + $0xec0] sm:$0xff] }
 0x158   :  { %3206 = vmatpush1.bf16.msra.mxu1 %v3205_v46  ;;  %2952 = vmatprep.subr.bf16.mxu0 %v2951_v47  ;;  %v610_v46 = vld [vmem:[#allocation2 + $0xee0] sm:$0xff]  ;;  %v608_v47 = vld [vmem:[#allocation2 + $0xed0] sm:$0xff] }
 0x159   :  { %3208 = vmatprep.subr.bf16.mxu1 %v3207_v51  ;;  %v619_v51 = vld [vmem:[#allocation2 + $0xf28] sm:$0xff]  ;;  %v2973_v53 = vpack.c.bf16 %v610_v46, %v606_v35  ;;  %v3229_v54 = vpack.c.bf16 %v612_v49, %v608_v47  ;;  %v3279_v35 = vpack.c.bf16 %v1311_v37, %v1310_v36  ;;  %v1280_v47 = vld [vmem:[%s4453_s2 + $0x90] sm:$0xff]  ;;  %v1270_v23 = vld [vmem:[%s4453_s2 + $0x40] sm:$0xff] }
 0x15a   :  { %v2975_v55 = vpack.c.bf16 %v619_v51, %v615_v50  ;;  %v1295_v46 = vld [vmem:[%s4453_s2 + $0x108] sm:$0xff]  ;;  %v1312_v49 = vld [vmem:[%s4453_s2 + $0x190] sm:$0xff]  ;;  %v1313_v50 = vld [vmem:[%s4453_s2 + $0x198] sm:$0xff] }
 0x15b   :  { %2954 = vmatpush1.bf16.msra.mxu0 %v2953_v11  ;;  %v614_v11 = vld [vmem:[#allocation2 + $0xf00] sm:$0xff]  ;;  %v1272_v37 = vld [vmem:[%s4453_s2 + $0x50] sm:$0xff] }
 0x15c   :  { %3210 = vmatpush1.bf16.msra.mxu1 %v3209_v56  ;;  %2956 = vmatprep.subr.bf16.mxu0 %v2955_v57  ;;  %v618_v56 = vld [vmem:[#allocation2 + $0xf20] sm:$0xff]  ;;  %v616_v57 = vld [vmem:[#allocation2 + $0xf10] sm:$0xff] }
 0x15d   :  { %3212 = vmatprep.subr.bf16.mxu1 %v3211_v22  ;;  %v627_v22 = vld [vmem:[#allocation2 + $0xf68] sm:$0xff]  ;;  %v2977_v63 = vpack.c.bf16 %v618_v56, %v614_v11  ;;  %v3233_v0 = vpack.c.bf16 %v620_v59, %v616_v57  ;;  %v3283_v11 = vpack.c.bf16 %v1313_v50, %v1312_v49  ;;  %v1297_v56 = vld [vmem:[%s4453_s2 + $0x118] sm:$0xff]  ;;  %v1282_v57 = vld [vmem:[%s4453_s2 + $0xa0] sm:$0xff] }
 0x15e   :  { %v2979_v1 = vpack.c.bf16 %v627_v22, %v623_v60  ;;  %v1314_v59 = vld [vmem:[%s4453_s2 + $0x1a0] sm:$0xff]  ;;  %v1315_v60 = vld [vmem:[%s4453_s2 + $0x1a8] sm:$0xff] }
 0x15f   :  { %2958 = vmatpush1.bf16.msra.mxu0 %v2957_v2  ;;  %v622_v2 = vld [vmem:[#allocation2 + $0xf40] sm:$0xff] }
 0x160   :  { %3214 = vmatpush1.bf16.msra.mxu1 %v3213_v3  ;;  %2960 = vmatprep.subr.bf16.mxu0 %v2959_v4  ;;  %v626_v3 = vld [vmem:[#allocation2 + $0xf60] sm:$0xff]  ;;  %v624_v4 = vld [vmem:[#allocation2 + $0xf50] sm:$0xff] }
 0x161   :  { %3216 = vmatprep.subr.bf16.mxu1 %v3215_v7  ;;  %v635_v7 = vld [vmem:[#allocation2 + $0xfa8] sm:$0xff]  ;;  %v2981_v10 = vpack.c.bf16 %v626_v3, %v622_v2  ;;  %v3237_v12 = vpack.c.bf16 %v628_v41, %v624_v4  ;;  %v1284_v3 = vld [vmem:[%s4453_s2 + $0xb0] sm:$0xff]  ;;  %v1285_v4 = vld [vmem:[%s4453_s2 + $0xb8] sm:$0xff] }
 0x162   :  { %v2983_v13 = vpack.c.bf16 %v635_v7, %v631_v6  ;;  %v1299_v2 = vld [vmem:[%s4453_s2 + $0x128] sm:$0xff]  ;;  %v1317_v41 = vld [vmem:[%s4453_s2 + $0x1b8] sm:$0xff]  ;;  %v3259_v8 = vpack.c.bf16 %v1285_v4, %v1284_v3  ;;  %v1274_v50 = vld [vmem:[%s4453_s2 + $0x60] sm:$0xff] }
 0x163   :  { %2962 = vmatpush1.bf16.msra.mxu0 %v2961_v14  ;;  %v630_v14 = vld [vmem:[#allocation2 + $0xf80] sm:$0xff] }
 0x164   :  { %3218 = vmatpush1.bf16.msra.mxu1 %v3217_v15  ;;  %2964 = vmatprep.subr.bf16.mxu0 %v2963_v16  ;;  %v634_v15 = vld [vmem:[#allocation2 + $0xfa0] sm:$0xff]  ;;  %v632_v16 = vld [vmem:[#allocation2 + $0xf90] sm:$0xff] }
 0x165   :  { %3220 = vmatprep.subr.bf16.mxu1 %v3219_v20  ;;  %v643_v20 = vld [vmem:[#allocation2 + $0xfe8] sm:$0xff]  ;;  %v2985_v24 = vpack.c.bf16 %v634_v15, %v630_v14  ;;  %v3241_v26 = vpack.c.bf16 %v636_v18, %v632_v16  ;;  %v1301_v14 = vld [vmem:[%s4453_s2 + $0x138] sm:$0xff]  ;;  %v1286_v15 = vld [vmem:[%s4453_s2 + $0xc0] sm:$0xff] }
 0x166   :  { %v2987_v27 = vpack.c.bf16 %v643_v20, %v639_v19  ;;  %v1287_v16 = vld [vmem:[%s4453_s2 + $0xc8] sm:$0xff] }
 0x167   :  { %2966 = vmatpush1.bf16.msra.mxu0 %v2965_v28  ;;  %v638_v28 = vld [vmem:[#allocation2 + $0xfc0] sm:$0xff]  ;;  %v1319_v18 = vld [vmem:[%s4453_s2 + $0x1c8] sm:$0xff]  ;;  %v3263_v21 = vpack.c.bf16 %v1287_v16, %v1286_v15 }
 0x168   :  { %3222 = vmatpush1.bf16.msra.mxu1 %v3221_v29  ;;  %2968 = vmatprep.subr.bf16.mxu0 %v2967_v30  ;;  %v642_v29 = vld [vmem:[#allocation2 + $0xfe0] sm:$0xff]  ;;  %v640_v30 = vld [vmem:[#allocation2 + $0xfd0] sm:$0xff] }
 0x169   :  { %3224 = vmatprep.subr.bf16.mxu1 %v3223_v34  ;;  %v1279_v34 = vld [vmem:[%s4453_s2 + $0x88] sm:$0xff]  ;;  %v2989_v38 = vpack.c.bf16 %v642_v29, %v638_v28  ;;  %v3245_v39 = vpack.c.bf16 %v644_v32, %v640_v30  ;;  %v1288_v29 = vld [vmem:[%s4453_s2 + $0xd0] sm:$0xff]  ;;  %v1289_v30 = vld [vmem:[%s4453_s2 + $0xd8] sm:$0xff] }
 0x16a   :  { %v3247_v40 = vpack.c.bf16 %v1279_v34, %v1278_v33  ;;  %v1303_v28 = vld [vmem:[%s4453_s2 + $0x148] sm:$0xff]  ;;  %v1321_v32 = vld [vmem:[%s4453_s2 + $0x1d8] sm:$0xff]  ;;  %v3267_v36 = vpack.c.bf16 %v1289_v30, %v1288_v29 }
 0x16b   :  { %2970 = vmatpush1.bf16.msra.mxu0 %v2969_v42  ;;  %v1262_v42 = vld [vmem:[%s4453_s2] sm:$0xff]  ;;  %v1638_v30 = vld [vmem:[#allocation6 + $0x28] sm:$0xff] }
 0x16c   :  { %3226 = vmatpush1.bf16.msra.mxu1 %v3225_v43  ;;  %2972 = vmatprep.subr.bf16.mxu0 %v2971_v44  ;;  %v1263_v43 = vld [vmem:[%s4453_s2 + $0x8] sm:$0xff]  ;;  %v1294_v44 = vld [vmem:[%s4453_s2 + $0x100] sm:$0xff] }
 0x16d   :  { %3228 = vmatprep.subr.bf16.mxu1 %v3227_v48  ;;  %v1281_v48 = vld [vmem:[%s4453_s2 + $0x98] sm:$0xff]  ;;  %v3249_v51 = vpack.c.bf16 %v1263_v43, %v1262_v42  ;;  %v3281_v52 = vpack.c.bf16 %v1295_v46, %v1294_v44  ;;  %v1290_v43 = vld [vmem:[%s4453_s2 + $0xe0] sm:$0xff]  ;;  %v1291_v44 = vld [vmem:[%s4453_s2 + $0xe8] sm:$0xff] }
 0x16e   :  { %v3251_v25 = vpack.c.bf16 %v1281_v48, %v1280_v47  ;;  %v1305_v42 = vld [vmem:[%s4453_s2 + $0x158] sm:$0xff]  ;;  %v1323_v46 = vld [vmem:[%s4453_s2 + $0x1e8] sm:$0xff]  ;;  %v3271_v49 = vpack.c.bf16 %v1291_v44, %v1290_v43  ;;  %v1643_v43 = vld [vmem:[#allocation6 + $0x50] sm:$0xff] }
 0x16f   :  { %2974 = vmatpush1.bf16.msra.mxu0 %v2973_v53  ;;  %v1264_v53 = vld [vmem:[%s4453_s2 + $0x10] sm:$0xff]  ;;  %v1646_v44 = vld [vmem:[#allocation6 + $0x68] sm:$0xff] }
 0x170   :  { %3230 = vmatpush1.bf16.msra.mxu1 %v3229_v54  ;;  %2976 = vmatprep.subr.bf16.mxu0 %v2975_v55  ;;  %v1265_v54 = vld [vmem:[%s4453_s2 + $0x18] sm:$0xff]  ;;  %v1296_v55 = vld [vmem:[%s4453_s2 + $0x110] sm:$0xff] }
 0x171   :  { %3232 = vmatprep.subr.bf16.mxu1 %v3231_v58  ;;  %v1283_v58 = vld [vmem:[%s4453_s2 + $0xa8] sm:$0xff]  ;;  %v3253_v22 = vpack.c.bf16 %v1265_v54, %v1264_v53  ;;  %v3285_v61 = vpack.c.bf16 %v1297_v56, %v1296_v55  ;;  %v1293_v56 = vld [vmem:[%s4453_s2 + $0xf8] sm:$0xff] }
 0x172   :  { %v3255_v62 = vpack.c.bf16 %v1283_v58, %v1282_v57  ;;  %v1307_v53 = vld [vmem:[%s4453_s2 + $0x168] sm:$0xff]  ;;  %v1324_v57 = vld [vmem:[%s4453_s2 + $0x1f0] sm:$0xff] }
 0x173   :  { %2978 = vmatpush1.bf16.msra.mxu0 %v2977_v63  ;;  %v1266_v63 = vld [vmem:[%s4453_s2 + $0x20] sm:$0xff] }
 0x174   :  { %3234 = vmatpush1.bf16.msra.mxu1 %v3233_v0  ;;  %2980 = vmatprep.subr.bf16.mxu0 %v2979_v1  ;;  %v1267_v0 = vld [vmem:[%s4453_s2 + $0x28] sm:$0xff]  ;;  %v1298_v1 = vld [vmem:[%s4453_s2 + $0x120] sm:$0xff] }
 0x175   :  { %3236 = vmatprep.subr.bf16.mxu1 %v3235_v5  ;;  %v1316_v5 = vld [vmem:[%s4453_s2 + $0x1b0] sm:$0xff]  ;;  %v3257_v6 = vpack.c.bf16 %v1267_v0, %v1266_v63  ;;  %v3289_v7 = vpack.c.bf16 %v1299_v2, %v1298_v1  ;;  %v1309_v0 = vld [vmem:[%s4453_s2 + $0x178] sm:$0xff] }
 0x176   :  { %v1308_v63 = vld [vmem:[%s4453_s2 + $0x170] sm:$0xff] }
 0x177   :  { %2982 = vmatpush1.bf16.msra.mxu0 %v2981_v10  ;;  %v1269_v10 = vld [vmem:[%s4453_s2 + $0x38] sm:$0xff]  ;;  %v3309_v1 = vpack.c.bf16 %v1309_v0, %v1308_v63  ;;  %v1657_v63 = vld [vmem:[#allocation6 + $0xc0] sm:$0xff]  ;;  %v1659_v0 = vld [vmem:[#allocation6 + $0xd0] sm:$0xff] }
 0x178   :  { %3238 = vmatpush1.bf16.msra.mxu1 %v3237_v12  ;;  %2984 = vmatprep.subr.bf16.mxu0 %v2983_v13  ;;  %v1300_v12 = vld [vmem:[%s4453_s2 + $0x130] sm:$0xff]  ;;  %v3291_v13 = vpack.c.bf16 %v1317_v41, %v1316_v5  ;;  %v3261_v19 = vpack.c.bf16 %v1269_v10, %v1268_v9  ;;  %v1467_v9 = vld [vmem:[#allocation4] sm:$0xff]  ;;  %v3776_v10 = vmov 0.0  }
 0x179   :  { %3240 = vmatprep.subr.bf16.mxu1 %v3239_v17  ;;  %v1318_v17 = vld [vmem:[%s4453_s2 + $0x1c0] sm:$0xff]  ;;  %v3293_v20 = vpack.c.bf16 %v1301_v14, %v1300_v12  ;;  %v1470_v12 = vld [vmem:[#allocation4 + $0x18] sm:$0xff] }
 0x17b   :  { %2986 = vmatpush1.bf16.msra.mxu0 %v2985_v24  ;;  %v1271_v24 = vld [vmem:[%s4453_s2 + $0x48] sm:$0xff] }
 0x17c   :  { %3242 = vmatpush1.bf16.msra.mxu1 %v3241_v26  ;;  %2988 = vmatprep.subr.bf16.mxu0 %v2987_v27  ;;  %v1302_v26 = vld [vmem:[%s4453_s2 + $0x140] sm:$0xff]  ;;  %v3295_v27 = vpack.c.bf16 %v1319_v18, %v1318_v17  ;;  %v3265_v33 = vpack.c.bf16 %v1271_v24, %v1270_v23  ;;  %v1636_v23 = vld [vmem:[#allocation6 + $0x18] sm:$0xff]  ;;  %v1469_v24 = vld [vmem:[#allocation4 + $0x10] sm:$0xff] }
 0x17d   :  { %3244 = vmatprep.subr.bf16.mxu1 %v3243_v31  ;;  %v1320_v31 = vld [vmem:[%s4453_s2 + $0x1d0] sm:$0xff]  ;;  %v3297_v34 = vpack.c.bf16 %v1303_v28, %v1302_v26 }
 0x17e   :  { %v1635_v28 = vld [vmem:[#allocation6 + $0x10] sm:$0xff] }
 0x17f   :  { %2990 = vmatpush1.bf16.msra.mxu0 %v2989_v38  ;;  %v1273_v38 = vld [vmem:[%s4453_s2 + $0x58] sm:$0xff] }
 0x180   :  { %3246 = vmatpush1.bf16.msra.mxu1 %v3245_v39  ;;  %3248 = vmatprep.subr.bf16.mxu0 %v3247_v40  ;;  %v1304_v39 = vld [vmem:[%s4453_s2 + $0x150] sm:$0xff]  ;;  %v3299_v40 = vpack.c.bf16 %v1321_v32, %v1320_v31  ;;  %v3269_v47 = vpack.c.bf16 %v1273_v38, %v1272_v37  ;;  %v1640_v31 = vld [vmem:[#allocation6 + $0x38] sm:$0xff]  ;;  %v1642_v37 = vld [vmem:[#allocation6 + $0x48] sm:$0xff] }
 0x181   :  { %3280 = vmatprep.subr.bf16.mxu1 %v3279_v35  ;;  %v1322_v35 = vld [vmem:[%s4453_s2 + $0x1e0] sm:$0xff]  ;;  %v3301_v48 = vpack.c.bf16 %v1305_v42, %v1304_v39  ;;  %v1644_v38 = vld [vmem:[#allocation6 + $0x58] sm:$0xff] }
 0x182   :  { %968 = vmatmul.mubr.f32.vlgmr.msra.gmra.mrb[0].mxu0 %v3992_v45  ;;  %v1641_v42 = vld [vmem:[#allocation6 + $0x40] sm:$0xff] }
 0x183   :  { %1252 = vmatmul.mubr.f32.vlgmr.msra.gmra.mrb[0].mxu1 %v3992_v45  ;;  %3250 = vmatpush3.bf16.msra.mxu0 %v3249_v51  ;;  %v3287_v45 = vpack.c.bf16 %v1315_v60, %v1314_v59  ;;  %v1275_v51 = vld [vmem:[%s4453_s2 + $0x68] sm:$0xff]  ;;  %v1325_v59 = vld [vmem:[%s4453_s2 + $0x1f8] sm:$0xff]  ;;  %v1276_v60 = vld [vmem:[%s4453_s2 + $0x70] sm:$0xff] }
 0x184   :  { %3282 = vmatpush3.bf16.msra.mxu1 %v3281_v52  ;;  %3252 = vmatprep.subr.bf16.mxu0 %v3251_v25  ;;  %v3303_v52 = vpack.c.bf16 %v1323_v46, %v1322_v35  ;;  %v1306_v25 = vld [vmem:[%s4453_s2 + $0x160] sm:$0xff]  ;;  %v3273_v54 = vpack.c.bf16 %v1275_v51, %v1274_v50  ;;  %v1648_v35 = vld [vmem:[#allocation6 + $0x78] sm:$0xff]  ;;  %v3321_v46 = vpack.c.bf16 %v1643_v43, %v1641_v42  ;;  %v1650_v50 = vld [vmem:[#allocation6 + $0x88] sm:$0xff] }
 0x185   :  { %3284 = vmatprep.subr.bf16.mxu1 %v3283_v11  ;;  %v3305_v55 = vpack.c.bf16 %v1307_v53, %v1306_v25  ;;  %v1292_v11 = vld [vmem:[%s4453_s2 + $0xf0] sm:$0xff]  ;;  %v1652_v51 = vld [vmem:[#allocation6 + $0x98] sm:$0xff]  ;;  %v1649_v53 = vld [vmem:[#allocation6 + $0x80] sm:$0xff] }
 0x186   :  { %v3275_v58 = vpack.c.bf16 %v1293_v56, %v1292_v11  ;;  %v3327_v25 = vpack.c.bf16 %v1652_v51, %v1650_v50  ;;  %v1656_v11 = vld [vmem:[#allocation6 + $0xb8] sm:$0xff]  ;;  %v1681_v43 = vld [vmem:[#allocation6 + $0x180] sm:$0xff]  ;;  %v1687_v50 = vld [vmem:[#allocation6 + $0x1b0] sm:$0xff] }
 0x187   :  { %3254 = vmatpush3.bf16.msra.mxu0 %v3253_v22  ;;  %v1277_v22 = vld [vmem:[%s4453_s2 + $0x78] sm:$0xff]  ;;  %v1690_v51 = vld [vmem:[#allocation6 + $0x1c8] sm:$0xff] }
 0x188   :  { %3286 = vmatpush3.bf16.msra.mxu1 %v3285_v61  ;;  %3256 = vmatprep.subr.bf16.mxu0 %v3255_v62  ;;  %v3307_v61 = vpack.c.bf16 %v1325_v59, %v1324_v57  ;;  %v3277_v62 = vpack.c.bf16 %v1277_v22, %v1276_v60  ;;  %v1655_v59 = vld [vmem:[#allocation6 + $0xb0] sm:$0xff]  ;;  %v1658_v60 = vld [vmem:[#allocation6 + $0xc8] sm:$0xff]  ;;  %v1660_v22 = vld [vmem:[#allocation6 + $0xd8] sm:$0xff] }
 0x189   :  { %3288 = vmatprep.subr.bf16.mxu1 %v3287_v45 }
 0x18b   :  { %3258 = vmatpush3.bf16.msra.mxu0 %v3257_v6 }
 0x18c   :  { %3290 = vmatpush3.bf16.msra.mxu1 %v3289_v7  ;;  %3260 = vmatprep.subr.bf16.mxu0 %v3259_v8  ;;  %v1468_v8 = vld [vmem:[#allocation4 + $0x8] sm:$0xff] }
 0x18d   :  { %3292 = vmatprep.subr.bf16.mxu1 %v3291_v13 }
 0x18f   :  { %3262 = vmatpush3.bf16.msra.mxu0 %v3261_v19 }
 0x190   :  { %3294 = vmatpush3.bf16.msra.mxu1 %v3293_v20  ;;  %3264 = vmatprep.subr.bf16.mxu0 %v3263_v21  ;;  %v1634_v21 = vld [vmem:[#allocation6 + $0x8] sm:$0xff] }
 0x191   :  { %3296 = vmatprep.subr.bf16.mxu1 %v3295_v27  ;;  %v3311_v26 = vpack.c.bf16 %v1636_v23, %v1634_v21  ;;  %v1633_v27 = vld [vmem:[#allocation6] sm:$0xff]  ;;  %v1671_v23 = vld [vmem:[#allocation6 + $0x130] sm:$0xff] }
 0x192   :  { %v3313_v32 = vpack.c.bf16 %v1635_v28, %v1633_v27  ;;  %v1669_v21 = vld [vmem:[#allocation6 + $0x120] sm:$0xff] }
 0x193   :  { %3266 = vmatpush3.bf16.msra.mxu0 %v3265_v33  ;;  %v3315_v33 = vpack.c.bf16 %v1640_v31, %v1638_v30  ;;  %v3349_v27 = vpack.c.bf16 %v1671_v23, %v1669_v21  ;;  %v1675_v30 = vld [vmem:[#allocation6 + $0x150] sm:$0xff]  ;;  %v1678_v31 = vld [vmem:[#allocation6 + $0x168] sm:$0xff]  ;;  %v1928_v23 = vld [vmem:[%s4456_s5 + $0xb8] sm:$0xff] }
 0x194   :  { %3298 = vmatpush3.bf16.msra.mxu1 %v3297_v34  ;;  %3268 = vmatprep.subr.bf16.mxu0 %v3267_v36  ;;  %v1637_v34 = vld [vmem:[#allocation6 + $0x20] sm:$0xff]  ;;  %v1639_v36 = vld [vmem:[#allocation6 + $0x30] sm:$0xff] }
 0x195   :  { %3300 = vmatprep.subr.bf16.mxu1 %v3299_v40  ;;  %v3317_v39 = vpack.c.bf16 %v1639_v36, %v1637_v34  ;;  %v3319_v40 = vpack.c.bf16 %v1644_v38, %v1642_v37  ;;  %v1677_v36 = vld [vmem:[#allocation6 + $0x160] sm:$0xff]  ;;  %v1679_v37 = vld [vmem:[#allocation6 + $0x170] sm:$0xff]  ;;  %v1682_v38 = vld [vmem:[#allocation6 + $0x188] sm:$0xff] }
 0x196   :  { %v1927_v21 = vld [vmem:[%s4456_s5 + $0xb0] sm:$0xff] }
 0x197   :  { %3270 = vmatpush3.bf16.msra.mxu0 %v3269_v47  ;;  %v3323_v47 = vpack.c.bf16 %v1648_v35, %v1646_v44  ;;  %v1683_v44 = vld [vmem:[#allocation6 + $0x190] sm:$0xff]  ;;  %v1686_v35 = vld [vmem:[#allocation6 + $0x1a8] sm:$0xff] }
 0x198   :  { %3302 = vmatpush3.bf16.msra.mxu1 %v3301_v48  ;;  %3272 = vmatprep.subr.bf16.mxu0 %v3271_v49  ;;  %v1645_v48 = vld [vmem:[#allocation6 + $0x60] sm:$0xff]  ;;  %v1647_v49 = vld [vmem:[#allocation6 + $0x70] sm:$0xff] }
 0x199   :  { %3304 = vmatprep.subr.bf16.mxu1 %v3303_v52  ;;  %v3325_v52 = vpack.c.bf16 %v1647_v49, %v1645_v48  ;;  %v1685_v49 = vld [vmem:[#allocation6 + $0x1a0] sm:$0xff] }
 0x19b   :  { %3274 = vmatpush3.bf16.msra.mxu0 %v3273_v54  ;;  %v1651_v54 = vld [vmem:[#allocation6 + $0x90] sm:$0xff] }
 0x19c   :  { %3306 = vmatpush3.bf16.msra.mxu1 %v3305_v55  ;;  %3276 = vmatprep.subr.bf16.mxu0 %v3275_v58  ;;  %v1654_v55 = vld [vmem:[#allocation6 + $0xa8] sm:$0xff]  ;;  %v3329_v56 = vpack.c.bf16 %v1651_v54, %v1649_v53  ;;  %v1653_v58 = vld [vmem:[#allocation6 + $0xa0] sm:$0xff] }
 0x19d   :  { %3308 = vmatprep.subr.bf16.mxu1 %v3307_v61  ;;  %v3331_v57 = vpack.c.bf16 %v1656_v11, %v1654_v55  ;;  %v3333_v61 = vpack.c.bf16 %v1655_v59, %v1653_v58  ;;  %v1689_v54 = vld [vmem:[#allocation6 + $0x1c0] sm:$0xff]  ;;  %v1691_v55 = vld [vmem:[#allocation6 + $0x1d0] sm:$0xff] }
 0x19e   :  { %v3369_v11 = vpack.c.bf16 %v1691_v55, %v1689_v54  ;;  %v1693_v59 = vld [vmem:[#allocation6 + $0x1e0] sm:$0xff]  ;;  %v1699_v54 = vld [vmem:[#allocation6 + $0x210] sm:$0xff] }
 0x19f   :  { %3278 = vmatpush3.bf16.msra.mxu0 %v3277_v62  ;;  %v3335_v62 = vpack.c.bf16 %v1660_v22, %v1658_v60  ;;  %v1695_v60 = vld [vmem:[#allocation6 + $0x1f0] sm:$0xff] }
 0x1a0   :  { %3310 = vmatpush3.bf16.msra.mxu1 %v3309_v1  ;;  %1475 = vmatprep.subr.mxu0 %v1468_v8  ;;  %v1662_v1 = vld [vmem:[#allocation6 + $0xe8] sm:$0xff]  ;;  %v1663_v8 = vld [vmem:[#allocation6 + $0xf0] sm:$0xff]  ;;  %v3373_v22 = vpack.c.bf16 %v1695_v60, %v1693_v59 }
 0x255   :  { %v4192_v45 = vpop.f32.mrb[0].mxu0 }
 0x256   :  { %v4194_v2 = vpop.f32.mrb[0].mxu1  ;;  %v4196_v3 = vpop.f32.mrb[1].mxu0  ;;  %v1258_v41 = vmul.f32 %v4192_v45, %v4192_v45 }
 0x257   :  { %v1259_v4 = vmul.f32 %v4196_v3, %v4196_v3  ;;  %v4200_v5 = vpop.f32.mrb[1].mxu1  ;;  %v1260_v7 = vmul.f32 %v4194_v2, %v4194_v2 }
 0x258   :  { %v1261_v6 = vmul.f32 %v4200_v5, %v4200_v5 }
 0x259   :  { %1390 = vmatprep.mubr.f32.mxu0 %v1259_v4  ;;  %v1664_v4 = vld [vmem:[#allocation6 + $0xf8] sm:$0xff] }
 0x25a   :  { %1460 = vmatprep.mubr.f32.mxu1 %v1261_v6  ;;  %1391 = vmatmul.mubr.f32.vlgmr.msra.gmra.mrb[2].mxu0 %v1258_v41  ;;  %v3337_v41 = vpack.c.bf16 %v1659_v0, %v1657_v63  ;;  %v3339_v6 = vpack.c.bf16 %v1664_v4, %v1662_v1  ;;  %v1921_v0 = vld [vmem:[%s4456_s5 + $0x80] sm:$0xff]  ;;  %v1922_v1 = vld [vmem:[%s4456_s5 + $0x88] sm:$0xff] }
 0x25b   :  { %1461 = vmatmul.mubr.f32.vlgmr.msra.gmra.mrb[2].mxu1 %v1260_v7  ;;  %1539 = vmatprep.mubr.f32.mxu0 %v3776_v10  ;;  %v1661_v7 = vld [vmem:[#allocation6 + $0xe0] sm:$0xff] }
 0x25c   :  { %1476 = vmatpush1.msra.mxu0 %v1467_v9  ;;  %v1666_v9 = vld [vmem:[#allocation6 + $0x108] sm:$0xff]  ;;  %v1905_v4 = vld [vmem:[%s4456_s5] sm:$0xff] }
 0x25d   :  { %1546 = vmatprep.subr.mxu0 %v1470_v12  ;;  %v1668_v12 = vld [vmem:[#allocation6 + $0x118] sm:$0xff] }
 0x32d   :  { %v2507_v13 = vpop.f32.mrb[2].mxu0 }
 0x32e   :  { %v2542_v14 = vpop.f32.mrb[2].mxu1  ;;  %v2508_v15 = vpop.f32.mrb[3].mxu0 }
 0x32f   :  { %v2509_v16 = vadd.f32 %v2508_v15, %v2507_v13  ;;  %v2543_v17 = vpop.f32.mrb[3].mxu1  ;;  %v3341_v13 = vpack.c.bf16 %v1663_v8, %v1661_v7  ;;  %v1665_v15 = vld [vmem:[#allocation6 + $0x100] sm:$0xff]  ;;  %v1923_v7 = vld [vmem:[%s4456_s5 + $0x90] sm:$0xff]  ;;  %v1924_v8 = vld [vmem:[%s4456_s5 + $0x98] sm:$0xff] }
 0x330   :  { %v2544_v18 = vadd.f32 %v2543_v17, %v2542_v14  ;;  %v3343_v14 = vpack.c.bf16 %v1668_v12, %v1666_v9  ;;  %v1670_v17 = vld [vmem:[#allocation6 + $0x128] sm:$0xff]  ;;  %v3443_v12 = vpack.c.bf16 %v1924_v8, %v1923_v7  ;;  %v1705_v8 = vld [vmem:[#allocation6 + $0x240] sm:$0xff] }
 0x331   :  { %v1393_v19 = vadd.f32 1e-05, %v2509_v16  ;;  %v1667_v16 = vld [vmem:[#allocation6 + $0x110] sm:$0xff] }
 0x333   :  { %v1463_v20 = vadd.f32 %v2544_v18, %v1393_v19  ;;  %v1672_v18 = vld [vmem:[#allocation6 + $0x138] sm:$0xff]  ;;  %v3345_v19 = vpack.c.bf16 %v1667_v16, %v1665_v15  ;;  %v1925_v15 = vld [vmem:[%s4456_s5 + $0xa0] sm:$0xff]  ;;  %v1926_v16 = vld [vmem:[%s4456_s5 + $0xa8] sm:$0xff] }
 0x335   :  { %3594 = vrsqrt.f32 %v1463_v20  ;;  %v3347_v20 = vpack.c.bf16 %v1672_v18, %v1670_v17  ;;  %v3447_v18 = vpack.c.bf16 %v1926_v16, %v1925_v15  ;;  %v1709_v15 = vld [vmem:[#allocation6 + $0x260] sm:$0xff]  ;;  %v1711_v16 = vld [vmem:[#allocation6 + $0x270] sm:$0xff] }
 0x33f   :  { %v3595_v29 = vpop.eup %3594 }
 0x340   :  { %2470 = vmatmul.mubr.msk.f32.vlgmr.msra.gmra.mrb[4].mxu0 %vm1471_vm0, %v3595_v29 }
 0x341   :  { %1547 = vmatpush1.msra.mxu0 %v1469_v24  ;;  %1610 = vmatprep.mubr.f32.mxu0 %v3776_v10  ;;  %v1674_v24 = vld [vmem:[#allocation6 + $0x148] sm:$0xff] }
 0x342   :  { %3312 = vmatprep.subr.bf16.mxu0 %v3311_v26  ;;  %v1676_v26 = vld [vmem:[#allocation6 + $0x158] sm:$0xff] }
 0x343   :  { %v3351_v28 = vpack.c.bf16 %v1676_v26, %v1674_v24  ;;  %v3451_v26 = vpack.c.bf16 %v1928_v23, %v1927_v21  ;;  %v1713_v21 = vld [vmem:[#allocation6 + $0x280] sm:$0xff]  ;;  %v1715_v23 = vld [vmem:[#allocation6 + $0x290] sm:$0xff] }
 0x344   :  { %2471 = vmatmul.mubr.msk.f32.vlgmr.msra.gmra.mrb[6].mxu0 %vm1471_vm0, %v3595_v29  ;;  %v1673_v29 = vld [vmem:[#allocation6 + $0x140] sm:$0xff] }
 0x345   :  { %3314 = vmatpush1.bf16.msra.mxu0 %v3313_v32  ;;  %v1680_v32 = vld [vmem:[#allocation6 + $0x178] sm:$0xff] }
 0x346   :  { %3316 = vmatprep.subr.bf16.mxu0 %v3315_v33  ;;  %v3353_v33 = vpack.c.bf16 %v1675_v30, %v1673_v29  ;;  %v3355_v34 = vpack.c.bf16 %v1680_v32, %v1678_v31  ;;  %v1929_v29 = vld [vmem:[%s4456_s5 + $0xc0] sm:$0xff]  ;;  %v1930_v30 = vld [vmem:[%s4456_s5 + $0xc8] sm:$0xff] }
 0x347   :  { %v3455_v32 = vpack.c.bf16 %v1930_v30, %v1929_v29  ;;  %v1717_v29 = vld [vmem:[#allocation6 + $0x2a0] sm:$0xff]  ;;  %v1719_v30 = vld [vmem:[#allocation6 + $0x2b0] sm:$0xff] }
 0x349   :  { %3318 = vmatpush1.bf16.msra.mxu0 %v3317_v39  ;;  %v1684_v39 = vld [vmem:[#allocation6 + $0x198] sm:$0xff] }
 0x34a   :  { %3320 = vmatprep.subr.bf16.mxu0 %v3319_v40  ;;  %v3357_v40 = vpack.c.bf16 %v1679_v37, %v1677_v36  ;;  %v3359_v42 = vpack.c.bf16 %v1684_v39, %v1682_v38  ;;  %v1931_v36 = vld [vmem:[%s4456_s5 + $0xd0] sm:$0xff]  ;;  %v1932_v37 = vld [vmem:[%s4456_s5 + $0xd8] sm:$0xff] }
 0x34b   :  { %v3459_v39 = vpack.c.bf16 %v1932_v37, %v1931_v36  ;;  %v1721_v36 = vld [vmem:[#allocation6 + $0x2c0] sm:$0xff]  ;;  %v1723_v37 = vld [vmem:[#allocation6 + $0x2d0] sm:$0xff] }
 0x34d   :  { %3322 = vmatpush1.bf16.msra.mxu0 %v3321_v46  ;;  %v1688_v46 = vld [vmem:[#allocation6 + $0x1b8] sm:$0xff] }
 0x34e   :  { %3324 = vmatprep.subr.bf16.mxu0 %v3323_v47  ;;  %v3361_v47 = vpack.c.bf16 %v1683_v44, %v1681_v43  ;;  %v3363_v48 = vpack.c.bf16 %v1688_v46, %v1686_v35  ;;  %v1933_v43 = vld [vmem:[%s4456_s5 + $0xe0] sm:$0xff]  ;;  %v1934_v44 = vld [vmem:[%s4456_s5 + $0xe8] sm:$0xff] }
 0x34f   :  { %v3463_v46 = vpack.c.bf16 %v1934_v44, %v1933_v43  ;;  %v1725_v43 = vld [vmem:[#allocation6 + $0x2e0] sm:$0xff]  ;;  %v1727_v44 = vld [vmem:[#allocation6 + $0x2f0] sm:$0xff] }
 0x351   :  { %3326 = vmatpush1.bf16.msra.mxu0 %v3325_v52  ;;  %v1692_v52 = vld [vmem:[#allocation6 + $0x1d8] sm:$0xff] }
 0x352   :  { %3328 = vmatprep.subr.bf16.mxu0 %v3327_v25  ;;  %v3365_v25 = vpack.c.bf16 %v1687_v50, %v1685_v49  ;;  %v3367_v53 = vpack.c.bf16 %v1692_v52, %v1690_v51 }
 0x355   :  { %3330 = vmatpush1.bf16.msra.mxu0 %v3329_v56  ;;  %v1694_v56 = vld [vmem:[#allocation6 + $0x1e8] sm:$0xff] }
 0x356   :  { %3332 = vmatprep.subr.bf16.mxu0 %v3331_v57  ;;  %v1696_v57 = vld [vmem:[#allocation6 + $0x1f8] sm:$0xff] }
 0x357   :  { %v3371_v58 = vpack.c.bf16 %v1696_v57, %v1694_v56  ;;  %v1704_v56 = vld [vmem:[#allocation6 + $0x238] sm:$0xff] }
 0x359   :  { %3334 = vmatpush1.bf16.msra.mxu0 %v3333_v61  ;;  %v1698_v61 = vld [vmem:[#allocation6 + $0x208] sm:$0xff] }
 0x35a   :  { %3336 = vmatprep.subr.bf16.mxu0 %v3335_v62  ;;  %v1700_v62 = vld [vmem:[#allocation6 + $0x218] sm:$0xff] }
 0x35b   :  { %v3375_v63 = vpack.c.bf16 %v1700_v62, %v1698_v61 }
 0x35d   :  { %3338 = vmatpush1.bf16.msra.mxu0 %v3337_v41  ;;  %v3439_v41 = vpack.c.bf16 %v1922_v1, %v1921_v0  ;;  %v1706_v1 = vld [vmem:[#allocation6 + $0x248] sm:$0xff] }
 0x35e   :  { %3340 = vmatprep.subr.bf16.mxu0 %v3339_v6  ;;  %v1906_v6 = vld [vmem:[%s4456_s5 + $0x8] sm:$0xff] }
 0x35f   :  { %v3441_v9 = vpack.c.bf16 %v1906_v6, %v1905_v4  ;;  %3440 = vmatprep.subr.bf16.mxu1 %v3439_v41  ;;  %v1708_v4 = vld [vmem:[#allocation6 + $0x258] sm:$0xff] }
 0x360   :  { %v3383_v7 = vpack.c.bf16 %v1708_v4, %v1706_v1  ;;  %v1746_v1 = vld [vmem:[#allocation6 + $0x388] sm:$0xff]  ;;  %v1748_v4 = vld [vmem:[#allocation6 + $0x398] sm:$0xff] }
 0x361   :  { %3342 = vmatpush1.bf16.msra.mxu0 %v3341_v13  ;;  %v1907_v13 = vld [vmem:[%s4456_s5 + $0x10] sm:$0xff]  ;;  %3442 = vmatpush3.bf16.msra.mxu1 %v3441_v9 }
 0x362   :  { %3344 = vmatprep.subr.bf16.mxu0 %v3343_v14  ;;  %v1908_v14 = vld [vmem:[%s4456_s5 + $0x18] sm:$0xff]  ;;  %3444 = vmatprep.subr.bf16.mxu1 %v3443_v12  ;;  %v1707_v9 = vld [vmem:[#allocation6 + $0x250] sm:$0xff] }
 0x363   :  { %v3445_v17 = vpack.c.bf16 %v1908_v14, %v1907_v13  ;;  %v1712_v12 = vld [vmem:[#allocation6 + $0x278] sm:$0xff]  ;;  %v3385_v13 = vpack.c.bf16 %v1707_v9, %v1705_v8  ;;  %v1750_v8 = vld [vmem:[#allocation6 + $0x3a8] sm:$0xff] }
 0x364   :  { %v1752_v9 = vld [vmem:[#allocation6 + $0x3b8] sm:$0xff] }
 0x365   :  { %3346 = vmatpush1.bf16.msra.mxu0 %v3345_v19  ;;  %v1909_v19 = vld [vmem:[%s4456_s5 + $0x20] sm:$0xff]  ;;  %3446 = vmatpush3.bf16.msra.mxu1 %v3445_v17  ;;  %v1714_v17 = vld [vmem:[#allocation6 + $0x288] sm:$0xff] }
 0x366   :  { %3348 = vmatprep.subr.bf16.mxu0 %v3347_v20  ;;  %v1910_v20 = vld [vmem:[%s4456_s5 + $0x28] sm:$0xff]  ;;  %3448 = vmatprep.subr.bf16.mxu1 %v3447_v18  ;;  %v1716_v18 = vld [vmem:[#allocation6 + $0x298] sm:$0xff] }
 0x367   :  { %v3449_v24 = vpack.c.bf16 %v1910_v20, %v1909_v19  ;;  %v3389_v19 = vpack.c.bf16 %v1711_v16, %v1709_v15  ;;  %v3391_v20 = vpack.c.bf16 %v1716_v18, %v1714_v17  ;;  %v1754_v15 = vld [vmem:[#allocation6 + $0x3c8] sm:$0xff]  ;;  %v1756_v16 = vld [vmem:[#allocation6 + $0x3d8] sm:$0xff] }
 0x368   :  { %v3431_v18 = vpack.c.bf16 %v1756_v16, %v1754_v15  ;;  %v2103_v15 = vld [vmem:[#allocation9 + $0x40] sm:$0xff]  ;;  %v2104_v16 = vld [vmem:[#allocation9 + $0x48] sm:$0xff] }
 0x369   :  { %3350 = vmatpush1.bf16.msra.mxu0 %v3349_v27  ;;  %v1911_v27 = vld [vmem:[%s4456_s5 + $0x30] sm:$0xff]  ;;  %3450 = vmatpush3.bf16.msra.mxu1 %v3449_v24  ;;  %v1718_v24 = vld [vmem:[#allocation6 + $0x2a8] sm:$0xff] }
 0x36a   :  { %3352 = vmatprep.subr.bf16.mxu0 %v3351_v28  ;;  %v1912_v28 = vld [vmem:[%s4456_s5 + $0x38] sm:$0xff]  ;;  %3452 = vmatprep.subr.bf16.mxu1 %v3451_v26 }
 0x36b   :  { %v3453_v31 = vpack.c.bf16 %v1912_v28, %v1911_v27  ;;  %v1720_v26 = vld [vmem:[#allocation6 + $0x2b8] sm:$0xff]  ;;  %v3393_v27 = vpack.c.bf16 %v1715_v23, %v1713_v21  ;;  %v1758_v21 = vld [vmem:[#allocation6 + $0x3e8] sm:$0xff] }
 0x36c   :  { %v3395_v28 = vpack.c.bf16 %v1720_v26, %v1718_v24  ;;  %v1760_v23 = vld [vmem:[#allocation6 + $0x3f8] sm:$0xff] }
 0x36d   :  { %3354 = vmatpush1.bf16.msra.mxu0 %v3353_v33  ;;  %v1913_v33 = vld [vmem:[%s4456_s5 + $0x40] sm:$0xff]  ;;  %3454 = vmatpush3.bf16.msra.mxu1 %v3453_v31  ;;  %v1722_v31 = vld [vmem:[#allocation6 + $0x2c8] sm:$0xff]  ;;  %v3435_v26 = vpack.c.bf16 %v1760_v23, %v1758_v21  ;;  %v2105_v21 = vld [vmem:[#allocation9 + $0x50] sm:$0xff] }
 0x36e   :  { %3356 = vmatprep.subr.bf16.mxu0 %v3355_v34  ;;  %v1914_v34 = vld [vmem:[%s4456_s5 + $0x48] sm:$0xff]  ;;  %3456 = vmatprep.subr.bf16.mxu1 %v3455_v32  ;;  %v1724_v32 = vld [vmem:[#allocation6 + $0x2d8] sm:$0xff] }
 0x36f   :  { %v3457_v38 = vpack.c.bf16 %v1914_v34, %v1913_v33  ;;  %v3397_v33 = vpack.c.bf16 %v1719_v30, %v1717_v29  ;;  %v3399_v34 = vpack.c.bf16 %v1724_v32, %v1722_v31  ;;  %v1935_v32 = vld [vmem:[%s4456_s5 + $0xf0] sm:$0xff]  ;;  %v2106_v23 = vld [vmem:[#allocation9 + $0x58] sm:$0xff] }
 0x371   :  { %3358 = vmatpush1.bf16.msra.mxu0 %v3357_v40  ;;  %v1915_v40 = vld [vmem:[%s4456_s5 + $0x50] sm:$0xff]  ;;  %3458 = vmatpush3.bf16.msra.mxu1 %v3457_v38  ;;  %v1726_v38 = vld [vmem:[#allocation6 + $0x2e8] sm:$0xff] }
 0x372   :  { %3360 = vmatprep.subr.bf16.mxu0 %v3359_v42  ;;  %v1916_v42 = vld [vmem:[%s4456_s5 + $0x58] sm:$0xff]  ;;  %3460 = vmatprep.subr.bf16.mxu1 %v3459_v39 }
 0x373   :  { %v3461_v35 = vpack.c.bf16 %v1916_v42, %v1915_v40  ;;  %v1728_v39 = vld [vmem:[#allocation6 + $0x2f8] sm:$0xff]  ;;  %v3401_v40 = vpack.c.bf16 %v1723_v37, %v1721_v36  ;;  %v1919_v36 = vld [vmem:[%s4456_s5 + $0x70] sm:$0xff] }
 0x374   :  { %v3403_v42 = vpack.c.bf16 %v1728_v39, %v1726_v38  ;;  %v1920_v37 = vld [vmem:[%s4456_s5 + $0x78] sm:$0xff] }
 0x375   :  { %3362 = vmatpush1.bf16.msra.mxu0 %v3361_v47  ;;  %v1917_v47 = vld [vmem:[%s4456_s5 + $0x60] sm:$0xff]  ;;  %3462 = vmatpush3.bf16.msra.mxu1 %v3461_v35  ;;  %v1730_v35 = vld [vmem:[#allocation6 + $0x308] sm:$0xff]  ;;  %v3469_v38 = vpack.c.bf16 %v1920_v37, %v1919_v36  ;;  %v2109_v36 = vld [vmem:[#allocation9 + $0x70] sm:$0xff] }
 0x376   :  { %3364 = vmatprep.subr.bf16.mxu0 %v3363_v48  ;;  %v1918_v48 = vld [vmem:[%s4456_s5 + $0x68] sm:$0xff]  ;;  %3464 = vmatprep.subr.bf16.mxu1 %v3463_v46  ;;  %v1732_v46 = vld [vmem:[#allocation6 + $0x318] sm:$0xff] }
 0x377   :  { %v3465_v49 = vpack.c.bf16 %v1918_v48, %v1917_v47  ;;  %v3405_v47 = vpack.c.bf16 %v1727_v44, %v1725_v43  ;;  %v3407_v48 = vpack.c.bf16 %v1732_v46, %v1730_v35  ;;  %v2009_v43 = vld [vmem:[#allocation7 + $0x8] sm:$0xff]  ;;  %v2011_v44 = vld [vmem:[#allocation7 + $0x18] sm:$0xff]  ;;  %v2008_v35 = vld [vmem:[#allocation7] sm:$0xff] }
 0x378   :  { %v3471_v46 = vpack.c.bf16 %v2011_v44, %v2009_v43  ;;  %v2110_v37 = vld [vmem:[#allocation9 + $0x78] sm:$0xff] }
 0x379   :  { %3366 = vmatpush1.bf16.msra.mxu0 %v3365_v25  ;;  %3466 = vmatpush3.bf16.msra.mxu1 %v3465_v49  ;;  %v1729_v49 = vld [vmem:[#allocation6 + $0x300] sm:$0xff] }
 0x37a   :  { %3368 = vmatprep.subr.bf16.mxu0 %v3367_v53  ;;  %v1697_v53 = vld [vmem:[#allocation6 + $0x200] sm:$0xff] }
 0x37d   :  { %3370 = vmatpush1.bf16.msra.mxu0 %v3369_v11  ;;  %v1702_v11 = vld [vmem:[#allocation6 + $0x228] sm:$0xff] }
 0x37e   :  { %3372 = vmatprep.subr.bf16.mxu0 %v3371_v58  ;;  %v3379_v62 = vpack.c.bf16 %v1704_v56, %v1702_v11  ;;  %v1738_v11 = vld [vmem:[#allocation6 + $0x348] sm:$0xff]  ;;  %v1740_v56 = vld [vmem:[#allocation6 + $0x358] sm:$0xff] }
 0x381   :  { %3374 = vmatpush1.bf16.msra.mxu0 %v3373_v22  ;;  %v3377_v22 = vpack.c.bf16 %v1699_v54, %v1697_v53  ;;  %v1733_v54 = vld [vmem:[#allocation6 + $0x320] sm:$0xff] }
 0x382   :  { %3376 = vmatprep.subr.bf16.mxu0 %v3375_v63  ;;  %v1701_v63 = vld [vmem:[#allocation6 + $0x220] sm:$0xff] }
 0x413   :  { %v1541_v50 = vpop.f32.mrb[4].mxu0 }
 0x414   :  { %v1617_v51 = vmul.f32 %v1541_v50, %v4192_v45  ;;  %v1543_v52 = vpop.f32.mrb[5].mxu0  ;;  %v1731_v50 = vld [vmem:[#allocation6 + $0x310] sm:$0xff] }
 0x415   :  { %v1618_v25 = vmul.f32 %v1543_v52, %v4196_v3  ;;  %v1703_v3 = vld [vmem:[#allocation6 + $0x230] sm:$0xff]  ;;  %v1736_v52 = vld [vmem:[#allocation6 + $0x338] sm:$0xff] }
 0x416   :  { %v1625_v55 = vmul.f32 0.2, %v1617_v51  ;;  %vm1621_vm1 = vcmp.gt.f32.partialorder %v1617_v51, 0.0  ;;  %v3381_v6 = vpack.c.bf16 %v1703_v3, %v1701_v63  ;;  %v1741_v3 = vld [vmem:[#allocation6 + $0x360] sm:$0xff] }
 0x417   :  { %v1626_v57 = vmul.f32 0.2, %v1618_v25  ;;  %v1612_v58 = vpop.f32.mrb[6].mxu0  ;;  %vm1622_vm2 = vcmp.gt.f32.partialorder %v1618_v25, 0.0 }
 0x418   :  { %v4299_v59 = vmul.f32 %v1612_v58, %v4194_v2  ;;  %v1614_v60 = vpop.f32.mrb[7].mxu0  ;;  %v1629_v0 = vsel %vm1621_vm1, %v1617_v51, %v1625_v55  ;;  %v1734_v51 = vld [vmem:[#allocation6 + $0x328] sm:$0xff]  ;;  %v1735_v55 = vld [vmem:[#allocation6 + $0x330] sm:$0xff]  ;;  %v3415_v58 = vpack.c.bf16 %v1740_v56, %v1738_v11 }
 0x419   :  { %v1620_v61 = vmul.f32 %v1614_v60, %v4200_v5  ;;  %v1630_v45 = vsel %vm1622_vm2, %v1618_v25, %v1626_v57  ;;  %v1710_v5 = vld [vmem:[#allocation6 + $0x268] sm:$0xff]  ;;  %v3409_v25 = vpack.c.bf16 %v1731_v50, %v1729_v49  ;;  %v3411_v53 = vpack.c.bf16 %v1736_v52, %v1734_v51  ;;  %v1737_v60 = vld [vmem:[#allocation6 + $0x340] sm:$0xff]  ;;  %v2113_v56 = vld [vmem:[#allocation9 + $0x90] sm:$0xff] }
 0x41a   :  { %1825 = vmatprep.mubr.f32.mxu0 %v1630_v45  ;;  %v3387_v14 = vpack.c.bf16 %v1712_v12, %v1710_v5  ;;  %v3413_v57 = vpack.c.bf16 %v1735_v55, %v1733_v54  ;;  %v1744_v45 = vld [vmem:[#allocation6 + $0x378] sm:$0xff]  ;;  %v3427_v12 = vpack.c.bf16 %v1752_v9, %v1750_v8  ;;  %v1627_v30 = vmul.f32 0.2, %v4299_v59  ;;  %v2111_v49 = vld [vmem:[#allocation9 + $0x80] sm:$0xff]  ;;  %v2112_v50 = vld [vmem:[#allocation9 + $0x88] sm:$0xff] }
 0x41b   :  { %v1628_v41 = vmul.f32 0.2, %v1620_v61  ;;  %1826 = vmatmul.mubr.f32.vlgmr.msra.gmra.mrb[8].mxu0 %v1629_v0  ;;  %vm1624_vm3 = vcmp.gt.f32.partialorder %v1620_v61, 0.0  ;;  %v1743_v0 = vld [vmem:[#allocation6 + $0x370] sm:$0xff]  ;;  %vm1623_vm4 = vcmp.gt.f32.partialorder %v4299_v59, 0.0  ;;  %v3475_v51 = vpack.c.bf16 %v2112_v50, %v2111_v49  ;;  %v2095_v55 = vld [vmem:[#allocation9] sm:$0xff] }
 0x41c   :  { %3378 = vmatpush1.bf16.msra.mxu0 %v3377_v22  ;;  %v1739_v22 = vld [vmem:[#allocation6 + $0x350] sm:$0xff]  ;;  %v1631_v31 = vsel %vm1623_vm4, %v4299_v59, %v1627_v30  ;;  %v2096_v11 = vld [vmem:[#allocation9 + $0x8] sm:$0xff]  ;;  %v2102_v9 = vld [vmem:[#allocation9 + $0x38] sm:$0xff] }
 0x41d   :  { %3380 = vmatprep.subr.bf16.mxu0 %v3379_v62  ;;  %v1632_v2 = vsel %vm1624_vm3, %v1620_v61, %v1628_v41  ;;  %v1742_v61 = vld [vmem:[#allocation6 + $0x368] sm:$0xff]  ;;  %v3417_v62 = vpack.c.bf16 %v1739_v22, %v1737_v60  ;;  %v3421_v41 = vpack.c.bf16 %v1743_v0, %v1741_v3  ;;  %v2097_v22 = vld [vmem:[#allocation9 + $0x10] sm:$0xff] }
 0x41e   :  { %1896 = vmatprep.mubr.f32.mxu0 %v1632_v2  ;;  %v3419_v63 = vpack.c.bf16 %v1744_v45, %v1742_v61  ;;  %v1745_v2 = vld [vmem:[#allocation6 + $0x380] sm:$0xff]  ;;  %v2098_v61 = vld [vmem:[#allocation9 + $0x18] sm:$0xff]  ;;  %v2101_v8 = vld [vmem:[#allocation9 + $0x30] sm:$0xff] }
 0x41f   :  { %v3481_v3 = vpack.c.bf16 %v2098_v61, %v2097_v22  ;;  %v2108_v30 = vld [vmem:[#allocation9 + $0x68] sm:$0xff]  ;;  %v2208_v61 = vld [vmem:[%s4459_s8 + $0x50] sm:$0xff] }
 0x420   :  { %3382 = vmatpush1.bf16.msra.mxu0 %v3381_v6  ;;  %v3423_v6 = vpack.c.bf16 %v1748_v4, %v1746_v1  ;;  %v2099_v1 = vld [vmem:[#allocation9 + $0x20] sm:$0xff]  ;;  %v2100_v4 = vld [vmem:[#allocation9 + $0x28] sm:$0xff] }
 0x421   :  { %3384 = vmatprep.subr.bf16.mxu0 %v3383_v7  ;;  %v1747_v7 = vld [vmem:[#allocation6 + $0x390] sm:$0xff] }
 0x422   :  { %v3425_v5 = vpack.c.bf16 %v1747_v7, %v1745_v2  ;;  %v3485_v2 = vpack.c.bf16 %v2100_v4, %v2099_v1  ;;  %v2212_v1 = vld [vmem:[%s4459_s8 + $0x70] sm:$0xff]  ;;  %v2213_v4 = vld [vmem:[%s4459_s8 + $0x78] sm:$0xff] }
 0x424   :  { %3386 = vmatpush1.bf16.msra.mxu0 %v3385_v13  ;;  %v1749_v13 = vld [vmem:[#allocation6 + $0x3a0] sm:$0xff] }
 0x425   :  { %3388 = vmatprep.subr.bf16.mxu0 %v3387_v14  ;;  %v1751_v14 = vld [vmem:[#allocation6 + $0x3b0] sm:$0xff] }
 0x426   :  { %v3429_v17 = vpack.c.bf16 %v1751_v14, %v1749_v13  ;;  %v3489_v13 = vpack.c.bf16 %v2102_v9, %v2101_v8  ;;  %v2285_v9 = vld [vmem:[#allocation10] sm:$0xff] }
 0x428   :  { %3390 = vmatpush1.bf16.msra.mxu0 %v3389_v19  ;;  %v1753_v19 = vld [vmem:[#allocation6 + $0x3c0] sm:$0xff] }
 0x429   :  { %3392 = vmatprep.subr.bf16.mxu0 %v3391_v20  ;;  %v1755_v20 = vld [vmem:[#allocation6 + $0x3d0] sm:$0xff] }
 0x42a   :  { %v3433_v24 = vpack.c.bf16 %v1755_v20, %v1753_v19  ;;  %v3493_v19 = vpack.c.bf16 %v2104_v16, %v2103_v15 }
 0x42c   :  { %3394 = vmatpush1.bf16.msra.mxu0 %v3393_v27  ;;  %v1757_v27 = vld [vmem:[#allocation6 + $0x3e0] sm:$0xff] }
 0x42d   :  { %3396 = vmatprep.subr.bf16.mxu0 %v3395_v28  ;;  %v1759_v28 = vld [vmem:[#allocation6 + $0x3f0] sm:$0xff] }
 0x42e   :  { %v3437_v29 = vpack.c.bf16 %v1759_v28, %v1757_v27  ;;  %v2124_v27 = vld [vmem:[#allocation9 + $0xe8] sm:$0xff] }
 0x430   :  { %3398 = vmatpush1.bf16.msra.mxu0 %v3397_v33  ;;  %v1936_v33 = vld [vmem:[%s4456_s5 + $0xf8] sm:$0xff] }
 0x431   :  { %3400 = vmatprep.subr.bf16.mxu0 %v3399_v34  ;;  %v3467_v34 = vpack.c.bf16 %v1936_v33, %v1935_v32  ;;  %v2125_v32 = vld [vmem:[#allocation9 + $0xf0] sm:$0xff]  ;;  %v2126_v33 = vld [vmem:[#allocation9 + $0xf8] sm:$0xff] }
 0x433   :  { %3468 = vmatprep.subr.bf16.mxu1 %v3467_v34  ;;  %v3503_v34 = vpack.c.bf16 %v2126_v33, %v2125_v32  ;;  %v2375_v33 = vld [vmem:[%s4461_s10 + $0x40] sm:$0xff] }
 0x434   :  { %3402 = vmatpush1.bf16.msra.mxu0 %v3401_v40  ;;  %3470 = vmatpush3.bf16.msra.mxu1 %v3469_v38  ;;  %v3505_v38 = vpack.c.bf16 %v2110_v37, %v2109_v36  ;;  %v2377_v37 = vld [vmem:[%s4461_s10 + $0x50] sm:$0xff] }
 0x435   :  { %3404 = vmatprep.subr.bf16.mxu0 %v3403_v42  ;;  %3472 = vmatprep.subr.bf16.mxu1 %v3471_v46  ;;  %v2198_v46 = vld [vmem:[%s4459_s8] sm:$0xff] }
 0x438   :  { %3406 = vmatpush1.bf16.msra.mxu0 %v3405_v47  ;;  %v2010_v47 = vld [vmem:[#allocation7 + $0x10] sm:$0xff] }
 0x439   :  { %3408 = vmatprep.subr.bf16.mxu0 %v3407_v48  ;;  %v3473_v48 = vpack.c.bf16 %v2010_v47, %v2008_v35  ;;  %v2199_v47 = vld [vmem:[%s4459_s8 + $0x8] sm:$0xff] }
 0x43a   :  { %v3508_v50 = vpack.c.bf16 %v2199_v47, %v2198_v46  ;;  %v2381_v46 = vld [vmem:[%s4461_s10 + $0x70] sm:$0xff]  ;;  %v2382_v47 = vld [vmem:[%s4461_s10 + $0x78] sm:$0xff] }
 0x43c   :  { %3410 = vmatpush1.bf16.msra.mxu0 %v3409_v25 }
 0x43d   :  { %3412 = vmatprep.subr.bf16.mxu0 %v3411_v53 }
 0x440   :  { %3414 = vmatpush1.bf16.msra.mxu0 %v3413_v57  ;;  %v2114_v57 = vld [vmem:[#allocation9 + $0x98] sm:$0xff] }
 0x441   :  { %3416 = vmatprep.subr.bf16.mxu0 %v3415_v58  ;;  %v3477_v58 = vpack.c.bf16 %v2096_v11, %v2095_v55  ;;  %v3479_v60 = vpack.c.bf16 %v2114_v57, %v2113_v56  ;;  %v2204_v11 = vld [vmem:[%s4459_s8 + $0x30] sm:$0xff]  ;;  %v2205_v56 = vld [vmem:[%s4459_s8 + $0x38] sm:$0xff] }
 0x442   :  { %v3517_v57 = vpack.c.bf16 %v2205_v56, %v2204_v11 }
 0x444   :  { %3418 = vmatpush1.bf16.msra.mxu0 %v3417_v62  ;;  %v2115_v62 = vld [vmem:[#allocation9 + $0xa0] sm:$0xff] }
 0x445   :  { %3420 = vmatprep.subr.bf16.mxu0 %v3419_v63  ;;  %v2116_v63 = vld [vmem:[#allocation9 + $0xa8] sm:$0xff] }
 0x446   :  { %v3483_v0 = vpack.c.bf16 %v2116_v63, %v2115_v62  ;;  %v2210_v63 = vld [vmem:[%s4459_s8 + $0x60] sm:$0xff] }
 0x448   :  { %3422 = vmatpush1.bf16.msra.mxu0 %v3421_v41  ;;  %v2117_v41 = vld [vmem:[#allocation9 + $0xb0] sm:$0xff] }
 0x449   :  { %3424 = vmatprep.subr.bf16.mxu0 %v3423_v6  ;;  %v2118_v6 = vld [vmem:[#allocation9 + $0xb8] sm:$0xff] }
 0x44a   :  { %v3487_v7 = vpack.c.bf16 %v2118_v6, %v2117_v41  ;;  %v3529_v41 = vpack.c.bf16 %v2213_v4, %v2212_v1 }
 0x44c   :  { %3426 = vmatpush1.bf16.msra.mxu0 %v3425_v5  ;;  %v2119_v5 = vld [vmem:[#allocation9 + $0xc0] sm:$0xff] }
 0x44d   :  { %3428 = vmatprep.subr.bf16.mxu0 %v3427_v12  ;;  %v2120_v12 = vld [vmem:[#allocation9 + $0xc8] sm:$0xff] }
 0x44e   :  { %v3491_v14 = vpack.c.bf16 %v2120_v12, %v2119_v5  ;;  %v2286_v5 = vld [vmem:[#allocation10 + $0x8] sm:$0xff]  ;;  %v2287_v12 = vld [vmem:[#allocation10 + $0x10] sm:$0xff] }
 0x450   :  { %3430 = vmatpush1.bf16.msra.mxu0 %v3429_v17  ;;  %v2121_v17 = vld [vmem:[#allocation9 + $0xd0] sm:$0xff] }
 0x451   :  { %3432 = vmatprep.subr.bf16.mxu0 %v3431_v18  ;;  %v2122_v18 = vld [vmem:[#allocation9 + $0xd8] sm:$0xff] }
 0x452   :  { %v3495_v20 = vpack.c.bf16 %v2122_v18, %v2121_v17 }
 0x454   :  { %3434 = vmatpush1.bf16.msra.mxu0 %v3433_v24  ;;  %v3497_v24 = vpack.c.bf16 %v2106_v23, %v2105_v21  ;;  %v2369_v23 = vld [vmem:[%s4461_s10 + $0x10] sm:$0xff] }
 0x455   :  { %3436 = vmatprep.subr.bf16.mxu0 %v3435_v26  ;;  %v2123_v26 = vld [vmem:[#allocation9 + $0xe0] sm:$0xff] }
 0x456   :  { %v3499_v28 = vpack.c.bf16 %v2124_v27, %v2123_v26 }
 0x458   :  { %3438 = vmatpush1.bf16.msra.mxu0 %v3437_v29  ;;  %v2107_v29 = vld [vmem:[#allocation9 + $0x60] sm:$0xff] }
 0x45b   :  { %1897 = vmatmul.mubr.f32.vlgmr.msra.gmra.mrb[8].mxu0 %v1631_v31  ;;  %v3501_v31 = vpack.c.bf16 %v2108_v30, %v2107_v29  ;;  %v2372_v29 = vld [vmem:[%s4461_s10 + $0x28] sm:$0xff] }
 0x52e   :  { %v4317_v59 = vpop.f32.mrb[8].mxu0 }
 0x52f   :  { %v4319_v39 = vpop.f32.mrb[9].mxu0  ;;  %v1903_v42 = vmul.f32 %v4317_v59, %v4317_v59 }
 0x530   :  { %v1904_v40 = vmul.f32 %v4319_v39, %v4319_v39 }
 0x532   :  { %2001 = vmatprep.mubr.f32.mxu1 %v1904_v40  ;;  %v3777_v40 = vmov 0.0|0.0  }
 0x533   :  { %2002 = vmatmul.mubr.f32.vlgmr.msra.gmra.mrb[4].mxu1 %v1903_v42 }
 0x534   :  { %2080 = vmatprep.mubr.f32.mxu1 %v3776_v10  ;;  %3474 = vmatpush1.bf16.msra.mxu1 %v3473_v48 }
 0x535   :  { %3476 = vmatprep.subr.bf16.mxu1 %v3475_v51 }
 0x606   :  { %v2577_v52 = vpop.f32.mrb[4].mxu1 }
 0x607   :  { %v2578_v25 = vpop.f32.mrb[5].mxu1 }
 0x608   :  { %v2579_v53 = vadd.f32 %v2578_v25, %v2577_v52 }
 0x60a   :  { %v2004_v54 = vadd.f32 1e-05, %v2579_v53  ;;  %v2202_v53 = vld [vmem:[%s4459_s8 + $0x20] sm:$0xff] }
 0x60c   :  { %3596 = vrsqrt.f32 %v2004_v54  ;;  %v2203_v54 = vld [vmem:[%s4459_s8 + $0x28] sm:$0xff] }
 0x60d   :  { %v3514_v55 = vpack.c.bf16 %v2203_v54, %v2202_v53 }
 0x616   :  { %v3597_v45 = vpop.eup %3596 }
 0x617   :  { %2472 = vmatmul.mubr.msk.f32.vlgmr.msra.gmra.mrb[6].mxu1 %vm2012_vm5, %v3597_v45  ;;  %v2209_v45 = vld [vmem:[%s4459_s8 + $0x58] sm:$0xff] }
 0x618   :  { %3478 = vmatpush3.bf16.msra.mxu1 %v3477_v58  ;;  %v2206_v58 = vld [vmem:[%s4459_s8 + $0x40] sm:$0xff]  ;;  %v3523_v62 = vpack.c.bf16 %v2209_v45, %v2208_v61 }
 0x619   :  { %3480 = vmatprep.subr.bf16.mxu1 %v3479_v60  ;;  %v2207_v60 = vld [vmem:[%s4459_s8 + $0x48] sm:$0xff] }
 0x61a   :  { %v3520_v22 = vpack.c.bf16 %v2207_v60, %v2206_v58 }
 0x61c   :  { %3482 = vmatpush3.bf16.msra.mxu1 %v3481_v3  ;;  %v2211_v3 = vld [vmem:[%s4459_s8 + $0x68] sm:$0xff] }
 0x61d   :  { %3484 = vmatprep.subr.bf16.mxu1 %v3483_v0  ;;  %v3526_v0 = vpack.c.bf16 %v2211_v3, %v2210_v63 }
 0x620   :  { %3486 = vmatpush3.bf16.msra.mxu1 %v3485_v2 }
 0x621   :  { %3488 = vmatprep.subr.bf16.mxu1 %v3487_v7 }
 0x624   :  { %3490 = vmatpush3.bf16.msra.mxu1 %v3489_v13  ;;  %v3532_v13 = vpack.c.bf16 %v2286_v5, %v2285_v9 }
 0x625   :  { %3492 = vmatprep.subr.bf16.mxu1 %v3491_v14  ;;  %v2288_v14 = vld [vmem:[#allocation10 + $0x18] sm:$0xff] }
 0x626   :  { %v3535_v15 = vpack.c.bf16 %v2288_v14, %v2287_v12 }
 0x628   :  { %3494 = vmatpush3.bf16.msra.mxu1 %v3493_v19  ;;  %v2367_v19 = vld [vmem:[%s4461_s10] sm:$0xff] }
 0x629   :  { %3496 = vmatprep.subr.bf16.mxu1 %v3495_v20  ;;  %v2368_v20 = vld [vmem:[%s4461_s10 + $0x8] sm:$0xff] }
 0x62a   :  { %v3538_v21 = vpack.c.bf16 %v2368_v20, %v2367_v19 }
 0x62c   :  { %3498 = vmatpush3.bf16.msra.mxu1 %v3497_v24  ;;  %v2370_v24 = vld [vmem:[%s4461_s10 + $0x18] sm:$0xff] }
 0x62d   :  { %3500 = vmatprep.subr.bf16.mxu1 %v3499_v28  ;;  %v3541_v27 = vpack.c.bf16 %v2370_v24, %v2369_v23  ;;  %v2371_v28 = vld [vmem:[%s4461_s10 + $0x20] sm:$0xff] }
 0x62e   :  { %v3544_v30 = vpack.c.bf16 %v2372_v29, %v2371_v28 }
 0x630   :  { %3502 = vmatpush3.bf16.msra.mxu1 %v3501_v31  ;;  %v2373_v31 = vld [vmem:[%s4461_s10 + $0x30] sm:$0xff] }
 0x631   :  { %3504 = vmatprep.subr.bf16.mxu1 %v3503_v34  ;;  %v2376_v34 = vld [vmem:[%s4461_s10 + $0x48] sm:$0xff] }
 0x632   :  { %v3550_v36 = vpack.c.bf16 %v2376_v34, %v2375_v33 }
 0x634   :  { %3506 = vmatpush3.bf16.msra.mxu1 %v3505_v38  ;;  %v2378_v38 = vld [vmem:[%s4461_s10 + $0x58] sm:$0xff] }
 0x635   :  { %3507 = vmatprep.subr.bf16.mxu1 %v3777_v40 }
 0x6ea   :  { %v2082_v42 = vpop.f32.mrb[6].mxu1 }
 0x6eb   :  { %v2087_v43 = vmul.f32 %v2082_v42, %v4317_v59  ;;  %v2084_v44 = vpop.f32.mrb[7].mxu1  ;;  %v2200_v59 = vld [vmem:[%s4459_s8 + $0x10] sm:$0xff]  ;;  %v3553_v42 = vpack.c.bf16 %v2378_v38, %v2377_v37 }
 0x6ec   :  { %v2088_v35 = vmul.f32 %v2084_v44, %v4319_v39  ;;  %v2201_v39 = vld [vmem:[%s4459_s8 + $0x18] sm:$0xff]  ;;  %v2380_v44 = vld [vmem:[%s4461_s10 + $0x68] sm:$0xff] }
 0x6ed   :  { %v2091_v48 = vmul.f32 0.2, %v2087_v43  ;;  %vm2089_vm6 = vcmp.gt.f32.partialorder %v2087_v43, 0.0  ;;  %v3511_v25 = vpack.c.bf16 %v2201_v39, %v2200_v59 }
 0x6ee   :  { %v2092_v49 = vmul.f32 0.2, %v2088_v35  ;;  %vm2090_vm7 = vcmp.gt.f32.partialorder %v2088_v35, 0.0 }
 0x6ef   :  { %v2093_v52 = vsel %vm2089_vm6, %v2087_v43, %v2091_v48  ;;  %v2379_v43 = vld [vmem:[%s4461_s10 + $0x60] sm:$0xff]  ;;  %v3559_v48 = vpack.c.bf16 %v2382_v47, %v2381_v46 }
 0x6f0   :  { %v2094_v51 = vsel %vm2090_vm7, %v2088_v35, %v2092_v49  ;;  %v3556_v35 = vpack.c.bf16 %v2380_v44, %v2379_v43 }
 0x6f1   :  { %2191 = vmatprep.mubr.f32.mxu1 %v2094_v51 }
 0x6f2   :  { %2192 = vmatmul.mubr.f32.vlgmr.msra.gmra.mrb[8].mxu1 %v2093_v52  ;;  %v2474_v52 = vld [vmem:[#allocation12] ss:$0 sm:$0xff] }
 0x6f3   :  { %3509 = vmatpush3.bf16.msra.mxu1 %v3508_v50  ;;  %2686 = vmatprep.mubr.msk.f32.mxu1 %vm3778_vm8, %v3776_v10 }
 0x6f4   :  { %3510 = vmatprep.subr.bf16.mxu1 %v3777_v40 }
 0x6f7   :  { %3512 = vmatpush3.bf16.msra.mxu1 %v3511_v25 }
 0x6f8   :  { %3513 = vmatprep.subr.bf16.mxu1 %v3777_v40 }
 0x6fb   :  { %3515 = vmatpush3.bf16.msra.mxu1 %v3514_v55 }
 0x6fc   :  { %3516 = vmatprep.subr.bf16.mxu1 %v3777_v40 }
 0x6ff   :  { %3518 = vmatpush3.bf16.msra.mxu1 %v3517_v57 }
 0x700   :  { %3519 = vmatprep.subr.bf16.mxu1 %v3777_v40 }
 0x703   :  { %3521 = vmatpush3.bf16.msra.mxu1 %v3520_v22 }
 0x704   :  { %3522 = vmatprep.subr.bf16.mxu1 %v3777_v40 }
 0x707   :  { %3524 = vmatpush3.bf16.msra.mxu1 %v3523_v62 }
 0x708   :  { %3525 = vmatprep.subr.bf16.mxu1 %v3777_v40 }
 0x70b   :  { %3527 = vmatpush3.bf16.msra.mxu1 %v3526_v0 }
 0x70c   :  { %3528 = vmatprep.subr.bf16.mxu1 %v3777_v40 }
 0x70f   :  { %3530 = vmatpush3.bf16.msra.mxu1 %v3529_v41 }
 0x710   :  { %3531 = vmatprep.subr.bf16.mxu1 %v3777_v40 }
 0x7c5   :  { %v2612_v6 = vpop.f32.mrb[8].mxu1 }
 0x7c6   :  { %v2613_v2 = vpop.f32.mrb[9].mxu1 }
 0x7c7   :  { %v2614_v7 = vadd.f32 %v2613_v2, %v2612_v6 }
 0x7c9   :  { %v2197_v8 = vmul.f32 %v2614_v7, %v2614_v7 }
 0x7cb   :  { %2687 = vmatmul.mubr.f32.vlgmr.msra.gmra.mrb[10].mxu1 %v2197_v8 }
 0x7cc   :  { %2697 = vmatprep.mubr.msk.f32.mxu1 %vm3778_vm8, %v3776_v10  ;;  %3533 = vmatpush3.bf16.msra.mxu1 %v3532_v13 }
 0x7cd   :  { %3534 = vmatprep.subr.bf16.mxu1 %v3777_v40 }
 0x7d0   :  { %3536 = vmatpush3.bf16.msra.mxu1 %v3535_v15 }
 0x7d1   :  { %3537 = vmatprep.subr.bf16.mxu1 %v3777_v40 }
 0x89e   :  { %v2280_v16 = vpop.f32.mrb[10].mxu1 }
 0x89f   :  { %v2281_v17 = vadd.f32 1e-05, %v2280_v16  ;;  %v2688_v18 = vpop.f32.mrb[11].mxu1 }
 0x8a1   :  { %3598 = vrsqrt.f32 %v2281_v17 }
 0x8ab   :  { %v3599_v26 = vpop.eup %3598 }
 0x8ac   :  { %2698 = vmatmul.mubr.msk.f32.vlgmr.msra.gmra.mrb[12].mxu1 %vm2289_vm9, %v3599_v26 }
 0x8ad   :  { %3539 = vmatpush3.bf16.msra.mxu1 %v3538_v21  ;;  %2732 = vmatprep.mubr.msk.f32.mxu1 %vm3778_vm8, %v3776_v10  ;;  %v2374_v10 = vld [vmem:[%s4461_s10 + $0x38] sm:$0xff] }
 0x8ae   :  { %3540 = vmatprep.subr.bf16.mxu1 %v3777_v40  ;;  %v3547_v32 = vpack.c.bf16 %v2374_v10, %v2373_v31 }
 0x8b1   :  { %3542 = vmatpush3.bf16.msra.mxu1 %v3541_v27 }
 0x8b2   :  { %3543 = vmatprep.subr.bf16.mxu1 %v3777_v40 }
 0x8b5   :  { %3545 = vmatpush3.bf16.msra.mxu1 %v3544_v30 }
 0x8b6   :  { %3546 = vmatprep.subr.bf16.mxu1 %v3777_v40 }
 0x8b9   :  { %3548 = vmatpush3.bf16.msra.mxu1 %v3547_v32 }
 0x8ba   :  { %3549 = vmatprep.subr.bf16.mxu1 %v3777_v40 }
 0x8bd   :  { %3551 = vmatpush3.bf16.msra.mxu1 %v3550_v36 }
 0x8be   :  { %3552 = vmatprep.subr.bf16.mxu1 %v3777_v40 }
 0x8c1   :  { %3554 = vmatpush3.bf16.msra.mxu1 %v3553_v42 }
 0x8c2   :  { %3555 = vmatprep.subr.bf16.mxu1 %v3777_v40 }
 0x8c5   :  { %3557 = vmatpush3.bf16.msra.mxu1 %v3556_v35 }
 0x8c6   :  { %3558 = vmatprep.subr.bf16.mxu1 %v3777_v40 }
 0x8c9   :  { %3560 = vmatpush3.bf16.msra.mxu1 %v3559_v48 }
 0x97f   :  { %v2359_v49 = vpop.f32.mrb[12].mxu1 }
 0x980   :  { %v2363_v50 = vmul.f32 %v2614_v7, %v2359_v49  ;;  %v2699_v51 = vpop.f32.mrb[13].mxu1 }
 0x982   :  { %vm2364_vm10 = vcmp.gt.f32.partialorder %v2363_v50, 0.0  ;;  %v2365_v59 = vmul.f32 0.2, %v2363_v50 }
 0x984   :  { %v2366_v39 = vsel %vm2364_vm10, %v2363_v50, %v2365_v59 }
 0x985   :  { %2733 = vmatmul.mubr.f32.vlgmr.msra.gmra.mrb[14].mxu1 %v2366_v39 }
 0xa58   :  { %v2456_v25 = vpop.f32.mrb[14].mxu1 }
 0xa59   :  { %v2457_v40 = vadd.f32 %v2474_v52, %v2456_v25  ;;  %v2734_v53 = vpop.f32.mrb[15].mxu1 }
 0xa5b   :  { %2461 = vst.msk [vmem:[%s4463_s12] sm:$0x3] %vm2460_vm11, %v2457_v40 }
 0xa5c   :  { %2466 = vsyncpa [#allocation3], 1 }
 0xa5d   :  { %2467 = vsyncpa [#allocation5], 1 }
 0xa5e   :  { %2468 = vsyncpa [#allocation8], 1 }
 0xa5f   :  { %2469 = vsyncpa [#allocation11], 1 }

</bundles_post_ra>
